<compile_context>
chip_gen: v7x
topology: tpu7x:2x2x1
jax: 0.10.0
libtpu: 0.0.40
codegen_flags: <defaults>
</compile_context>

<pallas_src>
import jax
import jax.numpy as jnp
from jax.experimental import pallas as pl
from jax.experimental.pallas import tpu as pltpu


# ----------------------------------------------------------------------------
# Fused spatial-attention kernel (per batch element)
# ----------------------------------------------------------------------------
def _make_sa_kernel(C, CA, H, W, K, P):
    Hp, Wp = H + 2 * P, W + 2 * P
    KK = K * K

    def kernel(d_ref, a_ref, w_ref, o_ref, pavg_ref, pmax_ref):
        # ---- channel mean / max of defineH: unrolled VPU loop over C planes ----
        v0 = d_ref[0, 0].astype(jnp.float32)            # (H, W)
        s = v0
        m = v0
        for c in range(1, C):
            v = d_ref[0, c].astype(jnp.float32)
            s = s + v
            m = jnp.maximum(m, v)
        mean2d = s * (1.0 / C)                           # (H, W)

        # ---- zero-padded maps (Conv2d default padding) in VMEM scratch ----
        pavg_ref[...] = jnp.zeros((Hp, Wp), jnp.float32)
        pmax_ref[...] = jnp.zeros((Hp, Wp), jnp.float32)
        pavg_ref[P:P + H, P:P + W] = mean2d
        pmax_ref[P:P + H, P:P + W] = m
        pa = pavg_ref[...]                               # (Hp, Wp)
        pm = pmax_ref[...]

        # ---- K x K (2 -> 1) conv as a VPU tap loop; taps are SMEM scalars ----
        acc = jnp.zeros((H, W), jnp.float32)
        for ky in range(K):
            for kx in range(K):
                t = ky * K + kx
                acc = acc + pa[ky:ky + H, kx:kx + W] * w_ref[t] \
                          + pm[ky:ky + H, kx:kx + W] * w_ref[KK + t]

        # ---- sigmoid gate broadcast over real_A channels ----
        gate = jax.nn.sigmoid(acc)                       # (H, W)
        a = a_ref[0].astype(jnp.float32)                 # (CA, H, W)
        o_ref[0] = (a * gate[None, :, :]).astype(o_ref.dtype)

    return kernel


def spatial_attention(real_a, defineh, w_conv1):
    """NeRCo SpatialAttention.forward(real_A, defineH_output).

    real_a:   (N, CA, H, W) tensor that gets gated.
    defineh:  (N, C,  H, W) feature map used to build the spatial mask.
    w_conv1:  (1, 2, K, K)  Conv2d(2, 1, K, padding=K//2, bias=False) weight;
              input channel 0 hits the channel-mean map, channel 1 the
              channel-max map (matching torch.cat([avg_out, max_out], dim=1)).
    """
    N, CA, H, W = real_a.shape
    Nd, C, Hd, Wd = defineh.shape
    assert (Nd, Hd, Wd) == (N, H, W)
    K = w_conv1.shape[-1]
    assert K in (3, 7), "kernel size must be 3 or 7"
    P = 3 if K == 7 else 1

    # Flat 1-D SMEM taps: [avg taps (K*K), max taps (K*K)], row-major.
    w_flat = w_conv1.astype(jnp.float32).reshape(-1)

    kernel = _make_sa_kernel(C, CA, H, W, K, P)
    return pl.pallas_call(
        kernel,
        out_shape=jax.ShapeDtypeStruct((N, CA, H, W), real_a.dtype),
        grid=(N,),
        in_specs=[
            pl.BlockSpec((1, C, H, W), lambda n: (n, 0, 0, 0)),
            pl.BlockSpec((1, CA, H, W), lambda n: (n, 0, 0, 0)),
            pl.BlockSpec(memory_space=pltpu.MemorySpace.SMEM),
        ],
        out_specs=pl.BlockSpec((1, CA, H, W), lambda n: (n, 0, 0, 0)),
        scratch_shapes=[
            pltpu.VMEM((H + 2 * P, W + 2 * P), jnp.float32),
            pltpu.VMEM((H + 2 * P, W + 2 * P), jnp.float32),
        ],
        compiler_params=pltpu.CompilerParams(
            dimension_semantics=("parallel",)),
    )(defineh, real_a, w_flat)


# ----------------------------------------------------------------------------
# Pure-JAX reference for a correctness cross-check
# ----------------------------------------------------------------------------
def ref_forward(real_a, defineh, w_conv1):
    avg = jnp.mean(defineh, axis=1, keepdims=True)
    mx = jnp.max(defineh, axis=1, keepdims=True)
    s = jnp.concatenate([avg, mx], axis=1)               # (N, 2, H, W)
    P = 3 if w_conv1.shape[-1] == 7 else 1
    logit = jax.lax.conv_general_dilated(
        s, w_conv1, window_strides=(1, 1), padding=[(P, P), (P, P)],
        dimension_numbers=("NCHW", "OIHW", "NCHW"),
        precision=jax.lax.Precision.HIGHEST)             # (N, 1, H, W)
    return jax.nn.sigmoid(logit) * real_a


# ----------------------------------------------------------------------------
# Driver
# ----------------------------------------------------------------------------
if __name__ == "__main__":
    key = jax.random.PRNGKey(0)
    k1, k2, k3 = jax.random.split(key, 3)

    N, CA, C, H, W = 2, 3, 32, 16, 16       # real_A is RGB-like, defineH is ngf=32
    real_a = jax.random.normal(k1, (N, CA, H, W), jnp.float32)
    defineh = jax.random.normal(k2, (N, C, H, W), jnp.float32)
    w_conv1 = jax.random.normal(k3, (1, 2, 7, 7), jnp.float32) * 0.1

    out = spatial_attention(real_a, defineh, w_conv1)
    out = jax.block_until_ready(out)

    assert out.shape == (N, CA, H, W), out.shape
    assert bool(jnp.all(jnp.isfinite(out)))

    ref = ref_forward(real_a, defineh, w_conv1)
    assert jnp.allclose(out, ref, atol=1e-4, rtol=1e-4), \
        float(jnp.max(jnp.abs(out - ref)))

    print("KERNEL_OK")
</pallas_src>

<mosaic_0001>
module attributes {stable_mosaic.version = 11 : i64} {
  func.func @kernel(%arg0: i32, %arg1: memref<1x32x16x16xf32, #tpu.memory_space<vmem>>, %arg2: memref<1x3x16x16xf32, #tpu.memory_space<vmem>>, %arg3: memref<98xf32, #tpu.memory_space<smem>>, %arg4: memref<1x3x16x16xf32, #tpu.memory_space<vmem>>, %arg5: memref<22x22xf32, #tpu.memory_space<vmem>>, %arg6: memref<22x22xf32, #tpu.memory_space<vmem>>) attributes {dimension_semantics = [#tpu.dimension_semantics<parallel>], iteration_bounds = array<i64: 2>, scalar_prefetch = 0 : i64, scratch_operands = 2 : i64, tpu.core_type = #tpu.core_type<tc>, window_params = [{transform_indices = @transform_0, window_bounds = array<i64: 1, 32, 16, 16>}, {transform_indices = @transform_1, window_bounds = array<i64: 1, 3, 16, 16>}, {transform_indices = @transform_2, window_bounds = array<i64: 98>}, {transform_indices = @transform_3, window_bounds = array<i64: 1, 3, 16, 16>}]} {
    %c0 = arith.constant 0 : index
    %c0_0 = arith.constant 0 : index
    %c0_1 = arith.constant 0 : index
    %c0_2 = arith.constant 0 : index
    %0 = vector.load %arg1[%c0, %c0_0, %c0_1, %c0_2] : memref<1x32x16x16xf32, #tpu.memory_space<vmem>>, vector<1x1x16x16xf32>
    %1 = vector.shape_cast %0 : vector<1x1x16x16xf32> to vector<16x16xf32>
    %c0_3 = arith.constant 0 : index
    %c1 = arith.constant 1 : index
    %c0_4 = arith.constant 0 : index
    %c0_5 = arith.constant 0 : index
    %2 = vector.load %arg1[%c0_3, %c1, %c0_4, %c0_5] : memref<1x32x16x16xf32, #tpu.memory_space<vmem>>, vector<1x1x16x16xf32>
    %3 = vector.shape_cast %2 : vector<1x1x16x16xf32> to vector<16x16xf32>
    %4 = arith.addf %1, %3 : vector<16x16xf32>
    %5 = arith.maximumf %1, %3 : vector<16x16xf32>
    %c0_6 = arith.constant 0 : index
    %c2 = arith.constant 2 : index
    %c0_7 = arith.constant 0 : index
    %c0_8 = arith.constant 0 : index
    %6 = vector.load %arg1[%c0_6, %c2, %c0_7, %c0_8] : memref<1x32x16x16xf32, #tpu.memory_space<vmem>>, vector<1x1x16x16xf32>
    %7 = vector.shape_cast %6 : vector<1x1x16x16xf32> to vector<16x16xf32>
    %8 = arith.addf %4, %7 : vector<16x16xf32>
    %9 = arith.maximumf %5, %7 : vector<16x16xf32>
    %c0_9 = arith.constant 0 : index
    %c3 = arith.constant 3 : index
    %c0_10 = arith.constant 0 : index
    %c0_11 = arith.constant 0 : index
    %10 = vector.load %arg1[%c0_9, %c3, %c0_10, %c0_11] : memref<1x32x16x16xf32, #tpu.memory_space<vmem>>, vector<1x1x16x16xf32>
    %11 = vector.shape_cast %10 : vector<1x1x16x16xf32> to vector<16x16xf32>
    %12 = arith.addf %8, %11 : vector<16x16xf32>
    %13 = arith.maximumf %9, %11 : vector<16x16xf32>
    %c0_12 = arith.constant 0 : index
    %c4 = arith.constant 4 : index
    %c0_13 = arith.constant 0 : index
    %c0_14 = arith.constant 0 : index
    %14 = vector.load %arg1[%c0_12, %c4, %c0_13, %c0_14] : memref<1x32x16x16xf32, #tpu.memory_space<vmem>>, vector<1x1x16x16xf32>
    %15 = vector.shape_cast %14 : vector<1x1x16x16xf32> to vector<16x16xf32>
    %16 = arith.addf %12, %15 : vector<16x16xf32>
    %17 = arith.maximumf %13, %15 : vector<16x16xf32>
    %c0_15 = arith.constant 0 : index
    %c5 = arith.constant 5 : index
    %c0_16 = arith.constant 0 : index
    %c0_17 = arith.constant 0 : index
    %18 = vector.load %arg1[%c0_15, %c5, %c0_16, %c0_17] : memref<1x32x16x16xf32, #tpu.memory_space<vmem>>, vector<1x1x16x16xf32>
    %19 = vector.shape_cast %18 : vector<1x1x16x16xf32> to vector<16x16xf32>
    %20 = arith.addf %16, %19 : vector<16x16xf32>
    %21 = arith.maximumf %17, %19 : vector<16x16xf32>
    %c0_18 = arith.constant 0 : index
    %c6 = arith.constant 6 : index
    %c0_19 = arith.constant 0 : index
    %c0_20 = arith.constant 0 : index
    %22 = vector.load %arg1[%c0_18, %c6, %c0_19, %c0_20] : memref<1x32x16x16xf32, #tpu.memory_space<vmem>>, vector<1x1x16x16xf32>
    %23 = vector.shape_cast %22 : vector<1x1x16x16xf32> to vector<16x16xf32>
    %24 = arith.addf %20, %23 : vector<16x16xf32>
    %25 = arith.maximumf %21, %23 : vector<16x16xf32>
    %c0_21 = arith.constant 0 : index
    %c7 = arith.constant 7 : index
    %c0_22 = arith.constant 0 : index
    %c0_23 = arith.constant 0 : index
    %26 = vector.load %arg1[%c0_21, %c7, %c0_22, %c0_23] : memref<1x32x16x16xf32, #tpu.memory_space<vmem>>, vector<1x1x16x16xf32>
    %27 = vector.shape_cast %26 : vector<1x1x16x16xf32> to vector<16x16xf32>
    %28 = arith.addf %24, %27 : vector<16x16xf32>
    %29 = arith.maximumf %25, %27 : vector<16x16xf32>
    %c0_24 = arith.constant 0 : index
    %c8 = arith.constant 8 : index
    %c0_25 = arith.constant 0 : index
    %c0_26 = arith.constant 0 : index
    %30 = vector.load %arg1[%c0_24, %c8, %c0_25, %c0_26] : memref<1x32x16x16xf32, #tpu.memory_space<vmem>>, vector<1x1x16x16xf32>
    %31 = vector.shape_cast %30 : vector<1x1x16x16xf32> to vector<16x16xf32>
    %32 = arith.addf %28, %31 : vector<16x16xf32>
    %33 = arith.maximumf %29, %31 : vector<16x16xf32>
    %c0_27 = arith.constant 0 : index
    %c9 = arith.constant 9 : index
    %c0_28 = arith.constant 0 : index
    %c0_29 = arith.constant 0 : index
    %34 = vector.load %arg1[%c0_27, %c9, %c0_28, %c0_29] : memref<1x32x16x16xf32, #tpu.memory_space<vmem>>, vector<1x1x16x16xf32>
    %35 = vector.shape_cast %34 : vector<1x1x16x16xf32> to vector<16x16xf32>
    %36 = arith.addf %32, %35 : vector<16x16xf32>
    %37 = arith.maximumf %33, %35 : vector<16x16xf32>
    %c0_30 = arith.constant 0 : index
    %c10 = arith.constant 10 : index
    %c0_31 = arith.constant 0 : index
    %c0_32 = arith.constant 0 : index
    %38 = vector.load %arg1[%c0_30, %c10, %c0_31, %c0_32] : memref<1x32x16x16xf32, #tpu.memory_space<vmem>>, vector<1x1x16x16xf32>
    %39 = vector.shape_cast %38 : vector<1x1x16x16xf32> to vector<16x16xf32>
    %40 = arith.addf %36, %39 : vector<16x16xf32>
    %41 = arith.maximumf %37, %39 : vector<16x16xf32>
    %c0_33 = arith.constant 0 : index
    %c11 = arith.constant 11 : index
    %c0_34 = arith.constant 0 : index
    %c0_35 = arith.constant 0 : index
    %42 = vector.load %arg1[%c0_33, %c11, %c0_34, %c0_35] : memref<1x32x16x16xf32, #tpu.memory_space<vmem>>, vector<1x1x16x16xf32>
    %43 = vector.shape_cast %42 : vector<1x1x16x16xf32> to vector<16x16xf32>
    %44 = arith.addf %40, %43 : vector<16x16xf32>
    %45 = arith.maximumf %41, %43 : vector<16x16xf32>
    %c0_36 = arith.constant 0 : index
    %c12 = arith.constant 12 : index
    %c0_37 = arith.constant 0 : index
    %c0_38 = arith.constant 0 : index
    %46 = vector.load %arg1[%c0_36, %c12, %c0_37, %c0_38] : memref<1x32x16x16xf32, #tpu.memory_space<vmem>>, vector<1x1x16x16xf32>
    %47 = vector.shape_cast %46 : vector<1x1x16x16xf32> to vector<16x16xf32>
    %48 = arith.addf %44, %47 : vector<16x16xf32>
    %49 = arith.maximumf %45, %47 : vector<16x16xf32>
    %c0_39 = arith.constant 0 : index
    %c13 = arith.constant 13 : index
    %c0_40 = arith.constant 0 : index
    %c0_41 = arith.constant 0 : index
    %50 = vector.load %arg1[%c0_39, %c13, %c0_40, %c0_41] : memref<1x32x16x16xf32, #tpu.memory_space<vmem>>, vector<1x1x16x16xf32>
    %51 = vector.shape_cast %50 : vector<1x1x16x16xf32> to vector<16x16xf32>
    %52 = arith.addf %48, %51 : vector<16x16xf32>
    %53 = arith.maximumf %49, %51 : vector<16x16xf32>
    %c0_42 = arith.constant 0 : index
    %c14 = arith.constant 14 : index
    %c0_43 = arith.constant 0 : index
    %c0_44 = arith.constant 0 : index
    %54 = vector.load %arg1[%c0_42, %c14, %c0_43, %c0_44] : memref<1x32x16x16xf32, #tpu.memory_space<vmem>>, vector<1x1x16x16xf32>
    %55 = vector.shape_cast %54 : vector<1x1x16x16xf32> to vector<16x16xf32>
    %56 = arith.addf %52, %55 : vector<16x16xf32>
    %57 = arith.maximumf %53, %55 : vector<16x16xf32>
    %c0_45 = arith.constant 0 : index
    %c15 = arith.constant 15 : index
    %c0_46 = arith.constant 0 : index
    %c0_47 = arith.constant 0 : index
    %58 = vector.load %arg1[%c0_45, %c15, %c0_46, %c0_47] : memref<1x32x16x16xf32, #tpu.memory_space<vmem>>, vector<1x1x16x16xf32>
    %59 = vector.shape_cast %58 : vector<1x1x16x16xf32> to vector<16x16xf32>
    %60 = arith.addf %56, %59 : vector<16x16xf32>
    %61 = arith.maximumf %57, %59 : vector<16x16xf32>
    %c0_48 = arith.constant 0 : index
    %c16 = arith.constant 16 : index
    %c0_49 = arith.constant 0 : index
    %c0_50 = arith.constant 0 : index
    %62 = vector.load %arg1[%c0_48, %c16, %c0_49, %c0_50] : memref<1x32x16x16xf32, #tpu.memory_space<vmem>>, vector<1x1x16x16xf32>
    %63 = vector.shape_cast %62 : vector<1x1x16x16xf32> to vector<16x16xf32>
    %64 = arith.addf %60, %63 : vector<16x16xf32>
    %65 = arith.maximumf %61, %63 : vector<16x16xf32>
    %c0_51 = arith.constant 0 : index
    %c17 = arith.constant 17 : index
    %c0_52 = arith.constant 0 : index
    %c0_53 = arith.constant 0 : index
    %66 = vector.load %arg1[%c0_51, %c17, %c0_52, %c0_53] : memref<1x32x16x16xf32, #tpu.memory_space<vmem>>, vector<1x1x16x16xf32>
    %67 = vector.shape_cast %66 : vector<1x1x16x16xf32> to vector<16x16xf32>
    %68 = arith.addf %64, %67 : vector<16x16xf32>
    %69 = arith.maximumf %65, %67 : vector<16x16xf32>
    %c0_54 = arith.constant 0 : index
    %c18 = arith.constant 18 : index
    %c0_55 = arith.constant 0 : index
    %c0_56 = arith.constant 0 : index
    %70 = vector.load %arg1[%c0_54, %c18, %c0_55, %c0_56] : memref<1x32x16x16xf32, #tpu.memory_space<vmem>>, vector<1x1x16x16xf32>
    %71 = vector.shape_cast %70 : vector<1x1x16x16xf32> to vector<16x16xf32>
    %72 = arith.addf %68, %71 : vector<16x16xf32>
    %73 = arith.maximumf %69, %71 : vector<16x16xf32>
    %c0_57 = arith.constant 0 : index
    %c19 = arith.constant 19 : index
    %c0_58 = arith.constant 0 : index
    %c0_59 = arith.constant 0 : index
    %74 = vector.load %arg1[%c0_57, %c19, %c0_58, %c0_59] : memref<1x32x16x16xf32, #tpu.memory_space<vmem>>, vector<1x1x16x16xf32>
    %75 = vector.shape_cast %74 : vector<1x1x16x16xf32> to vector<16x16xf32>
    %76 = arith.addf %72, %75 : vector<16x16xf32>
    %77 = arith.maximumf %73, %75 : vector<16x16xf32>
    %c0_60 = arith.constant 0 : index
    %c20 = arith.constant 20 : index
    %c0_61 = arith.constant 0 : index
    %c0_62 = arith.constant 0 : index
    %78 = vector.load %arg1[%c0_60, %c20, %c0_61, %c0_62] : memref<1x32x16x16xf32, #tpu.memory_space<vmem>>, vector<1x1x16x16xf32>
    %79 = vector.shape_cast %78 : vector<1x1x16x16xf32> to vector<16x16xf32>
    %80 = arith.addf %76, %79 : vector<16x16xf32>
    %81 = arith.maximumf %77, %79 : vector<16x16xf32>
    %c0_63 = arith.constant 0 : index
    %c21 = arith.constant 21 : index
    %c0_64 = arith.constant 0 : index
    %c0_65 = arith.constant 0 : index
    %82 = vector.load %arg1[%c0_63, %c21, %c0_64, %c0_65] : memref<1x32x16x16xf32, #tpu.memory_space<vmem>>, vector<1x1x16x16xf32>
    %83 = vector.shape_cast %82 : vector<1x1x16x16xf32> to vector<16x16xf32>
    %84 = arith.addf %80, %83 : vector<16x16xf32>
    %85 = arith.maximumf %81, %83 : vector<16x16xf32>
    %c0_66 = arith.constant 0 : index
    %c22 = arith.constant 22 : index
    %c0_67 = arith.constant 0 : index
    %c0_68 = arith.constant 0 : index
    %86 = vector.load %arg1[%c0_66, %c22, %c0_67, %c0_68] : memref<1x32x16x16xf32, #tpu.memory_space<vmem>>, vector<1x1x16x16xf32>
    %87 = vector.shape_cast %86 : vector<1x1x16x16xf32> to vector<16x16xf32>
    %88 = arith.addf %84, %87 : vector<16x16xf32>
    %89 = arith.maximumf %85, %87 : vector<16x16xf32>
    %c0_69 = arith.constant 0 : index
    %c23 = arith.constant 23 : index
    %c0_70 = arith.constant 0 : index
    %c0_71 = arith.constant 0 : index
    %90 = vector.load %arg1[%c0_69, %c23, %c0_70, %c0_71] : memref<1x32x16x16xf32, #tpu.memory_space<vmem>>, vector<1x1x16x16xf32>
    %91 = vector.shape_cast %90 : vector<1x1x16x16xf32> to vector<16x16xf32>
    %92 = arith.addf %88, %91 : vector<16x16xf32>
    %93 = arith.maximumf %89, %91 : vector<16x16xf32>
    %c0_72 = arith.constant 0 : index
    %c24 = arith.constant 24 : index
    %c0_73 = arith.constant 0 : index
    %c0_74 = arith.constant 0 : index
    %94 = vector.load %arg1[%c0_72, %c24, %c0_73, %c0_74] : memref<1x32x16x16xf32, #tpu.memory_space<vmem>>, vector<1x1x16x16xf32>
    %95 = vector.shape_cast %94 : vector<1x1x16x16xf32> to vector<16x16xf32>
    %96 = arith.addf %92, %95 : vector<16x16xf32>
    %97 = arith.maximumf %93, %95 : vector<16x16xf32>
    %c0_75 = arith.constant 0 : index
    %c25 = arith.constant 25 : index
    %c0_76 = arith.constant 0 : index
    %c0_77 = arith.constant 0 : index
    %98 = vector.load %arg1[%c0_75, %c25, %c0_76, %c0_77] : memref<1x32x16x16xf32, #tpu.memory_space<vmem>>, vector<1x1x16x16xf32>
    %99 = vector.shape_cast %98 : vector<1x1x16x16xf32> to vector<16x16xf32>
    %100 = arith.addf %96, %99 : vector<16x16xf32>
    %101 = arith.maximumf %97, %99 : vector<16x16xf32>
    %c0_78 = arith.constant 0 : index
    %c26 = arith.constant 26 : index
    %c0_79 = arith.constant 0 : index
    %c0_80 = arith.constant 0 : index
    %102 = vector.load %arg1[%c0_78, %c26, %c0_79, %c0_80] : memref<1x32x16x16xf32, #tpu.memory_space<vmem>>, vector<1x1x16x16xf32>
    %103 = vector.shape_cast %102 : vector<1x1x16x16xf32> to vector<16x16xf32>
    %104 = arith.addf %100, %103 : vector<16x16xf32>
    %105 = arith.maximumf %101, %103 : vector<16x16xf32>
    %c0_81 = arith.constant 0 : index
    %c27 = arith.constant 27 : index
    %c0_82 = arith.constant 0 : index
    %c0_83 = arith.constant 0 : index
    %106 = vector.load %arg1[%c0_81, %c27, %c0_82, %c0_83] : memref<1x32x16x16xf32, #tpu.memory_space<vmem>>, vector<1x1x16x16xf32>
    %107 = vector.shape_cast %106 : vector<1x1x16x16xf32> to vector<16x16xf32>
    %108 = arith.addf %104, %107 : vector<16x16xf32>
    %109 = arith.maximumf %105, %107 : vector<16x16xf32>
    %c0_84 = arith.constant 0 : index
    %c28 = arith.constant 28 : index
    %c0_85 = arith.constant 0 : index
    %c0_86 = arith.constant 0 : index
    %110 = vector.load %arg1[%c0_84, %c28, %c0_85, %c0_86] : memref<1x32x16x16xf32, #tpu.memory_space<vmem>>, vector<1x1x16x16xf32>
    %111 = vector.shape_cast %110 : vector<1x1x16x16xf32> to vector<16x16xf32>
    %112 = arith.addf %108, %111 : vector<16x16xf32>
    %113 = arith.maximumf %109, %111 : vector<16x16xf32>
    %c0_87 = arith.constant 0 : index
    %c29 = arith.constant 29 : index
    %c0_88 = arith.constant 0 : index
    %c0_89 = arith.constant 0 : index
    %114 = vector.load %arg1[%c0_87, %c29, %c0_88, %c0_89] : memref<1x32x16x16xf32, #tpu.memory_space<vmem>>, vector<1x1x16x16xf32>
    %115 = vector.shape_cast %114 : vector<1x1x16x16xf32> to vector<16x16xf32>
    %116 = arith.addf %112, %115 : vector<16x16xf32>
    %117 = arith.maximumf %113, %115 : vector<16x16xf32>
    %c0_90 = arith.constant 0 : index
    %c30 = arith.constant 30 : index
    %c0_91 = arith.constant 0 : index
    %c0_92 = arith.constant 0 : index
    %118 = vector.load %arg1[%c0_90, %c30, %c0_91, %c0_92] : memref<1x32x16x16xf32, #tpu.memory_space<vmem>>, vector<1x1x16x16xf32>
    %119 = vector.shape_cast %118 : vector<1x1x16x16xf32> to vector<16x16xf32>
    %120 = arith.addf %116, %119 : vector<16x16xf32>
    %121 = arith.maximumf %117, %119 : vector<16x16xf32>
    %c0_93 = arith.constant 0 : index
    %c31 = arith.constant 31 : index
    %c0_94 = arith.constant 0 : index
    %c0_95 = arith.constant 0 : index
    %122 = vector.load %arg1[%c0_93, %c31, %c0_94, %c0_95] : memref<1x32x16x16xf32, #tpu.memory_space<vmem>>, vector<1x1x16x16xf32>
    %123 = vector.shape_cast %122 : vector<1x1x16x16xf32> to vector<16x16xf32>
    %124 = arith.addf %120, %123 : vector<16x16xf32>
    %125 = arith.maximumf %121, %123 : vector<16x16xf32>
    %cst = arith.constant 3.125000e-02 : f32
    %126 = vector.broadcast %cst : f32 to vector<16x16xf32>
    %127 = arith.mulf %124, %126 : vector<16x16xf32>
    %cst_96 = arith.constant 0.000000e+00 : f32
    %128 = vector.broadcast %cst_96 : f32 to vector<22x22xf32>
    %c0_97 = arith.constant 0 : index
    %c0_98 = arith.constant 0 : index
    %129 = vector.load %arg5[%c0_97, %c0_98] : memref<22x22xf32, #tpu.memory_space<vmem>>, vector<22x22xf32>
    tpu.vector_store %arg5[%c0_97, %c0_98], %128 {strides = array<i32>} : memref<22x22xf32, #tpu.memory_space<vmem>>, vector<22x22xf32>,
    %cst_99 = arith.constant 0.000000e+00 : f32
    %130 = vector.broadcast %cst_99 : f32 to vector<22x22xf32>
    %c0_100 = arith.constant 0 : index
    %c0_101 = arith.constant 0 : index
    %131 = vector.load %arg6[%c0_100, %c0_101] : memref<22x22xf32, #tpu.memory_space<vmem>>, vector<22x22xf32>
    tpu.vector_store %arg6[%c0_100, %c0_101], %130 {strides = array<i32>} : memref<22x22xf32, #tpu.memory_space<vmem>>, vector<22x22xf32>,
    %c3_102 = arith.constant 3 : index
    %c3_103 = arith.constant 3 : index
    %132 = vector.load %arg5[%c3_102, %c3_103] : memref<22x22xf32, #tpu.memory_space<vmem>>, vector<16x16xf32>
    tpu.vector_store %arg5[%c3_102, %c3_103], %127 {strides = array<i32>} : memref<22x22xf32, #tpu.memory_space<vmem>>, vector<16x16xf32>,
    %c3_104 = arith.constant 3 : index
    %c3_105 = arith.constant 3 : index
    %133 = vector.load %arg6[%c3_104, %c3_105] : memref<22x22xf32, #tpu.memory_space<vmem>>, vector<16x16xf32>
    tpu.vector_store %arg6[%c3_104, %c3_105], %125 {strides = array<i32>} : memref<22x22xf32, #tpu.memory_space<vmem>>, vector<16x16xf32>,
    %c0_106 = arith.constant 0 : index
    %c0_107 = arith.constant 0 : index
    %134 = vector.load %arg5[%c0_106, %c0_107] : memref<22x22xf32, #tpu.memory_space<vmem>>, vector<22x22xf32>
    %c0_108 = arith.constant 0 : index
    %c0_109 = arith.constant 0 : index
    %135 = vector.load %arg6[%c0_108, %c0_109] : memref<22x22xf32, #tpu.memory_space<vmem>>, vector<22x22xf32>
    %cst_110 = arith.constant 0.000000e+00 : f32
    %136 = vector.broadcast %cst_110 : f32 to vector<16x16xf32>
    %137 = vector.extract_strided_slice %134 {offsets = [0, 0], sizes = [16, 16], strides = [1, 1]} : vector<22x22xf32> to vector<16x16xf32>
    %c0_111 = arith.constant 0 : index
    %138 = memref.load %arg3[%c0_111] : memref<98xf32, #tpu.memory_space<smem>>
    %139 = vector.broadcast %138 : f32 to vector<16x16xf32>
    %140 = arith.mulf %137, %139 : vector<16x16xf32>
    %141 = arith.addf %136, %140 : vector<16x16xf32>
    %142 = vector.extract_strided_slice %135 {offsets = [0, 0], sizes = [16, 16], strides = [1, 1]} : vector<22x22xf32> to vector<16x16xf32>
    %c49 = arith.constant 49 : index
    %143 = memref.load %arg3[%c49] : memref<98xf32, #tpu.memory_space<smem>>
    %144 = vector.broadcast %143 : f32 to vector<16x16xf32>
    %145 = arith.mulf %142, %144 : vector<16x16xf32>
    %146 = arith.addf %141, %145 : vector<16x16xf32>
    %147 = vector.extract_strided_slice %134 {offsets = [0, 1], sizes = [16, 16], strides = [1, 1]} : vector<22x22xf32> to vector<16x16xf32>
    %c1_112 = arith.constant 1 : index
    %148 = memref.load %arg3[%c1_112] : memref<98xf32, #tpu.memory_space<smem>>
    %149 = vector.broadcast %148 : f32 to vector<16x16xf32>
    %150 = arith.mulf %147, %149 : vector<16x16xf32>
    %151 = arith.addf %146, %150 : vector<16x16xf32>
    %152 = vector.extract_strided_slice %135 {offsets = [0, 1], sizes = [16, 16], strides = [1, 1]} : vector<22x22xf32> to vector<16x16xf32>
    %c50 = arith.constant 50 : index
    %153 = memref.load %arg3[%c50] : memref<98xf32, #tpu.memory_space<smem>>
    %154 = vector.broadcast %153 : f32 to vector<16x16xf32>
    %155 = arith.mulf %152, %154 : vector<16x16xf32>
    %156 = arith.addf %151, %155 : vector<16x16xf32>
    %157 = vector.extract_strided_slice %134 {offsets = [0, 2], sizes = [16, 16], strides = [1, 1]} : vector<22x22xf32> to vector<16x16xf32>
    %c2_113 = arith.constant 2 : index
    %158 = memref.load %arg3[%c2_113] : memref<98xf32, #tpu.memory_space<smem>>
    %159 = vector.broadcast %158 : f32 to vector<16x16xf32>
    %160 = arith.mulf %157, %159 : vector<16x16xf32>
    %161 = arith.addf %156, %160 : vector<16x16xf32>
    %162 = vector.extract_strided_slice %135 {offsets = [0, 2], sizes = [16, 16], strides = [1, 1]} : vector<22x22xf32> to vector<16x16xf32>
    %c51 = arith.constant 51 : index
    %163 = memref.load %arg3[%c51] : memref<98xf32, #tpu.memory_space<smem>>
    %164 = vector.broadcast %163 : f32 to vector<16x16xf32>
    %165 = arith.mulf %162, %164 : vector<16x16xf32>
    %166 = arith.addf %161, %165 : vector<16x16xf32>
    %167 = vector.extract_strided_slice %134 {offsets = [0, 3], sizes = [16, 16], strides = [1, 1]} : vector<22x22xf32> to vector<16x16xf32>
    %c3_114 = arith.constant 3 : index
    %168 = memref.load %arg3[%c3_114] : memref<98xf32, #tpu.memory_space<smem>>
    %169 = vector.broadcast %168 : f32 to vector<16x16xf32>
    %170 = arith.mulf %167, %169 : vector<16x16xf32>
    %171 = arith.addf %166, %170 : vector<16x16xf32>
    %172 = vector.extract_strided_slice %135 {offsets = [0, 3], sizes = [16, 16], strides = [1, 1]} : vector<22x22xf32> to vector<16x16xf32>
    %c52 = arith.constant 52 : index
    %173 = memref.load %arg3[%c52] : memref<98xf32, #tpu.memory_space<smem>>
    %174 = vector.broadcast %173 : f32 to vector<16x16xf32>
    %175 = arith.mulf %172, %174 : vector<16x16xf32>
    %176 = arith.addf %171, %175 : vector<16x16xf32>
    %177 = vector.extract_strided_slice %134 {offsets = [0, 4], sizes = [16, 16], strides = [1, 1]} : vector<22x22xf32> to vector<16x16xf32>
    %c4_115 = arith.constant 4 : index
    %178 = memref.load %arg3[%c4_115] : memref<98xf32, #tpu.memory_space<smem>>
    %179 = vector.broadcast %178 : f32 to vector<16x16xf32>
    %180 = arith.mulf %177, %179 : vector<16x16xf32>
    %181 = arith.addf %176, %180 : vector<16x16xf32>
    %182 = vector.extract_strided_slice %135 {offsets = [0, 4], sizes = [16, 16], strides = [1, 1]} : vector<22x22xf32> to vector<16x16xf32>
    %c53 = arith.constant 53 : index
    %183 = memref.load %arg3[%c53] : memref<98xf32, #tpu.memory_space<smem>>
    %184 = vector.broadcast %183 : f32 to vector<16x16xf32>
    %185 = arith.mulf %182, %184 : vector<16x16xf32>
    %186 = arith.addf %181, %185 : vector<16x16xf32>
    %187 = vector.extract_strided_slice %134 {offsets = [0, 5], sizes = [16, 16], strides = [1, 1]} : vector<22x22xf32> to vector<16x16xf32>
    %c5_116 = arith.constant 5 : index
    %188 = memref.load %arg3[%c5_116] : memref<98xf32, #tpu.memory_space<smem>>
    %189 = vector.broadcast %188 : f32 to vector<16x16xf32>
    %190 = arith.mulf %187, %189 : vector<16x16xf32>
    %191 = arith.addf %186, %190 : vector<16x16xf32>
    %192 = vector.extract_strided_slice %135 {offsets = [0, 5], sizes = [16, 16], strides = [1, 1]} : vector<22x22xf32> to vector<16x16xf32>
    %c54 = arith.constant 54 : index
    %193 = memref.load %arg3[%c54] : memref<98xf32, #tpu.memory_space<smem>>
    %194 = vector.broadcast %193 : f32 to vector<16x16xf32>
    %195 = arith.mulf %192, %194 : vector<16x16xf32>
    %196 = arith.addf %191, %195 : vector<16x16xf32>
    %197 = vector.extract_strided_slice %134 {offsets = [0, 6], sizes = [16, 16], strides = [1, 1]} : vector<22x22xf32> to vector<16x16xf32>
    %c6_117 = arith.constant 6 : index
    %198 = memref.load %arg3[%c6_117] : memref<98xf32, #tpu.memory_space<smem>>
    %199 = vector.broadcast %198 : f32 to vector<16x16xf32>
    %200 = arith.mulf %197, %199 : vector<16x16xf32>
    %201 = arith.addf %196, %200 : vector<16x16xf32>
    %202 = vector.extract_strided_slice %135 {offsets = [0, 6], sizes = [16, 16], strides = [1, 1]} : vector<22x22xf32> to vector<16x16xf32>
    %c55 = arith.constant 55 : index
    %203 = memref.load %arg3[%c55] : memref<98xf32, #tpu.memory_space<smem>>
    %204 = vector.broadcast %203 : f32 to vector<16x16xf32>
    %205 = arith.mulf %202, %204 : vector<16x16xf32>
    %206 = arith.addf %201, %205 : vector<16x16xf32>
    %207 = vector.extract_strided_slice %134 {offsets = [1, 0], sizes = [16, 16], strides = [1, 1]} : vector<22x22xf32> to vector<16x16xf32>
    %c7_118 = arith.constant 7 : index
    %208 = memref.load %arg3[%c7_118] : memref<98xf32, #tpu.memory_space<smem>>
    %209 = vector.broadcast %208 : f32 to vector<16x16xf32>
    %210 = arith.mulf %207, %209 : vector<16x16xf32>
    %211 = arith.addf %206, %210 : vector<16x16xf32>
    %212 = vector.extract_strided_slice %135 {offsets = [1, 0], sizes = [16, 16], strides = [1, 1]} : vector<22x22xf32> to vector<16x16xf32>
    %c56 = arith.constant 56 : index
    %213 = memref.load %arg3[%c56] : memref<98xf32, #tpu.memory_space<smem>>
    %214 = vector.broadcast %213 : f32 to vector<16x16xf32>
    %215 = arith.mulf %212, %214 : vector<16x16xf32>
    %216 = arith.addf %211, %215 : vector<16x16xf32>
    %217 = vector.extract_strided_slice %134 {offsets = [1, 1], sizes = [16, 16], strides = [1, 1]} : vector<22x22xf32> to vector<16x16xf32>
    %c8_119 = arith.constant 8 : index
    %218 = memref.load %arg3[%c8_119] : memref<98xf32, #tpu.memory_space<smem>>
    %219 = vector.broadcast %218 : f32 to vector<16x16xf32>
    %220 = arith.mulf %217, %219 : vector<16x16xf32>
    %221 = arith.addf %216, %220 : vector<16x16xf32>
    %222 = vector.extract_strided_slice %135 {offsets = [1, 1], sizes = [16, 16], strides = [1, 1]} : vector<22x22xf32> to vector<16x16xf32>
    %c57 = arith.constant 57 : index
    %223 = memref.load %arg3[%c57] : memref<98xf32, #tpu.memory_space<smem>>
    %224 = vector.broadcast %223 : f32 to vector<16x16xf32>
    %225 = arith.mulf %222, %224 : vector<16x16xf32>
    %226 = arith.addf %221, %225 : vector<16x16xf32>
    %227 = vector.extract_strided_slice %134 {offsets = [1, 2], sizes = [16, 16], strides = [1, 1]} : vector<22x22xf32> to vector<16x16xf32>
    %c9_120 = arith.constant 9 : index
    %228 = memref.load %arg3[%c9_120] : memref<98xf32, #tpu.memory_space<smem>>
    %229 = vector.broadcast %228 : f32 to vector<16x16xf32>
    %230 = arith.mulf %227, %229 : vector<16x16xf32>
    %231 = arith.addf %226, %230 : vector<16x16xf32>
    %232 = vector.extract_strided_slice %135 {offsets = [1, 2], sizes = [16, 16], strides = [1, 1]} : vector<22x22xf32> to vector<16x16xf32>
    %c58 = arith.constant 58 : index
    %233 = memref.load %arg3[%c58] : memref<98xf32, #tpu.memory_space<smem>>
    %234 = vector.broadcast %233 : f32 to vector<16x16xf32>
    %235 = arith.mulf %232, %234 : vector<16x16xf32>
    %236 = arith.addf %231, %235 : vector<16x16xf32>
    %237 = vector.extract_strided_slice %134 {offsets = [1, 3], sizes = [16, 16], strides = [1, 1]} : vector<22x22xf32> to vector<16x16xf32>
    %c10_121 = arith.constant 10 : index
    %238 = memref.load %arg3[%c10_121] : memref<98xf32, #tpu.memory_space<smem>>
    %239 = vector.broadcast %238 : f32 to vector<16x16xf32>
    %240 = arith.mulf %237, %239 : vector<16x16xf32>
    %241 = arith.addf %236, %240 : vector<16x16xf32>
    %242 = vector.extract_strided_slice %135 {offsets = [1, 3], sizes = [16, 16], strides = [1, 1]} : vector<22x22xf32> to vector<16x16xf32>
    %c59 = arith.constant 59 : index
    %243 = memref.load %arg3[%c59] : memref<98xf32, #tpu.memory_space<smem>>
    %244 = vector.broadcast %243 : f32 to vector<16x16xf32>
    %245 = arith.mulf %242, %244 : vector<16x16xf32>
    %246 = arith.addf %241, %245 : vector<16x16xf32>
    %247 = vector.extract_strided_slice %134 {offsets = [1, 4], sizes = [16, 16], strides = [1, 1]} : vector<22x22xf32> to vector<16x16xf32>
    %c11_122 = arith.constant 11 : index
    %248 = memref.load %arg3[%c11_122] : memref<98xf32, #tpu.memory_space<smem>>
    %249 = vector.broadcast %248 : f32 to vector<16x16xf32>
    %250 = arith.mulf %247, %249 : vector<16x16xf32>
    %251 = arith.addf %246, %250 : vector<16x16xf32>
    %252 = vector.extract_strided_slice %135 {offsets = [1, 4], sizes = [16, 16], strides = [1, 1]} : vector<22x22xf32> to vector<16x16xf32>
    %c60 = arith.constant 60 : index
    %253 = memref.load %arg3[%c60] : memref<98xf32, #tpu.memory_space<smem>>
    %254 = vector.broadcast %253 : f32 to vector<16x16xf32>
    %255 = arith.mulf %252, %254 : vector<16x16xf32>
    %256 = arith.addf %251, %255 : vector<16x16xf32>
    %257 = vector.extract_strided_slice %134 {offsets = [1, 5], sizes = [16, 16], strides = [1, 1]} : vector<22x22xf32> to vector<16x16xf32>
    %c12_123 = arith.constant 12 : index
    %258 = memref.load %arg3[%c12_123] : memref<98xf32, #tpu.memory_space<smem>>
    %259 = vector.broadcast %258 : f32 to vector<16x16xf32>
    %260 = arith.mulf %257, %259 : vector<16x16xf32>
    %261 = arith.addf %256, %260 : vector<16x16xf32>
    %262 = vector.extract_strided_slice %135 {offsets = [1, 5], sizes = [16, 16], strides = [1, 1]} : vector<22x22xf32> to vector<16x16xf32>
    %c61 = arith.constant 61 : index
    %263 = memref.load %arg3[%c61] : memref<98xf32, #tpu.memory_space<smem>>
    %264 = vector.broadcast %263 : f32 to vector<16x16xf32>
    %265 = arith.mulf %262, %264 : vector<16x16xf32>
    %266 = arith.addf %261, %265 : vector<16x16xf32>
    %267 = vector.extract_strided_slice %134 {offsets = [1, 6], sizes = [16, 16], strides = [1, 1]} : vector<22x22xf32> to vector<16x16xf32>
    %c13_124 = arith.constant 13 : index
    %268 = memref.load %arg3[%c13_124] : memref<98xf32, #tpu.memory_space<smem>>
    %269 = vector.broadcast %268 : f32 to vector<16x16xf32>
    %270 = arith.mulf %267, %269 : vector<16x16xf32>
    %271 = arith.addf %266, %270 : vector<16x16xf32>
    %272 = vector.extract_strided_slice %135 {offsets = [1, 6], sizes = [16, 16], strides = [1, 1]} : vector<22x22xf32> to vector<16x16xf32>
    %c62 = arith.constant 62 : index
    %273 = memref.load %arg3[%c62] : memref<98xf32, #tpu.memory_space<smem>>
    %274 = vector.broadcast %273 : f32 to vector<16x16xf32>
    %275 = arith.mulf %272, %274 : vector<16x16xf32>
    %276 = arith.addf %271, %275 : vector<16x16xf32>
    %277 = vector.extract_strided_slice %134 {offsets = [2, 0], sizes = [16, 16], strides = [1, 1]} : vector<22x22xf32> to vector<16x16xf32>
    %c14_125 = arith.constant 14 : index
    %278 = memref.load %arg3[%c14_125] : memref<98xf32, #tpu.memory_space<smem>>
    %279 = vector.broadcast %278 : f32 to vector<16x16xf32>
    %280 = arith.mulf %277, %279 : vector<16x16xf32>
    %281 = arith.addf %276, %280 : vector<16x16xf32>
    %282 = vector.extract_strided_slice %135 {offsets = [2, 0], sizes = [16, 16], strides = [1, 1]} : vector<22x22xf32> to vector<16x16xf32>
    %c63 = arith.constant 63 : index
    %283 = memref.load %arg3[%c63] : memref<98xf32, #tpu.memory_space<smem>>
    %284 = vector.broadcast %283 : f32 to vector<16x16xf32>
    %285 = arith.mulf %282, %284 : vector<16x16xf32>
    %286 = arith.addf %281, %285 : vector<16x16xf32>
    %287 = vector.extract_strided_slice %134 {offsets = [2, 1], sizes = [16, 16], strides = [1, 1]} : vector<22x22xf32> to vector<16x16xf32>
    %c15_126 = arith.constant 15 : index
    %288 = memref.load %arg3[%c15_126] : memref<98xf32, #tpu.memory_space<smem>>
    %289 = vector.broadcast %288 : f32 to vector<16x16xf32>
    %290 = arith.mulf %287, %289 : vector<16x16xf32>
    %291 = arith.addf %286, %290 : vector<16x16xf32>
    %292 = vector.extract_strided_slice %135 {offsets = [2, 1], sizes = [16, 16], strides = [1, 1]} : vector<22x22xf32> to vector<16x16xf32>
    %c64 = arith.constant 64 : index
    %293 = memref.load %arg3[%c64] : memref<98xf32, #tpu.memory_space<smem>>
    %294 = vector.broadcast %293 : f32 to vector<16x16xf32>
    %295 = arith.mulf %292, %294 : vector<16x16xf32>
    %296 = arith.addf %291, %295 : vector<16x16xf32>
    %297 = vector.extract_strided_slice %134 {offsets = [2, 2], sizes = [16, 16], strides = [1, 1]} : vector<22x22xf32> to vector<16x16xf32>
    %c16_127 = arith.constant 16 : index
    %298 = memref.load %arg3[%c16_127] : memref<98xf32, #tpu.memory_space<smem>>
    %299 = vector.broadcast %298 : f32 to vector<16x16xf32>
    %300 = arith.mulf %297, %299 : vector<16x16xf32>
    %301 = arith.addf %296, %300 : vector<16x16xf32>
    %302 = vector.extract_strided_slice %135 {offsets = [2, 2], sizes = [16, 16], strides = [1, 1]} : vector<22x22xf32> to vector<16x16xf32>
    %c65 = arith.constant 65 : index
    %303 = memref.load %arg3[%c65] : memref<98xf32, #tpu.memory_space<smem>>
    %304 = vector.broadcast %303 : f32 to vector<16x16xf32>
    %305 = arith.mulf %302, %304 : vector<16x16xf32>
    %306 = arith.addf %301, %305 : vector<16x16xf32>
    %307 = vector.extract_strided_slice %134 {offsets = [2, 3], sizes = [16, 16], strides = [1, 1]} : vector<22x22xf32> to vector<16x16xf32>
    %c17_128 = arith.constant 17 : index
    %308 = memref.load %arg3[%c17_128] : memref<98xf32, #tpu.memory_space<smem>>
    %309 = vector.broadcast %308 : f32 to vector<16x16xf32>
    %310 = arith.mulf %307, %309 : vector<16x16xf32>
    %311 = arith.addf %306, %310 : vector<16x16xf32>
    %312 = vector.extract_strided_slice %135 {offsets = [2, 3], sizes = [16, 16], strides = [1, 1]} : vector<22x22xf32> to vector<16x16xf32>
    %c66 = arith.constant 66 : index
    %313 = memref.load %arg3[%c66] : memref<98xf32, #tpu.memory_space<smem>>
    %314 = vector.broadcast %313 : f32 to vector<16x16xf32>
    %315 = arith.mulf %312, %314 : vector<16x16xf32>
    %316 = arith.addf %311, %315 : vector<16x16xf32>
    %317 = vector.extract_strided_slice %134 {offsets = [2, 4], sizes = [16, 16], strides = [1, 1]} : vector<22x22xf32> to vector<16x16xf32>
    %c18_129 = arith.constant 18 : index
    %318 = memref.load %arg3[%c18_129] : memref<98xf32, #tpu.memory_space<smem>>
    %319 = vector.broadcast %318 : f32 to vector<16x16xf32>
    %320 = arith.mulf %317, %319 : vector<16x16xf32>
    %321 = arith.addf %316, %320 : vector<16x16xf32>
    %322 = vector.extract_strided_slice %135 {offsets = [2, 4], sizes = [16, 16], strides = [1, 1]} : vector<22x22xf32> to vector<16x16xf32>
    %c67 = arith.constant 67 : index
    %323 = memref.load %arg3[%c67] : memref<98xf32, #tpu.memory_space<smem>>
    %324 = vector.broadcast %323 : f32 to vector<16x16xf32>
    %325 = arith.mulf %322, %324 : vector<16x16xf32>
    %326 = arith.addf %321, %325 : vector<16x16xf32>
    %327 = vector.extract_strided_slice %134 {offsets = [2, 5], sizes = [16, 16], strides = [1, 1]} : vector<22x22xf32> to vector<16x16xf32>
    %c19_130 = arith.constant 19 : index
    %328 = memref.load %arg3[%c19_130] : memref<98xf32, #tpu.memory_space<smem>>
    %329 = vector.broadcast %328 : f32 to vector<16x16xf32>
    %330 = arith.mulf %327, %329 : vector<16x16xf32>
    %331 = arith.addf %326, %330 : vector<16x16xf32>
    %332 = vector.extract_strided_slice %135 {offsets = [2, 5], sizes = [16, 16], strides = [1, 1]} : vector<22x22xf32> to vector<16x16xf32>
    %c68 = arith.constant 68 : index
    %333 = memref.load %arg3[%c68] : memref<98xf32, #tpu.memory_space<smem>>
    %334 = vector.broadcast %333 : f32 to vector<16x16xf32>
    %335 = arith.mulf %332, %334 : vector<16x16xf32>
    %336 = arith.addf %331, %335 : vector<16x16xf32>
    %337 = vector.extract_strided_slice %134 {offsets = [2, 6], sizes = [16, 16], strides = [1, 1]} : vector<22x22xf32> to vector<16x16xf32>
    %c20_131 = arith.constant 20 : index
    %338 = memref.load %arg3[%c20_131] : memref<98xf32, #tpu.memory_space<smem>>
    %339 = vector.broadcast %338 : f32 to vector<16x16xf32>
    %340 = arith.mulf %337, %339 : vector<16x16xf32>
    %341 = arith.addf %336, %340 : vector<16x16xf32>
    %342 = vector.extract_strided_slice %135 {offsets = [2, 6], sizes = [16, 16], strides = [1, 1]} : vector<22x22xf32> to vector<16x16xf32>
    %c69 = arith.constant 69 : index
    %343 = memref.load %arg3[%c69] : memref<98xf32, #tpu.memory_space<smem>>
    %344 = vector.broadcast %343 : f32 to vector<16x16xf32>
    %345 = arith.mulf %342, %344 : vector<16x16xf32>
    %346 = arith.addf %341, %345 : vector<16x16xf32>
    %347 = vector.extract_strided_slice %134 {offsets = [3, 0], sizes = [16, 16], strides = [1, 1]} : vector<22x22xf32> to vector<16x16xf32>
    %c21_132 = arith.constant 21 : index
    %348 = memref.load %arg3[%c21_132] : memref<98xf32, #tpu.memory_space<smem>>
    %349 = vector.broadcast %348 : f32 to vector<16x16xf32>
    %350 = arith.mulf %347, %349 : vector<16x16xf32>
    %351 = arith.addf %346, %350 : vector<16x16xf32>
    %352 = vector.extract_strided_slice %135 {offsets = [3, 0], sizes = [16, 16], strides = [1, 1]} : vector<22x22xf32> to vector<16x16xf32>
    %c70 = arith.constant 70 : index
    %353 = memref.load %arg3[%c70] : memref<98xf32, #tpu.memory_space<smem>>
    %354 = vector.broadcast %353 : f32 to vector<16x16xf32>
    %355 = arith.mulf %352, %354 : vector<16x16xf32>
    %356 = arith.addf %351, %355 : vector<16x16xf32>
    %357 = vector.extract_strided_slice %134 {offsets = [3, 1], sizes = [16, 16], strides = [1, 1]} : vector<22x22xf32> to vector<16x16xf32>
    %c22_133 = arith.constant 22 : index
    %358 = memref.load %arg3[%c22_133] : memref<98xf32, #tpu.memory_space<smem>>
    %359 = vector.broadcast %358 : f32 to vector<16x16xf32>
    %360 = arith.mulf %357, %359 : vector<16x16xf32>
    %361 = arith.addf %356, %360 : vector<16x16xf32>
    %362 = vector.extract_strided_slice %135 {offsets = [3, 1], sizes = [16, 16], strides = [1, 1]} : vector<22x22xf32> to vector<16x16xf32>
    %c71 = arith.constant 71 : index
    %363 = memref.load %arg3[%c71] : memref<98xf32, #tpu.memory_space<smem>>
    %364 = vector.broadcast %363 : f32 to vector<16x16xf32>
    %365 = arith.mulf %362, %364 : vector<16x16xf32>
    %366 = arith.addf %361, %365 : vector<16x16xf32>
    %367 = vector.extract_strided_slice %134 {offsets = [3, 2], sizes = [16, 16], strides = [1, 1]} : vector<22x22xf32> to vector<16x16xf32>
    %c23_134 = arith.constant 23 : index
    %368 = memref.load %arg3[%c23_134] : memref<98xf32, #tpu.memory_space<smem>>
    %369 = vector.broadcast %368 : f32 to vector<16x16xf32>
    %370 = arith.mulf %367, %369 : vector<16x16xf32>
    %371 = arith.addf %366, %370 : vector<16x16xf32>
    %372 = vector.extract_strided_slice %135 {offsets = [3, 2], sizes = [16, 16], strides = [1, 1]} : vector<22x22xf32> to vector<16x16xf32>
    %c72 = arith.constant 72 : index
    %373 = memref.load %arg3[%c72] : memref<98xf32, #tpu.memory_space<smem>>
    %374 = vector.broadcast %373 : f32 to vector<16x16xf32>
    %375 = arith.mulf %372, %374 : vector<16x16xf32>
    %376 = arith.addf %371, %375 : vector<16x16xf32>
    %377 = vector.extract_strided_slice %134 {offsets = [3, 3], sizes = [16, 16], strides = [1, 1]} : vector<22x22xf32> to vector<16x16xf32>
    %c24_135 = arith.constant 24 : index
    %378 = memref.load %arg3[%c24_135] : memref<98xf32, #tpu.memory_space<smem>>
    %379 = vector.broadcast %378 : f32 to vector<16x16xf32>
    %380 = arith.mulf %377, %379 : vector<16x16xf32>
    %381 = arith.addf %376, %380 : vector<16x16xf32>
    %382 = vector.extract_strided_slice %135 {offsets = [3, 3], sizes = [16, 16], strides = [1, 1]} : vector<22x22xf32> to vector<16x16xf32>
    %c73 = arith.constant 73 : index
    %383 = memref.load %arg3[%c73] : memref<98xf32, #tpu.memory_space<smem>>
    %384 = vector.broadcast %383 : f32 to vector<16x16xf32>
    %385 = arith.mulf %382, %384 : vector<16x16xf32>
    %386 = arith.addf %381, %385 : vector<16x16xf32>
    %387 = vector.extract_strided_slice %134 {offsets = [3, 4], sizes = [16, 16], strides = [1, 1]} : vector<22x22xf32> to vector<16x16xf32>
    %c25_136 = arith.constant 25 : index
    %388 = memref.load %arg3[%c25_136] : memref<98xf32, #tpu.memory_space<smem>>
    %389 = vector.broadcast %388 : f32 to vector<16x16xf32>
    %390 = arith.mulf %387, %389 : vector<16x16xf32>
    %391 = arith.addf %386, %390 : vector<16x16xf32>
    %392 = vector.extract_strided_slice %135 {offsets = [3, 4], sizes = [16, 16], strides = [1, 1]} : vector<22x22xf32> to vector<16x16xf32>
    %c74 = arith.constant 74 : index
    %393 = memref.load %arg3[%c74] : memref<98xf32, #tpu.memory_space<smem>>
    %394 = vector.broadcast %393 : f32 to vector<16x16xf32>
    %395 = arith.mulf %392, %394 : vector<16x16xf32>
    %396 = arith.addf %391, %395 : vector<16x16xf32>
    %397 = vector.extract_strided_slice %134 {offsets = [3, 5], sizes = [16, 16], strides = [1, 1]} : vector<22x22xf32> to vector<16x16xf32>
    %c26_137 = arith.constant 26 : index
    %398 = memref.load %arg3[%c26_137] : memref<98xf32, #tpu.memory_space<smem>>
    %399 = vector.broadcast %398 : f32 to vector<16x16xf32>
    %400 = arith.mulf %397, %399 : vector<16x16xf32>
    %401 = arith.addf %396, %400 : vector<16x16xf32>
    %402 = vector.extract_strided_slice %135 {offsets = [3, 5], sizes = [16, 16], strides = [1, 1]} : vector<22x22xf32> to vector<16x16xf32>
    %c75 = arith.constant 75 : index
    %403 = memref.load %arg3[%c75] : memref<98xf32, #tpu.memory_space<smem>>
    %404 = vector.broadcast %403 : f32 to vector<16x16xf32>
    %405 = arith.mulf %402, %404 : vector<16x16xf32>
    %406 = arith.addf %401, %405 : vector<16x16xf32>
    %407 = vector.extract_strided_slice %134 {offsets = [3, 6], sizes = [16, 16], strides = [1, 1]} : vector<22x22xf32> to vector<16x16xf32>
    %c27_138 = arith.constant 27 : index
    %408 = memref.load %arg3[%c27_138] : memref<98xf32, #tpu.memory_space<smem>>
    %409 = vector.broadcast %408 : f32 to vector<16x16xf32>
    %410 = arith.mulf %407, %409 : vector<16x16xf32>
    %411 = arith.addf %406, %410 : vector<16x16xf32>
    %412 = vector.extract_strided_slice %135 {offsets = [3, 6], sizes = [16, 16], strides = [1, 1]} : vector<22x22xf32> to vector<16x16xf32>
    %c76 = arith.constant 76 : index
    %413 = memref.load %arg3[%c76] : memref<98xf32, #tpu.memory_space<smem>>
    %414 = vector.broadcast %413 : f32 to vector<16x16xf32>
    %415 = arith.mulf %412, %414 : vector<16x16xf32>
    %416 = arith.addf %411, %415 : vector<16x16xf32>
    %417 = vector.extract_strided_slice %134 {offsets = [4, 0], sizes = [16, 16], strides = [1, 1]} : vector<22x22xf32> to vector<16x16xf32>
    %c28_139 = arith.constant 28 : index
    %418 = memref.load %arg3[%c28_139] : memref<98xf32, #tpu.memory_space<smem>>
    %419 = vector.broadcast %418 : f32 to vector<16x16xf32>
    %420 = arith.mulf %417, %419 : vector<16x16xf32>
    %421 = arith.addf %416, %420 : vector<16x16xf32>
    %422 = vector.extract_strided_slice %135 {offsets = [4, 0], sizes = [16, 16], strides = [1, 1]} : vector<22x22xf32> to vector<16x16xf32>
    %c77 = arith.constant 77 : index
    %423 = memref.load %arg3[%c77] : memref<98xf32, #tpu.memory_space<smem>>
    %424 = vector.broadcast %423 : f32 to vector<16x16xf32>
    %425 = arith.mulf %422, %424 : vector<16x16xf32>
    %426 = arith.addf %421, %425 : vector<16x16xf32>
    %427 = vector.extract_strided_slice %134 {offsets = [4, 1], sizes = [16, 16], strides = [1, 1]} : vector<22x22xf32> to vector<16x16xf32>
    %c29_140 = arith.constant 29 : index
    %428 = memref.load %arg3[%c29_140] : memref<98xf32, #tpu.memory_space<smem>>
    %429 = vector.broadcast %428 : f32 to vector<16x16xf32>
    %430 = arith.mulf %427, %429 : vector<16x16xf32>
    %431 = arith.addf %426, %430 : vector<16x16xf32>
    %432 = vector.extract_strided_slice %135 {offsets = [4, 1], sizes = [16, 16], strides = [1, 1]} : vector<22x22xf32> to vector<16x16xf32>
    %c78 = arith.constant 78 : index
    %433 = memref.load %arg3[%c78] : memref<98xf32, #tpu.memory_space<smem>>
    %434 = vector.broadcast %433 : f32 to vector<16x16xf32>
    %435 = arith.mulf %432, %434 : vector<16x16xf32>
    %436 = arith.addf %431, %435 : vector<16x16xf32>
    %437 = vector.extract_strided_slice %134 {offsets = [4, 2], sizes = [16, 16], strides = [1, 1]} : vector<22x22xf32> to vector<16x16xf32>
    %c30_141 = arith.constant 30 : index
    %438 = memref.load %arg3[%c30_141] : memref<98xf32, #tpu.memory_space<smem>>
    %439 = vector.broadcast %438 : f32 to vector<16x16xf32>
    %440 = arith.mulf %437, %439 : vector<16x16xf32>
    %441 = arith.addf %436, %440 : vector<16x16xf32>
    %442 = vector.extract_strided_slice %135 {offsets = [4, 2], sizes = [16, 16], strides = [1, 1]} : vector<22x22xf32> to vector<16x16xf32>
    %c79 = arith.constant 79 : index
    %443 = memref.load %arg3[%c79] : memref<98xf32, #tpu.memory_space<smem>>
    %444 = vector.broadcast %443 : f32 to vector<16x16xf32>
    %445 = arith.mulf %442, %444 : vector<16x16xf32>
    %446 = arith.addf %441, %445 : vector<16x16xf32>
    %447 = vector.extract_strided_slice %134 {offsets = [4, 3], sizes = [16, 16], strides = [1, 1]} : vector<22x22xf32> to vector<16x16xf32>
    %c31_142 = arith.constant 31 : index
    %448 = memref.load %arg3[%c31_142] : memref<98xf32, #tpu.memory_space<smem>>
    %449 = vector.broadcast %448 : f32 to vector<16x16xf32>
    %450 = arith.mulf %447, %449 : vector<16x16xf32>
    %451 = arith.addf %446, %450 : vector<16x16xf32>
    %452 = vector.extract_strided_slice %135 {offsets = [4, 3], sizes = [16, 16], strides = [1, 1]} : vector<22x22xf32> to vector<16x16xf32>
    %c80 = arith.constant 80 : index
    %453 = memref.load %arg3[%c80] : memref<98xf32, #tpu.memory_space<smem>>
    %454 = vector.broadcast %453 : f32 to vector<16x16xf32>
    %455 = arith.mulf %452, %454 : vector<16x16xf32>
    %456 = arith.addf %451, %455 : vector<16x16xf32>
    %457 = vector.extract_strided_slice %134 {offsets = [4, 4], sizes = [16, 16], strides = [1, 1]} : vector<22x22xf32> to vector<16x16xf32>
    %c32 = arith.constant 32 : index
    %458 = memref.load %arg3[%c32] : memref<98xf32, #tpu.memory_space<smem>>
    %459 = vector.broadcast %458 : f32 to vector<16x16xf32>
    %460 = arith.mulf %457, %459 : vector<16x16xf32>
    %461 = arith.addf %456, %460 : vector<16x16xf32>
    %462 = vector.extract_strided_slice %135 {offsets = [4, 4], sizes = [16, 16], strides = [1, 1]} : vector<22x22xf32> to vector<16x16xf32>
    %c81 = arith.constant 81 : index
    %463 = memref.load %arg3[%c81] : memref<98xf32, #tpu.memory_space<smem>>
    %464 = vector.broadcast %463 : f32 to vector<16x16xf32>
    %465 = arith.mulf %462, %464 : vector<16x16xf32>
    %466 = arith.addf %461, %465 : vector<16x16xf32>
    %467 = vector.extract_strided_slice %134 {offsets = [4, 5], sizes = [16, 16], strides = [1, 1]} : vector<22x22xf32> to vector<16x16xf32>
    %c33 = arith.constant 33 : index
    %468 = memref.load %arg3[%c33] : memref<98xf32, #tpu.memory_space<smem>>
    %469 = vector.broadcast %468 : f32 to vector<16x16xf32>
    %470 = arith.mulf %467, %469 : vector<16x16xf32>
    %471 = arith.addf %466, %470 : vector<16x16xf32>
    %472 = vector.extract_strided_slice %135 {offsets = [4, 5], sizes = [16, 16], strides = [1, 1]} : vector<22x22xf32> to vector<16x16xf32>
    %c82 = arith.constant 82 : index
    %473 = memref.load %arg3[%c82] : memref<98xf32, #tpu.memory_space<smem>>
    %474 = vector.broadcast %473 : f32 to vector<16x16xf32>
    %475 = arith.mulf %472, %474 : vector<16x16xf32>
    %476 = arith.addf %471, %475 : vector<16x16xf32>
    %477 = vector.extract_strided_slice %134 {offsets = [4, 6], sizes = [16, 16], strides = [1, 1]} : vector<22x22xf32> to vector<16x16xf32>
    %c34 = arith.constant 34 : index
    %478 = memref.load %arg3[%c34] : memref<98xf32, #tpu.memory_space<smem>>
    %479 = vector.broadcast %478 : f32 to vector<16x16xf32>
    %480 = arith.mulf %477, %479 : vector<16x16xf32>
    %481 = arith.addf %476, %480 : vector<16x16xf32>
    %482 = vector.extract_strided_slice %135 {offsets = [4, 6], sizes = [16, 16], strides = [1, 1]} : vector<22x22xf32> to vector<16x16xf32>
    %c83 = arith.constant 83 : index
    %483 = memref.load %arg3[%c83] : memref<98xf32, #tpu.memory_space<smem>>
    %484 = vector.broadcast %483 : f32 to vector<16x16xf32>
    %485 = arith.mulf %482, %484 : vector<16x16xf32>
    %486 = arith.addf %481, %485 : vector<16x16xf32>
    %487 = vector.extract_strided_slice %134 {offsets = [5, 0], sizes = [16, 16], strides = [1, 1]} : vector<22x22xf32> to vector<16x16xf32>
    %c35 = arith.constant 35 : index
    %488 = memref.load %arg3[%c35] : memref<98xf32, #tpu.memory_space<smem>>
    %489 = vector.broadcast %488 : f32 to vector<16x16xf32>
    %490 = arith.mulf %487, %489 : vector<16x16xf32>
    %491 = arith.addf %486, %490 : vector<16x16xf32>
    %492 = vector.extract_strided_slice %135 {offsets = [5, 0], sizes = [16, 16], strides = [1, 1]} : vector<22x22xf32> to vector<16x16xf32>
    %c84 = arith.constant 84 : index
    %493 = memref.load %arg3[%c84] : memref<98xf32, #tpu.memory_space<smem>>
    %494 = vector.broadcast %493 : f32 to vector<16x16xf32>
    %495 = arith.mulf %492, %494 : vector<16x16xf32>
    %496 = arith.addf %491, %495 : vector<16x16xf32>
    %497 = vector.extract_strided_slice %134 {offsets = [5, 1], sizes = [16, 16], strides = [1, 1]} : vector<22x22xf32> to vector<16x16xf32>
    %c36 = arith.constant 36 : index
    %498 = memref.load %arg3[%c36] : memref<98xf32, #tpu.memory_space<smem>>
    %499 = vector.broadcast %498 : f32 to vector<16x16xf32>
    %500 = arith.mulf %497, %499 : vector<16x16xf32>
    %501 = arith.addf %496, %500 : vector<16x16xf32>
    %502 = vector.extract_strided_slice %135 {offsets = [5, 1], sizes = [16, 16], strides = [1, 1]} : vector<22x22xf32> to vector<16x16xf32>
    %c85 = arith.constant 85 : index
    %503 = memref.load %arg3[%c85] : memref<98xf32, #tpu.memory_space<smem>>
    %504 = vector.broadcast %503 : f32 to vector<16x16xf32>
    %505 = arith.mulf %502, %504 : vector<16x16xf32>
    %506 = arith.addf %501, %505 : vector<16x16xf32>
    %507 = vector.extract_strided_slice %134 {offsets = [5, 2], sizes = [16, 16], strides = [1, 1]} : vector<22x22xf32> to vector<16x16xf32>
    %c37 = arith.constant 37 : index
    %508 = memref.load %arg3[%c37] : memref<98xf32, #tpu.memory_space<smem>>
    %509 = vector.broadcast %508 : f32 to vector<16x16xf32>
    %510 = arith.mulf %507, %509 : vector<16x16xf32>
    %511 = arith.addf %506, %510 : vector<16x16xf32>
    %512 = vector.extract_strided_slice %135 {offsets = [5, 2], sizes = [16, 16], strides = [1, 1]} : vector<22x22xf32> to vector<16x16xf32>
    %c86 = arith.constant 86 : index
    %513 = memref.load %arg3[%c86] : memref<98xf32, #tpu.memory_space<smem>>
    %514 = vector.broadcast %513 : f32 to vector<16x16xf32>
    %515 = arith.mulf %512, %514 : vector<16x16xf32>
    %516 = arith.addf %511, %515 : vector<16x16xf32>
    %517 = vector.extract_strided_slice %134 {offsets = [5, 3], sizes = [16, 16], strides = [1, 1]} : vector<22x22xf32> to vector<16x16xf32>
    %c38 = arith.constant 38 : index
    %518 = memref.load %arg3[%c38] : memref<98xf32, #tpu.memory_space<smem>>
    %519 = vector.broadcast %518 : f32 to vector<16x16xf32>
    %520 = arith.mulf %517, %519 : vector<16x16xf32>
    %521 = arith.addf %516, %520 : vector<16x16xf32>
    %522 = vector.extract_strided_slice %135 {offsets = [5, 3], sizes = [16, 16], strides = [1, 1]} : vector<22x22xf32> to vector<16x16xf32>
    %c87 = arith.constant 87 : index
    %523 = memref.load %arg3[%c87] : memref<98xf32, #tpu.memory_space<smem>>
    %524 = vector.broadcast %523 : f32 to vector<16x16xf32>
    %525 = arith.mulf %522, %524 : vector<16x16xf32>
    %526 = arith.addf %521, %525 : vector<16x16xf32>
    %527 = vector.extract_strided_slice %134 {offsets = [5, 4], sizes = [16, 16], strides = [1, 1]} : vector<22x22xf32> to vector<16x16xf32>
    %c39 = arith.constant 39 : index
    %528 = memref.load %arg3[%c39] : memref<98xf32, #tpu.memory_space<smem>>
    %529 = vector.broadcast %528 : f32 to vector<16x16xf32>
    %530 = arith.mulf %527, %529 : vector<16x16xf32>
    %531 = arith.addf %526, %530 : vector<16x16xf32>
    %532 = vector.extract_strided_slice %135 {offsets = [5, 4], sizes = [16, 16], strides = [1, 1]} : vector<22x22xf32> to vector<16x16xf32>
    %c88 = arith.constant 88 : index
    %533 = memref.load %arg3[%c88] : memref<98xf32, #tpu.memory_space<smem>>
    %534 = vector.broadcast %533 : f32 to vector<16x16xf32>
    %535 = arith.mulf %532, %534 : vector<16x16xf32>
    %536 = arith.addf %531, %535 : vector<16x16xf32>
    %537 = vector.extract_strided_slice %134 {offsets = [5, 5], sizes = [16, 16], strides = [1, 1]} : vector<22x22xf32> to vector<16x16xf32>
    %c40 = arith.constant 40 : index
    %538 = memref.load %arg3[%c40] : memref<98xf32, #tpu.memory_space<smem>>
    %539 = vector.broadcast %538 : f32 to vector<16x16xf32>
    %540 = arith.mulf %537, %539 : vector<16x16xf32>
    %541 = arith.addf %536, %540 : vector<16x16xf32>
    %542 = vector.extract_strided_slice %135 {offsets = [5, 5], sizes = [16, 16], strides = [1, 1]} : vector<22x22xf32> to vector<16x16xf32>
    %c89 = arith.constant 89 : index
    %543 = memref.load %arg3[%c89] : memref<98xf32, #tpu.memory_space<smem>>
    %544 = vector.broadcast %543 : f32 to vector<16x16xf32>
    %545 = arith.mulf %542, %544 : vector<16x16xf32>
    %546 = arith.addf %541, %545 : vector<16x16xf32>
    %547 = vector.extract_strided_slice %134 {offsets = [5, 6], sizes = [16, 16], strides = [1, 1]} : vector<22x22xf32> to vector<16x16xf32>
    %c41 = arith.constant 41 : index
    %548 = memref.load %arg3[%c41] : memref<98xf32, #tpu.memory_space<smem>>
    %549 = vector.broadcast %548 : f32 to vector<16x16xf32>
    %550 = arith.mulf %547, %549 : vector<16x16xf32>
    %551 = arith.addf %546, %550 : vector<16x16xf32>
    %552 = vector.extract_strided_slice %135 {offsets = [5, 6], sizes = [16, 16], strides = [1, 1]} : vector<22x22xf32> to vector<16x16xf32>
    %c90 = arith.constant 90 : index
    %553 = memref.load %arg3[%c90] : memref<98xf32, #tpu.memory_space<smem>>
    %554 = vector.broadcast %553 : f32 to vector<16x16xf32>
    %555 = arith.mulf %552, %554 : vector<16x16xf32>
    %556 = arith.addf %551, %555 : vector<16x16xf32>
    %557 = vector.extract_strided_slice %134 {offsets = [6, 0], sizes = [16, 16], strides = [1, 1]} : vector<22x22xf32> to vector<16x16xf32>
    %c42 = arith.constant 42 : index
    %558 = memref.load %arg3[%c42] : memref<98xf32, #tpu.memory_space<smem>>
    %559 = vector.broadcast %558 : f32 to vector<16x16xf32>
    %560 = arith.mulf %557, %559 : vector<16x16xf32>
    %561 = arith.addf %556, %560 : vector<16x16xf32>
    %562 = vector.extract_strided_slice %135 {offsets = [6, 0], sizes = [16, 16], strides = [1, 1]} : vector<22x22xf32> to vector<16x16xf32>
    %c91 = arith.constant 91 : index
    %563 = memref.load %arg3[%c91] : memref<98xf32, #tpu.memory_space<smem>>
    %564 = vector.broadcast %563 : f32 to vector<16x16xf32>
    %565 = arith.mulf %562, %564 : vector<16x16xf32>
    %566 = arith.addf %561, %565 : vector<16x16xf32>
    %567 = vector.extract_strided_slice %134 {offsets = [6, 1], sizes = [16, 16], strides = [1, 1]} : vector<22x22xf32> to vector<16x16xf32>
    %c43 = arith.constant 43 : index
    %568 = memref.load %arg3[%c43] : memref<98xf32, #tpu.memory_space<smem>>
    %569 = vector.broadcast %568 : f32 to vector<16x16xf32>
    %570 = arith.mulf %567, %569 : vector<16x16xf32>
    %571 = arith.addf %566, %570 : vector<16x16xf32>
    %572 = vector.extract_strided_slice %135 {offsets = [6, 1], sizes = [16, 16], strides = [1, 1]} : vector<22x22xf32> to vector<16x16xf32>
    %c92 = arith.constant 92 : index
    %573 = memref.load %arg3[%c92] : memref<98xf32, #tpu.memory_space<smem>>
    %574 = vector.broadcast %573 : f32 to vector<16x16xf32>
    %575 = arith.mulf %572, %574 : vector<16x16xf32>
    %576 = arith.addf %571, %575 : vector<16x16xf32>
    %577 = vector.extract_strided_slice %134 {offsets = [6, 2], sizes = [16, 16], strides = [1, 1]} : vector<22x22xf32> to vector<16x16xf32>
    %c44 = arith.constant 44 : index
    %578 = memref.load %arg3[%c44] : memref<98xf32, #tpu.memory_space<smem>>
    %579 = vector.broadcast %578 : f32 to vector<16x16xf32>
    %580 = arith.mulf %577, %579 : vector<16x16xf32>
    %581 = arith.addf %576, %580 : vector<16x16xf32>
    %582 = vector.extract_strided_slice %135 {offsets = [6, 2], sizes = [16, 16], strides = [1, 1]} : vector<22x22xf32> to vector<16x16xf32>
    %c93 = arith.constant 93 : index
    %583 = memref.load %arg3[%c93] : memref<98xf32, #tpu.memory_space<smem>>
    %584 = vector.broadcast %583 : f32 to vector<16x16xf32>
    %585 = arith.mulf %582, %584 : vector<16x16xf32>
    %586 = arith.addf %581, %585 : vector<16x16xf32>
    %587 = vector.extract_strided_slice %134 {offsets = [6, 3], sizes = [16, 16], strides = [1, 1]} : vector<22x22xf32> to vector<16x16xf32>
    %c45 = arith.constant 45 : index
    %588 = memref.load %arg3[%c45] : memref<98xf32, #tpu.memory_space<smem>>
    %589 = vector.broadcast %588 : f32 to vector<16x16xf32>
    %590 = arith.mulf %587, %589 : vector<16x16xf32>
    %591 = arith.addf %586, %590 : vector<16x16xf32>
    %592 = vector.extract_strided_slice %135 {offsets = [6, 3], sizes = [16, 16], strides = [1, 1]} : vector<22x22xf32> to vector<16x16xf32>
    %c94 = arith.constant 94 : index
    %593 = memref.load %arg3[%c94] : memref<98xf32, #tpu.memory_space<smem>>
    %594 = vector.broadcast %593 : f32 to vector<16x16xf32>
    %595 = arith.mulf %592, %594 : vector<16x16xf32>
    %596 = arith.addf %591, %595 : vector<16x16xf32>
    %597 = vector.extract_strided_slice %134 {offsets = [6, 4], sizes = [16, 16], strides = [1, 1]} : vector<22x22xf32> to vector<16x16xf32>
    %c46 = arith.constant 46 : index
    %598 = memref.load %arg3[%c46] : memref<98xf32, #tpu.memory_space<smem>>
    %599 = vector.broadcast %598 : f32 to vector<16x16xf32>
    %600 = arith.mulf %597, %599 : vector<16x16xf32>
    %601 = arith.addf %596, %600 : vector<16x16xf32>
    %602 = vector.extract_strided_slice %135 {offsets = [6, 4], sizes = [16, 16], strides = [1, 1]} : vector<22x22xf32> to vector<16x16xf32>
    %c95 = arith.constant 95 : index
    %603 = memref.load %arg3[%c95] : memref<98xf32, #tpu.memory_space<smem>>
    %604 = vector.broadcast %603 : f32 to vector<16x16xf32>
    %605 = arith.mulf %602, %604 : vector<16x16xf32>
    %606 = arith.addf %601, %605 : vector<16x16xf32>
    %607 = vector.extract_strided_slice %134 {offsets = [6, 5], sizes = [16, 16], strides = [1, 1]} : vector<22x22xf32> to vector<16x16xf32>
    %c47 = arith.constant 47 : index
    %608 = memref.load %arg3[%c47] : memref<98xf32, #tpu.memory_space<smem>>
    %609 = vector.broadcast %608 : f32 to vector<16x16xf32>
    %610 = arith.mulf %607, %609 : vector<16x16xf32>
    %611 = arith.addf %606, %610 : vector<16x16xf32>
    %612 = vector.extract_strided_slice %135 {offsets = [6, 5], sizes = [16, 16], strides = [1, 1]} : vector<22x22xf32> to vector<16x16xf32>
    %c96 = arith.constant 96 : index
    %613 = memref.load %arg3[%c96] : memref<98xf32, #tpu.memory_space<smem>>
    %614 = vector.broadcast %613 : f32 to vector<16x16xf32>
    %615 = arith.mulf %612, %614 : vector<16x16xf32>
    %616 = arith.addf %611, %615 : vector<16x16xf32>
    %617 = vector.extract_strided_slice %134 {offsets = [6, 6], sizes = [16, 16], strides = [1, 1]} : vector<22x22xf32> to vector<16x16xf32>
    %c48 = arith.constant 48 : index
    %618 = memref.load %arg3[%c48] : memref<98xf32, #tpu.memory_space<smem>>
    %619 = vector.broadcast %618 : f32 to vector<16x16xf32>
    %620 = arith.mulf %617, %619 : vector<16x16xf32>
    %621 = arith.addf %616, %620 : vector<16x16xf32>
    %622 = vector.extract_strided_slice %135 {offsets = [6, 6], sizes = [16, 16], strides = [1, 1]} : vector<22x22xf32> to vector<16x16xf32>
    %c97 = arith.constant 97 : index
    %623 = memref.load %arg3[%c97] : memref<98xf32, #tpu.memory_space<smem>>
    %624 = vector.broadcast %623 : f32 to vector<16x16xf32>
    %625 = arith.mulf %622, %624 : vector<16x16xf32>
    %626 = arith.addf %621, %625 : vector<16x16xf32>
    %627 = arith.negf %626 : vector<16x16xf32>
    %628 = math.exp %627 : vector<16x16xf32>
    %cst_143 = arith.constant 1.000000e+00 : f32
    %629 = vector.broadcast %cst_143 : f32 to vector<16x16xf32>
    %630 = arith.addf %629, %628 : vector<16x16xf32>
    %631 = arith.divf %629, %630 : vector<16x16xf32>
    %c0_144 = arith.constant 0 : index
    %c0_145 = arith.constant 0 : index
    %c0_146 = arith.constant 0 : index
    %c0_147 = arith.constant 0 : index
    %632 = vector.load %arg2[%c0_144, %c0_145, %c0_146, %c0_147] : memref<1x3x16x16xf32, #tpu.memory_space<vmem>>, vector<1x3x16x16xf32>
    %633 = vector.shape_cast %632 : vector<1x3x16x16xf32> to vector<3x16x16xf32>
    %634 = vector.shape_cast %631 : vector<16x16xf32> to vector<1x16x16xf32>
    %635 = vector.broadcast %634 : vector<1x16x16xf32> to vector<3x16x16xf32>
    %636 = arith.mulf %633, %635 : vector<3x16x16xf32>
    %c0_148 = arith.constant 0 : index
    %c0_149 = arith.constant 0 : index
    %c0_150 = arith.constant 0 : index
    %c0_151 = arith.constant 0 : index
    %637 = vector.load %arg4[%c0_148, %c0_149, %c0_150, %c0_151] : memref<1x3x16x16xf32, #tpu.memory_space<vmem>>, vector<1x3x16x16xf32>
    %638 = vector.shape_cast %637 : vector<1x3x16x16xf32> to vector<3x16x16xf32>
    %639 = vector.shape_cast %636 : vector<3x16x16xf32> to vector<1x3x16x16xf32>
    tpu.vector_store %arg4[%c0_148, %c0_149, %c0_150, %c0_151], %639 {strides = array<i32>} : memref<1x3x16x16xf32, #tpu.memory_space<vmem>>, vector<1x3x16x16xf32>,
    return
  }
  func.func @transform_0(%arg0: i32) -> (i32, i32, i32, i32) {
    %c0_i32 = arith.constant 0 : i32
    %c0_i32_0 = arith.constant 0 : i32
    %c0_i32_1 = arith.constant 0 : i32
    %c0_i32_2 = arith.constant 0 : i32
    return %arg0, %c0_i32, %c0_i32_0, %c0_i32_1 : i32, i32, i32, i32
  }
  func.func @transform_1(%arg0: i32) -> (i32, i32, i32, i32) {
    %c0_i32 = arith.constant 0 : i32
    %c0_i32_0 = arith.constant 0 : i32
    %c0_i32_1 = arith.constant 0 : i32
    %c0_i32_2 = arith.constant 0 : i32
    return %arg0, %c0_i32, %c0_i32_0, %c0_i32_1 : i32, i32, i32, i32
  }
  func.func @transform_2(%arg0: i32) -> i32 {
    %c0_i32 = arith.constant 0 : i32
    %c0_i32_0 = arith.constant 0 : i32
    return %c0_i32 : i32
  }
  func.func @transform_3(%arg0: i32) -> (i32, i32, i32, i32) {
    %c0_i32 = arith.constant 0 : i32
    %c0_i32_0 = arith.constant 0 : i32
    %c0_i32_1 = arith.constant 0 : i32
    %c0_i32_2 = arith.constant 0 : i32
    return %arg0, %c0_i32, %c0_i32_0, %c0_i32_1 : i32, i32, i32, i32
  }
}

</mosaic_0001>

<bundles_post_ra>
// kernel: tpu_custom_call.1
= control target key start
LH: loop header
LB: loop body
LE: loop exit
PB: predicated region body
PF: predicated region fallthrough
CT: control target
= control target key end

     0   :  { %8 = vsyncpa [#allocation6], 0  ;;  %s4530_s0 = inlined_call_operand.vmem [shape: f32[2,32,16,16], index: 0, kind: input, shape index: {}]   ;;  %s4531_s1 = inlined_call_operand.vmem [shape: f32[2,3,16,16], index: 1, kind: input, shape index: {}]   ;;  %s4532_s2 = inlined_call_operand.vmem [shape: f32[98], index: 2, kind: input, shape index: {}]   ;;  %s4533_s3 = inlined_call_operand.hbm [shape: f32[2,3,16,16], index: 3, kind: output, shape index: {}]  }
   0x1   :  { %9 = vsyncpa [#allocation5], 0 }
   0x2   :  { %11 = vsyncpa [#allocation5 + $0x1], 0  ;;  %s2864_s12 = smov 0   ;;  %s2866_s13 = smov 0  }
   0x3   :  { %s2868_s14 = smov 0   ;;  %s2870_s15 = smov 0  }
   0x4 LB: > { %s2885_s16 = sadd.s32 4294967295, %s2830_s15   ;;  %s2492_s17 = sadd.s32 4294967294, %s2830_s15   ;;  %s2830_s15 = sphi %s2870_s15, %s4576_s15   ;;  %s2826_s14 = sphi %s2868_s14, %s4575_s14   ;;  %s2822_s13 = sphi %s2866_s13, %s4574_s13   ;;  %s2818_s12 = sphi %s2864_s12, %s4573_s12  }
   0x5   : > { %s2889_s18 = sadd.s32 1, %s2830_s15   ;;  %s97_s19 = sadd.s32 1, %s2826_s14 }
   0x6   : > { %s94_s20 = ssub.s32 %s2830_s15, %s2889_s18  ;;  %p107_p0 = scmp.ne.s32.totalorder %s2826_s14, %s2822_s13 }
   0x7   : > { %p95_p1 = scmp.eq.s32.totalorder %s94_s20, 0  ;;  %p108_p2 = scmp.eq.s32.totalorder %s2885_s16, 1 }
   0x8   : > { %p113_p3 = scmp.ne.s32.totalorder %s2822_s13, %s2818_s12  ;;  %p114_p4 = scmp.eq.s32.totalorder %s2492_s17, 1 }
   0x9   : > { %s2900_s21 = scalar_select %p95_p1, %s2826_s14, %s97_s19  }
   0xa   : > { %p2902_p5 = por %p108_p2, %p107_p0  ;;  %p2906_p6 = por %p114_p4, %p113_p3 }
   0xb   : > { %p2493_p7 = scmp.ge.s32.totalorder %s2830_s15, 1  ;;  %p121_p8 = scmp.lt.s32.totalorder %s2830_s15, 3 }
   0xc   : > { %p2683_p9 = scmp.eq.s32.totalorder %s2885_s16, 0  ;;  %s134_s27 = sshll.u32 %s4532_s2, 4  ;;  %s135_s27 = int_to_ptr.vmem [resolvable:$true] %s134_s27 }
   0xd   : > { %p2913_p10 = pnand %p2493_p7, %p121_p8  ;;  %s2749_s28 = scalar_lea.vmem %s135_s27, 16 }
   0xe   : > { %p2750_p13 = scmp.ne.s32.totalorder %s135_s27, %s2749_s28  ;;  %p2757_p3 = scmp.lt.s32.totalorder %s135_s27, %s135_s27 }
   0xf   : > { %p2675_p11 = pneg %p2913_p10  ;;  %p2758_p4 = scmp.lt.s32.totalorder %s2749_s28, %s2749_s28 }
  0x11   : > { %p2676_p12 = pnand %p2683_p9, %p2675_p11  ;;  %p2759_p7 = por %p2758_p4, %p2757_p3 }
  0x13   : > { %p2751_p0 = pneg %p2676_p12 }
  0x15   : > { %p2752_p1 = pnand %p2751_p0, %p2750_p13 }
  0x17   : > { %p2753_p2 = pneg %p2752_p1 }
  0x19   : > { %p2760_p8 = pnand %p2759_p7, %p2753_p2 }
  0x1b   : > { %2763 = shalt.err (!%p2760_p8)
}
  0x1c   : > { %s2832_s29 = smov [#allocation4]   ;;  %163 = sbr.rel (%p2913_p10) target bundleno = 735 (0x2df), region = 32 }
  0x1d   : > { %2678 = dma.vmem_to_smem (!%p2676_p12), %s135_s27, 16, %s2832_s29, [#allocation6]  }
  0x23   : > { %2809 = dma.done.wait (%p2683_p9), [#allocation6], 16  }
  0x24   : > { %2811 = vsyncadd (%p2683_p9), [#allocation6], 4294967280 }
  0x25   : > { %169 = sfence }
  0x26   : > { %p193_p11 = scmp.lt.s32.totalorder %s2885_s16, 1  ;;  %vm424_vm0 = vcmask 179200   ;;  %v2833_v0 = vmov 0.0   ;;  %vm427_vm1 = vcmask 177152   ;;  %s2834_s8 = smov 3   ;;  %vm440_vm2 = vcmask 154648  }
  0x27   : > { %429 = vst.msk [vmem:[#allocation3] sm:$0xff] %vm424_vm0, %v2833_v0  ;;  %430 = vst.msk [vmem:[#allocation3 + $0x8] sm:$0xff] %vm424_vm0, %v2833_v0  ;;  %s2565_s9 = sld [smem:[#allocation4 + $0x32]]  ;;  %s3011_s10 = sld [smem:[#allocation4 + $0x33]]  ;;  %vm647_vm3 = vcmask 1046528   ;;  %vm934_vm4 = vcmask 1045504  }
  0x28   : > { %425 = vst.msk [vmem:[#allocation2] sm:$0xff] %vm424_vm0, %v2833_v0  ;;  %426 = vst.msk [vmem:[#allocation2 + $0x8] sm:$0xff] %vm424_vm0, %v2833_v0  ;;  %s2936_s30 = scalar_select %p193_p11, %s2885_s16, 1  ;;  %vm1221_vm5 = vcmask 1044480   ;;  %vm1508_vm6 = vcmask 1043456   ;;  %vm1795_vm7 = vcmask 1042432  }
  0x29   : > { %431 = vst.msk [vmem:[#allocation3 + $0x10] sm:$0x3f] %vm427_vm1, %v2833_v0  ;;  %428 = vst.msk [vmem:[#allocation2 + $0x10] sm:$0x3f] %vm427_vm1, %v2833_v0  ;;  %s3014_s11 = sld [smem:[#allocation4 + $0x34]]  ;;  %s3020_s17 = sld [smem:[#allocation4 + $0x35]] }
  0x2a   : > { %s2665_s4 = sshll.u32 %s2936_s30, 9  ;;  %s2835_s19 = smov 127   ;;  %vm2082_vm8 = vcmask 1041408   ;;  %vm2385_vm9 = vcmask 130048  }
  0x2b   : > { %s2942_s7 = scalar_lea.vmem %s4530_s0, %s2665_s4  ;;  %s3027_s20 = sld [smem:[#allocation4 + $0x36]] }
  0x2c   : > { %v203_v1 = vld [vmem:[%s2942_s7] sm:$0xff]  ;;  %v2501_v2 = vld [vmem:[%s2942_s7 + $0x10] sm:$0xff]  ;;  %v204_v19 = vld [vmem:[%s2942_s7 + $0x8] sm:$0xff]  ;;  %s2836_s24 = smov 126   ;;  %s3032_s25 = sld [smem:[#allocation4 + $0x37]] }
  0x2d   : > { %v2503_v3 = vld [vmem:[%s2942_s7 + $0x20] sm:$0xff]  ;;  %v210_v4 = vmax.f32 %v203_v1, %v2501_v2  ;;  %v208_v5 = vadd.f32 %v2501_v2, %v203_v1  ;;  %v2505_v6 = vld [vmem:[%s2942_s7 + $0x30] sm:$0xff]  ;;  %v2502_v22 = vld [vmem:[%s2942_s7 + $0x18] sm:$0xff]  ;;  %s2837_s26 = smov 125   ;;  %s3038_s27 = sld [smem:[#allocation4 + $0x1]] }
  0x2e   : > { %v2507_v9 = vld [vmem:[%s2942_s7 + $0x40] sm:$0xff]  ;;  %v2509_v12 = vld [vmem:[%s2942_s7 + $0x50] sm:$0xff]  ;;  %v2504_v23 = vld [vmem:[%s2942_s7 + $0x28] sm:$0xff]  ;;  %v211_v25 = vmax.f32 %v204_v19, %v2502_v22  ;;  %v209_v26 = vadd.f32 %v2502_v22, %v204_v19  ;;  %s2838_s28 = smov 124   ;;  %s3048_s29 = sld [smem:[#allocation4 + $0x2]] }
  0x2f   : > { %v217_v7 = vmax.f32 %v210_v4, %v2503_v3  ;;  %v215_v8 = vadd.f32 %v2503_v3, %v208_v5  ;;  %v2511_v15 = vld [vmem:[%s2942_s7 + $0x60] sm:$0xff]  ;;  %v2513_v18 = vld [vmem:[%s2942_s7 + $0x70] sm:$0xff]  ;;  %v2506_v29 = vld [vmem:[%s2942_s7 + $0x38] sm:$0xff]  ;;  %s2839_s4 = smov 123   ;;  %s3057_s5 = sld [smem:[#allocation4 + $0x3]] }
  0x30   : > { %v2515_v24 = vld [vmem:[%s2942_s7 + $0x80] sm:$0xff]  ;;  %v2517_v30 = vld [vmem:[%s2942_s7 + $0x90] sm:$0xff]  ;;  %v218_v31 = vmax.f32 %v211_v25, %v2504_v23  ;;  %v216_v32 = vadd.f32 %v2504_v23, %v209_v26  ;;  %v2508_v35 = vld [vmem:[%s2942_s7 + $0x48] sm:$0xff]  ;;  %s2840_s6 = smov 122  }
  0x31   : > { %v224_v10 = vmax.f32 %v217_v7, %v2505_v6  ;;  %v222_v11 = vadd.f32 %v2505_v6, %v215_v8  ;;  %v2519_v36 = vld [vmem:[%s2942_s7 + $0xa0] sm:$0xff]  ;;  %v2510_v41 = vld [vmem:[%s2942_s7 + $0x58] sm:$0xff]  ;;  %v2521_v42 = vld [vmem:[%s2942_s7 + $0xb0] sm:$0xff] }
  0x32   : > { %v225_v37 = vmax.f32 %v218_v31, %v2506_v29  ;;  %v223_v38 = vadd.f32 %v2506_v29, %v216_v32  ;;  %v2512_v47 = vld [vmem:[%s2942_s7 + $0x68] sm:$0xff]  ;;  %v2523_v48 = vld [vmem:[%s2942_s7 + $0xc0] sm:$0xff]  ;;  %v2514_v53 = vld [vmem:[%s2942_s7 + $0x78] sm:$0xff] }
  0x33   : > { %v231_v13 = vmax.f32 %v224_v10, %v2507_v9  ;;  %v229_v14 = vadd.f32 %v2507_v9, %v222_v11  ;;  %v2525_v54 = vld [vmem:[%s2942_s7 + $0xd0] sm:$0xff]  ;;  %v2516_v59 = vld [vmem:[%s2942_s7 + $0x88] sm:$0xff]  ;;  %v2527_v60 = vld [vmem:[%s2942_s7 + $0xe0] sm:$0xff] }
  0x34   : > { %v232_v43 = vmax.f32 %v225_v37, %v2508_v35  ;;  %v230_v44 = vadd.f32 %v2508_v35, %v223_v38  ;;  %v2518_v2 = vld [vmem:[%s2942_s7 + $0x98] sm:$0xff]  ;;  %v2529_v3 = vld [vmem:[%s2942_s7 + $0xf0] sm:$0xff]  ;;  %v2520_v8 = vld [vmem:[%s2942_s7 + $0xa8] sm:$0xff] }
  0x35   : > { %v238_v16 = vmax.f32 %v231_v13, %v2509_v12  ;;  %v236_v17 = vadd.f32 %v2509_v12, %v229_v14  ;;  %v2531_v9 = vld [vmem:[%s2942_s7 + $0x100] sm:$0xff]  ;;  %v2522_v14 = vld [vmem:[%s2942_s7 + $0xb8] sm:$0xff]  ;;  %v2528_v32 = vld [vmem:[%s2942_s7 + $0xe8] sm:$0xff] }
  0x36   : > { %v239_v49 = vmax.f32 %v232_v43, %v2510_v41  ;;  %v237_v50 = vadd.f32 %v2510_v41, %v230_v44  ;;  %v2526_v26 = vld [vmem:[%s2942_s7 + $0xd8] sm:$0xff]  ;;  %v2532_v44 = vld [vmem:[%s2942_s7 + $0x108] sm:$0xff] }
  0x37   : > { %v245_v20 = vmax.f32 %v238_v16, %v2511_v15  ;;  %v243_v21 = vadd.f32 %v2511_v15, %v236_v17  ;;  %v2533_v15 = vld [vmem:[%s2942_s7 + $0x110] sm:$0xff]  ;;  %v2530_v38 = vld [vmem:[%s2942_s7 + $0xf8] sm:$0xff] }
  0x38   : > { %v246_v55 = vmax.f32 %v239_v49, %v2512_v47  ;;  %v244_v56 = vadd.f32 %v2512_v47, %v237_v50  ;;  %v2534_v50 = vld [vmem:[%s2942_s7 + $0x118] sm:$0xff] }
  0x39   : > { %v252_v27 = vmax.f32 %v245_v20, %v2513_v18  ;;  %v250_v28 = vadd.f32 %v2513_v18, %v243_v21  ;;  %v2524_v20 = vld [vmem:[%s2942_s7 + $0xc8] sm:$0xff]  ;;  %v2535_v21 = vld [vmem:[%s2942_s7 + $0x120] sm:$0xff] }
  0x3a   : > { %v253_v61 = vmax.f32 %v246_v55, %v2514_v53  ;;  %v251_v62 = vadd.f32 %v2514_v53, %v244_v56  ;;  %v2536_v56 = vld [vmem:[%s2942_s7 + $0x128] sm:$0xff] }
  0x3b   : > { %v259_v33 = vmax.f32 %v252_v27, %v2515_v24  ;;  %v257_v34 = vadd.f32 %v2515_v24, %v250_v28  ;;  %v2537_v27 = vld [vmem:[%s2942_s7 + $0x130] sm:$0xff] }
  0x3c   : > { %v260_v4 = vmax.f32 %v253_v61, %v2516_v59  ;;  %v258_v5 = vadd.f32 %v2516_v59, %v251_v62  ;;  %v2538_v62 = vld [vmem:[%s2942_s7 + $0x138] sm:$0xff] }
  0x3d   : > { %v266_v39 = vmax.f32 %v259_v33, %v2517_v30  ;;  %v264_v40 = vadd.f32 %v2517_v30, %v257_v34  ;;  %v2539_v33 = vld [vmem:[%s2942_s7 + $0x140] sm:$0xff] }
  0x3e   : > { %v267_v10 = vmax.f32 %v260_v4, %v2518_v2  ;;  %v265_v11 = vadd.f32 %v2518_v2, %v258_v5  ;;  %v2540_v5 = vld [vmem:[%s2942_s7 + $0x148] sm:$0xff] }
  0x3f   : > { %v273_v45 = vmax.f32 %v266_v39, %v2519_v36  ;;  %v271_v46 = vadd.f32 %v2519_v36, %v264_v40  ;;  %v2541_v39 = vld [vmem:[%s2942_s7 + $0x150] sm:$0xff] }
  0x40   : > { %v274_v16 = vmax.f32 %v267_v10, %v2520_v8  ;;  %v272_v17 = vadd.f32 %v2520_v8, %v265_v11  ;;  %v2542_v11 = vld [vmem:[%s2942_s7 + $0x158] sm:$0xff] }
  0x41   : > { %v280_v51 = vmax.f32 %v273_v45, %v2521_v42  ;;  %v278_v52 = vadd.f32 %v2521_v42, %v271_v46  ;;  %v2543_v45 = vld [vmem:[%s2942_s7 + $0x160] sm:$0xff] }
  0x42   : > { %v281_v22 = vmax.f32 %v274_v16, %v2522_v14  ;;  %v279_v23 = vadd.f32 %v2522_v14, %v272_v17  ;;  %v2544_v17 = vld [vmem:[%s2942_s7 + $0x168] sm:$0xff] }
  0x43   : > { %v287_v57 = vmax.f32 %v280_v51, %v2523_v48  ;;  %v285_v58 = vadd.f32 %v2523_v48, %v278_v52  ;;  %v2545_v51 = vld [vmem:[%s2942_s7 + $0x170] sm:$0xff] }
  0x44   : > { %v288_v28 = vmax.f32 %v281_v22, %v2524_v20  ;;  %v286_v29 = vadd.f32 %v2524_v20, %v279_v23  ;;  %v2546_v23 = vld [vmem:[%s2942_s7 + $0x178] sm:$0xff] }
  0x45   : > { %v294_v63 = vmax.f32 %v287_v57, %v2525_v54  ;;  %v292_v1 = vadd.f32 %v2525_v54, %v285_v58  ;;  %v2547_v57 = vld [vmem:[%s2942_s7 + $0x180] sm:$0xff] }
  0x46   : > { %v295_v34 = vmax.f32 %v288_v28, %v2526_v26  ;;  %v293_v35 = vadd.f32 %v2526_v26, %v286_v29  ;;  %v2548_v29 = vld [vmem:[%s2942_s7 + $0x188] sm:$0xff] }
  0x47   : > { %v301_v6 = vmax.f32 %v294_v63, %v2527_v60  ;;  %v299_v7 = vadd.f32 %v2527_v60, %v292_v1  ;;  %v2549_v63 = vld [vmem:[%s2942_s7 + $0x190] sm:$0xff] }
  0x48   : > { %v302_v40 = vmax.f32 %v295_v34, %v2528_v32  ;;  %v300_v41 = vadd.f32 %v2528_v32, %v293_v35  ;;  %v2550_v35 = vld [vmem:[%s2942_s7 + $0x198] sm:$0xff] }
  0x49   : > { %v308_v12 = vmax.f32 %v301_v6, %v2529_v3  ;;  %v306_v13 = vadd.f32 %v2529_v3, %v299_v7  ;;  %v2551_v6 = vld [vmem:[%s2942_s7 + $0x1a0] sm:$0xff] }
  0x4a   : > { %v309_v46 = vmax.f32 %v302_v40, %v2530_v38  ;;  %v307_v47 = vadd.f32 %v2530_v38, %v300_v41  ;;  %v2552_v41 = vld [vmem:[%s2942_s7 + $0x1a8] sm:$0xff] }
  0x4b   : > { %v315_v18 = vmax.f32 %v308_v12, %v2531_v9  ;;  %v313_v19 = vadd.f32 %v2531_v9, %v306_v13  ;;  %v2553_v12 = vld [vmem:[%s2942_s7 + $0x1b0] sm:$0xff] }
  0x4c   : > { %v316_v52 = vmax.f32 %v309_v46, %v2532_v44  ;;  %v314_v53 = vadd.f32 %v2532_v44, %v307_v47  ;;  %v2554_v46 = vld [vmem:[%s2942_s7 + $0x1b8] sm:$0xff] }
  0x4d   : > { %v322_v24 = vmax.f32 %v315_v18, %v2533_v15  ;;  %v320_v25 = vadd.f32 %v2533_v15, %v313_v19  ;;  %v2555_v18 = vld [vmem:[%s2942_s7 + $0x1c0] sm:$0xff] }
  0x4e   : > { %v323_v58 = vmax.f32 %v316_v52, %v2534_v50  ;;  %v321_v59 = vadd.f32 %v2534_v50, %v314_v53  ;;  %v2556_v50 = vld [vmem:[%s2942_s7 + $0x1c8] sm:$0xff]  ;;  %v2558_v53 = vld [vmem:[%s2942_s7 + $0x1d8] sm:$0xff] }
  0x4f   : > { %v329_v30 = vmax.f32 %v322_v24, %v2535_v21  ;;  %v327_v31 = vadd.f32 %v2535_v21, %v320_v25  ;;  %v2557_v24 = vld [vmem:[%s2942_s7 + $0x1d0] sm:$0xff] }
  0x50   : > { %v330_v1 = vmax.f32 %v323_v58, %v2536_v56  ;;  %v328_v2 = vadd.f32 %v2536_v56, %v321_v59  ;;  %v2560_v56 = vld [vmem:[%s2942_s7 + $0x1e8] sm:$0xff]  ;;  %v2562_v58 = vld [vmem:[%s2942_s7 + $0x1f8] sm:$0xff] }
  0x51   : > { %v336_v36 = vmax.f32 %v329_v30, %v2537_v27  ;;  %v334_v37 = vadd.f32 %v2537_v27, %v327_v31  ;;  %v2559_v30 = vld [vmem:[%s2942_s7 + $0x1e0] sm:$0xff] }
  0x52   : > { %v337_v7 = vmax.f32 %v330_v1, %v2538_v62  ;;  %v335_v8 = vadd.f32 %v2538_v62, %v328_v2 }
  0x53   : > { %v343_v42 = vmax.f32 %v336_v36, %v2539_v33  ;;  %v341_v43 = vadd.f32 %v2539_v33, %v334_v37  ;;  %v2561_v36 = vld [vmem:[%s2942_s7 + $0x1f0] sm:$0xff]  ;;  %s3064_s7 = sld [smem:[#allocation4 + $0x4]] }
  0x54   : > { %v344_v13 = vmax.f32 %v337_v7, %v2540_v5  ;;  %v342_v14 = vadd.f32 %v2540_v5, %v335_v8 }
  0x55   : > { %v350_v48 = vmax.f32 %v343_v42, %v2541_v39  ;;  %v348_v49 = vadd.f32 %v2541_v39, %v341_v43 }
  0x56   : > { %v351_v19 = vmax.f32 %v344_v13, %v2542_v11  ;;  %v349_v20 = vadd.f32 %v2542_v11, %v342_v14 }
  0x57   : > { %v357_v54 = vmax.f32 %v350_v48, %v2543_v45  ;;  %v355_v55 = vadd.f32 %v2543_v45, %v348_v49 }
  0x58   : > { %v358_v25 = vmax.f32 %v351_v19, %v2544_v17  ;;  %v356_v26 = vadd.f32 %v2544_v17, %v349_v20  ;;  %v626_v19 = vstv %s3032_s25  ;;  %s2587_s25 = sld [smem:[#allocation4 + $0x3d]] }
  0x59   : > { %v364_v60 = vmax.f32 %v357_v54, %v2545_v51  ;;  %v362_v61 = vadd.f32 %v2545_v51, %v355_v55 }
  0x5a   : > { %v365_v31 = vmax.f32 %v358_v25, %v2546_v23  ;;  %v363_v32 = vadd.f32 %v2546_v23, %v356_v26  ;;  %v500_v26 = vstv %s3048_s29  ;;  %s2593_s29 = sld [smem:[#allocation4 + $0x40]] }
  0x5b   : > { %v371_v3 = vmax.f32 %v364_v60, %v2547_v57  ;;  %v369_v4 = vadd.f32 %v2547_v57, %v362_v61 }
  0x5c   : > { %v372_v37 = vmax.f32 %v365_v31, %v2548_v29  ;;  %v370_v38 = vadd.f32 %v2548_v29, %v363_v32  ;;  %v528_v29 = vstv %s3057_s5  ;;  %v556_v32 = vstv %s3064_s7  ;;  %s2595_s5 = sld [smem:[#allocation4 + $0x41]]  ;;  %s2597_s7 = sld [smem:[#allocation4 + $0x42]] }
  0x5d   : > { %v378_v9 = vmax.f32 %v371_v3, %v2549_v63  ;;  %v376_v10 = vadd.f32 %v2549_v63, %v369_v4  ;;  %v486_v3 = vstv %s2565_s9  ;;  %s2579_s9 = sld [smem:[#allocation4 + $0x39]] }
  0x5e   : > { %v379_v42 = vmax.f32 %v372_v37, %v2550_v35  ;;  %v377_v43 = vadd.f32 %v2550_v35, %v370_v38 }
  0x5f   : > { %v385_v15 = vmax.f32 %v378_v9, %v2551_v6  ;;  %v383_v16 = vadd.f32 %v2551_v6, %v376_v10  ;;  %v514_v6 = vstv %s3011_s10  ;;  %v542_v10 = vstv %s3014_s11  ;;  %s3078_s10 = sld [smem:[#allocation4 + $0x6]]  ;;  %s2581_s11 = sld [smem:[#allocation4 + $0x3a]] }
  0x60   : > { %v386_v47 = vmax.f32 %v379_v42, %v2552_v41  ;;  %v384_v48 = vadd.f32 %v2552_v41, %v377_v43 }
  0x61   : > { %v392_v21 = vmax.f32 %v385_v15, %v2553_v12  ;;  %v390_v22 = vadd.f32 %v2553_v12, %v383_v16  ;;  %v570_v12 = vstv %s3020_s17  ;;  %v598_v16 = vstv %s3027_s20  ;;  %s2583_s17 = sld [smem:[#allocation4 + $0x3b]]  ;;  %s2585_s20 = sld [smem:[#allocation4 + $0x3c]] }
  0x62   : > { %v393_v51 = vmax.f32 %v386_v47, %v2554_v46  ;;  %v391_v52 = vadd.f32 %v2554_v46, %v384_v48 }
  0x63   : > { %v399_v27 = vmax.f32 %v392_v21, %v2555_v18  ;;  %v397_v28 = vadd.f32 %v2555_v18, %v390_v22  ;;  %v472_v21 = vstv %s3038_s27  ;;  %s2589_s27 = sld [smem:[#allocation4 + $0x3e]] }
  0x64   : > { %v400_v54 = vmax.f32 %v393_v51, %v2556_v50  ;;  %v398_v55 = vadd.f32 %v2556_v50, %v391_v52 }
  0x65   : > { %v406_v33 = vmax.f32 %v399_v27, %v2557_v24  ;;  %v404_v34 = vadd.f32 %v2557_v24, %v397_v28 }
  0x66   : > { %v407_v57 = vmax.f32 %v400_v54, %v2558_v53  ;;  %v405_v0 = vadd.f32 %v2558_v53, %v398_v55 }
  0x67   : > { %v413_v39 = vmax.f32 %v406_v33, %v2559_v30  ;;  %v411_v40 = vadd.f32 %v2559_v30, %v404_v34  ;;  %v780_v51 = vstv %s2583_s17  ;;  %s2609_s17 = sld [smem:[#allocation4 + $0x48]] }
  0x68   : > { %v414_v59 = vmax.f32 %v407_v57, %v2560_v56  ;;  %v412_v60 = vadd.f32 %v2560_v56, %v405_v0 }
  0x69   : > { %v420_v44 = vmax.f32 %v413_v39, %v2561_v36  ;;  %v418_v45 = vadd.f32 %v2561_v36, %v411_v40  ;;  %v696_v39 = vstv %s2579_s9  ;;  %v612_v40 = vstv %s3078_s10  ;;  %s2601_s9 = sld [smem:[#allocation4 + $0x44]]  ;;  %s2603_s10 = sld [smem:[#allocation4 + $0x45]] }
  0x6a   : > { %v421_v61 = vmax.f32 %v414_v59, %v2562_v58  ;;  %v419_v62 = vadd.f32 %v2562_v58, %v412_v60  ;;  %v822_v59 = vstv %s2585_s20  ;;  %s2611_s20 = sld [smem:[#allocation4 + $0x49]] }
  0x6b   : > { %445 = vrot.lane.b32.xlu1 %v420_v44, %s2834_s8  ;;  %v422_v49 = vmul.f32 0.03125, %v418_v45  ;;  %v738_v45 = vstv %s2581_s11  ;;  %s2607_s11 = sld [smem:[#allocation4 + $0x47]] }
  0x6c   : > { %v423_v63 = vmul.f32 0.03125, %v419_v62 }
  0x6d   : > { %434 = vrot.lane.b32.xlu0 %v422_v49, %s2834_s8 }
  0x6f   : > { %447 = vrot.lane.b32.xlu1 %v421_v61, %s2834_s8 }
  0x71   : > { %436 = vrot.lane.b32.xlu0 %v423_v63, %s2834_s8  ;;  %s3071_s8 = sld [smem:[#allocation4 + $0x5]] }
  0x77   : > { %v584_v36 = vstv %s3071_s8  ;;  %s2599_s8 = sld [smem:[#allocation4 + $0x43]] }
  0xdd   : > { %v446_v1 = vpop.permute.xlu1 %445 }
  0xde   : > { %451 = vst.msk [vmem:[#allocation3 + $0x3] sm:$0xff] %vm440_vm2, %v446_v1 }
  0xdf   : > { %v435_v2 = vpop.permute.xlu0 %434 }
  0xe0   : > { %441 = vst.msk [vmem:[#allocation2 + $0x3] sm:$0xff] %vm440_vm2, %v435_v2 }
  0xe1   : > { %v448_v7 = vpop.permute.xlu1 %447 }
  0xe2   : > { %452 = vst.msk [vmem:[#allocation3 + $0xb] sm:$0xff] %vm440_vm2, %v448_v7 }
  0xe3   : > { %v437_v8 = vpop.permute.xlu0 %436 }
  0xe4   : > { %442 = vst.msk [vmem:[#allocation2 + $0xb] sm:$0xff] %vm440_vm2, %v437_v8 }
  0xe5   : > { %v3016_v4 = vld [vmem:[#allocation3] sm:$0xff] }
  0xe6   : > { %v487_v5 = vmul.f32 %v486_v3, %v3016_v4  ;;  %v515_v9 = vmul.f32 %v514_v6, %v3016_v4  ;;  %v543_v11 = vmul.f32 %v542_v10, %v3016_v4  ;;  %v571_v15 = vmul.f32 %v570_v12, %v3016_v4 }
  0xe7   : > { %v599_v18 = vmul.f32 %v598_v16, %v3016_v4  ;;  %v627_v22 = vmul.f32 %v626_v19, %v3016_v4  ;;  %v3054_v23 = vld [vmem:[#allocation2] sm:$0xff]  ;;  %v697_v43 = vmul.f32 %v696_v39, %v3016_v4  ;;  %v739_v50 = vmul.f32 %v738_v45, %v3016_v4 }
  0xe8   : > { %491 = vrot.lane.b32.xlu0 %v487_v5, %s2835_s19  ;;  %v473_v24 = vmul.f32 %v472_v21, %v3054_v23  ;;  %v501_v28 = vmul.f32 %v500_v26, %v3054_v23  ;;  %v529_v31 = vmul.f32 %v528_v29, %v3054_v23  ;;  %v557_v35 = vmul.f32 %v556_v32, %v3054_v23 }
  0xe9   : > { %v3034_v13 = vld [vmem:[#allocation3 + $0x8] sm:$0xff]  ;;  %v585_v38 = vmul.f32 %v584_v36, %v3054_v23  ;;  %v613_v44 = vmul.f32 %v612_v40, %v3054_v23  ;;  %v703_v49 = vrot.slane %v697_v43, 1  ;;  %v3102_v52 = vld [vmem:[#allocation3 + $0x10] sm:$0x3f]  ;;  %v745_v57 = vrot.slane %v739_v50, 1 }
  0xea   : > { %v488_v14 = vmul.f32 %v486_v3, %v3034_v13  ;;  %v516_v17 = vmul.f32 %v514_v6, %v3034_v13  ;;  %v544_v20 = vmul.f32 %v542_v10, %v3034_v13  ;;  %v572_v25 = vmul.f32 %v570_v12, %v3034_v13 }
  0xeb   : > { %v600_v27 = vmul.f32 %v598_v16, %v3034_v13  ;;  %v628_v30 = vmul.f32 %v626_v19, %v3034_v13  ;;  %v3080_v33 = vld [vmem:[#allocation2 + $0x8] sm:$0xff]  ;;  %v698_v41 = vmul.f32 %v696_v39, %v3034_v13  ;;  %v740_v47 = vmul.f32 %v738_v45, %v3034_v13 }
  0xec   : > { %519 = vrot.lane.b32.xlu0 %v515_v9, %s2836_s24  ;;  %493 = vrot.lane.b32.xlu1 %v488_v14, %s2835_s19  ;;  %v474_v34 = vmul.f32 %v472_v21, %v3080_v33  ;;  %v502_v37 = vmul.f32 %v500_v26, %v3080_v33  ;;  %v530_v42 = vmul.f32 %v528_v29, %v3080_v33  ;;  %v864_v6 = vstv %s2587_s25  ;;  %s2613_s25 = sld [smem:[#allocation4 + $0x4a]] }
  0xed   : > { %v704_v46 = vrot.slane %v698_v41, 1  ;;  %v558_v48 = vmul.f32 %v556_v32, %v3080_v33  ;;  %v746_v54 = vrot.slane %v740_v47, 1  ;;  %v782_v55 = vmul.f32 %v780_v51, %v3034_v13 }
  0xee   : > { %v586_v56 = vmul.f32 %v584_v36, %v3080_v33  ;;  %v781_v0 = vmul.f32 %v780_v51, %v3016_v4  ;;  %v699_v58 = vmul.f32 %v696_v39, %v3102_v52  ;;  %v824_v62 = vmul.f32 %v822_v59, %v3034_v13 }
  0xef   : > { %v705_v53 = vsel %vm647_vm3, %v703_v49, %v704_v46  ;;  %v747_v60 = vsel %vm647_vm3, %v745_v57, %v746_v54  ;;  %v788_v61 = vrot.slane %v782_v55, 1  ;;  %v614_v63 = vmul.f32 %v612_v40, %v3080_v33 }
  0xf0   : > { %547 = vrot.lane.b32.xlu0 %v543_v11, %s2837_s26  ;;  %521 = vrot.lane.b32.xlu1 %v516_v17, %s2836_s24  ;;  %v787_v1 = vrot.slane %v781_v0, 1  ;;  %v823_v2 = vmul.f32 %v822_v59, %v3016_v4  ;;  %v706_v3 = vrot.slane %v699_v58, 1  ;;  %v741_v5 = vmul.f32 %v738_v45, %v3102_v52 }
  0xf1   : > { %v830_v8 = vrot.slane %v824_v62, 1  ;;  %v866_v9 = vmul.f32 %v864_v6, %v3034_v13  ;;  %v865_v11 = vmul.f32 %v864_v6, %v3016_v4  ;;  %v906_v16 = vstv %s2589_s27  ;;  %s2615_s27 = sld [smem:[#allocation4 + $0x4b]] }
  0xf2   : > { %v789_v7 = vsel %vm647_vm3, %v787_v1, %v788_v61  ;;  %v829_v10 = vrot.slane %v823_v2, 1  ;;  %v707_v12 = vsel %vm647_vm3, %v704_v46, %v706_v3  ;;  %v748_v14 = vrot.slane %v741_v5, 1 }
  0xf3   : > { %v908_v19 = vmul.f32 %v906_v16, %v3034_v13  ;;  %v907_v21 = vmul.f32 %v906_v16, %v3016_v4  ;;  %v983_v26 = vstv %s2593_s29  ;;  %v1025_v36 = vstv %s2595_s5  ;;  %s2617_s29 = sld [smem:[#allocation4 + $0x4c]]  ;;  %s2578_s5 = sld [smem:[#allocation4 + $0x8]] }
  0xf4   : > { %575 = vrot.lane.b32.xlu0 %v571_v15, %s2838_s28  ;;  %549 = vrot.lane.b32.xlu1 %v544_v20, %s2837_s26  ;;  %v783_v15 = vmul.f32 %v780_v51, %v3102_v52  ;;  %v831_v17 = vsel %vm647_vm3, %v829_v10, %v830_v8  ;;  %v871_v20 = vrot.slane %v865_v11, 1  ;;  %v985_v29 = vmul.f32 %v983_v26, %v3034_v13 }
  0xf5   : > { %v1027_v39 = vmul.f32 %v1025_v36, %v3034_v13  ;;  %v1026_v41 = vmul.f32 %v1025_v36, %v3016_v4  ;;  %v1067_v45 = vstv %s2597_s7  ;;  %v1109_v55 = vstv %s2599_s8  ;;  %s2580_s7 = sld [smem:[#allocation4 + $0x9]]  ;;  %s2582_s8 = sld [smem:[#allocation4 + $0xa]] }
  0xf6   : > { %v1068_v50 = vmul.f32 %v1067_v45, %v3016_v4  ;;  %v1111_v0 = vmul.f32 %v1109_v55, %v3034_v13  ;;  %v1028_v62 = vmul.f32 %v1025_v36, %v3102_v52  ;;  %v1193_v10 = vstv %s2603_s10  ;;  %s2586_s10 = sld [smem:[#allocation4 + $0xc]] }
  0xf7   : > { %v1033_v47 = vrot.slane %v1027_v39, 2  ;;  %v1032_v49 = vrot.slane %v1026_v41, 2  ;;  %v1196_v39 = vmul.f32 %v1193_v10, %v3102_v52 }
  0xf8   : > { %603 = vrot.lane.b32.xlu0 %v599_v18, %s2839_s4  ;;  %577 = vrot.lane.b32.xlu1 %v572_v25, %s2838_s28  ;;  %v872_v18 = vrot.slane %v866_v9, 1  ;;  %v825_v25 = vmul.f32 %v822_v59, %v3102_v52  ;;  %v1074_v58 = vrot.slane %v1068_v50, 2  ;;  %v1110_v59 = vmul.f32 %v1109_v55, %v3016_v4 }
  0xf9   : > { %v1117_v2 = vrot.slane %v1111_v0, 2  ;;  %v1070_v9 = vmul.f32 %v1067_v45, %v3102_v52 }
  0xfa   : > { %v1116_v5 = vrot.slane %v1110_v59, 2 }
  0xfc   : > { %631 = vrot.lane.b32.xlu0 %v627_v22, %s2840_s6  ;;  %605 = vrot.lane.b32.xlu1 %v600_v27, %s2839_s4  ;;  %v749_v22 = vsel %vm647_vm3, %v746_v54, %v748_v14  ;;  %v873_v27 = vsel %vm647_vm3, %v871_v20, %v872_v18  ;;  %v986_v54 = vmul.f32 %v983_v26, %v3102_v52  ;;  %v1270_v20 = vstv %s2607_s11  ;;  %s2588_s11 = sld [smem:[#allocation4 + $0xd]] }
  0xfd   : > { %v1118_v11 = vsel %vm934_vm4, %v1116_v5, %v1117_v2  ;;  %v1195_v14 = vmul.f32 %v1193_v10, %v3034_v13  ;;  %v1480_v5 = vstv %s2617_s29  ;;  %s2600_s29 = sld [smem:[#allocation4 + $0x13]] }
 0x100   : > { %477 = vrot.lane.b32.xlu0 %v473_v24, %s2835_s19  ;;  %633 = vrot.lane.b32.xlu1 %v628_v30, %s2840_s6  ;;  %v790_v24 = vrot.slane %v783_v15, 1  ;;  %v913_v30 = vrot.slane %v907_v21, 1 }
 0x102   : > { %v791_v32 = vsel %vm647_vm3, %v788_v61, %v790_v24  ;;  %v993_v61 = vrot.slane %v986_v54, 2  ;;  %v1272_v24 = vmul.f32 %v1270_v20, %v3034_v13 }
 0x104   : > { %505 = vrot.lane.b32.xlu0 %v501_v28, %s2836_s24  ;;  %479 = vrot.lane.b32.xlu1 %v474_v34, %s2835_s19  ;;  %v914_v28 = vrot.slane %v908_v19, 1  ;;  %v832_v34 = vrot.slane %v825_v25, 1  ;;  %v1112_v19 = vmul.f32 %v1109_v55, %v3102_v52 }
 0x108   : > { %533 = vrot.lane.b32.xlu0 %v529_v31, %s2837_s26  ;;  %507 = vrot.lane.b32.xlu1 %v502_v37, %s2836_s24  ;;  %v984_v31 = vmul.f32 %v983_v26, %v3016_v4  ;;  %v915_v37 = vsel %vm647_vm3, %v913_v30, %v914_v28  ;;  %v1271_v26 = vmul.f32 %v1270_v20, %v3016_v4  ;;  %v1312_v30 = vstv %s2609_s17  ;;  %s2592_s17 = sld [smem:[#allocation4 + $0xf]] }
 0x109   : > { %v1313_v36 = vmul.f32 %v1312_v30, %v3016_v4  ;;  %v1315_v0 = vmul.f32 %v1312_v30, %v3102_v52 }
 0x10a   : > { %v990_v40 = vrot.slane %v984_v31, 2 }
 0x10c   : > { %561 = vrot.lane.b32.xlu0 %v557_v35, %s2838_s28  ;;  %535 = vrot.lane.b32.xlu1 %v530_v42, %s2837_s26  ;;  %v867_v35 = vmul.f32 %v864_v6, %v3102_v52  ;;  %v833_v42 = vsel %vm647_vm3, %v830_v8, %v832_v34  ;;  %v1035_v8 = vrot.slane %v1028_v62, 2  ;;  %v1314_v34 = vmul.f32 %v1312_v30, %v3034_v13 }
 0x10e   : > { %v874_v43 = vrot.slane %v867_v35, 1  ;;  %v1277_v35 = vrot.slane %v1271_v26, 3 }
 0x110   : > { %589 = vrot.lane.b32.xlu0 %v585_v38, %s2839_s4  ;;  %563 = vrot.lane.b32.xlu1 %v558_v48, %s2838_s28  ;;  %v991_v38 = vrot.slane %v985_v29, 2  ;;  %v1069_v48 = vmul.f32 %v1067_v45, %v3034_v13  ;;  %v875_v51 = vsel %vm647_vm3, %v872_v18, %v874_v43  ;;  %v1077_v18 = vrot.slane %v1070_v9, 2 }
 0x111   : > { %v675_v9 = vstv %s2578_s5  ;;  %s2602_s5 = sld [smem:[#allocation4 + $0x14]] }
 0x112   : > { %v992_v46 = vsel %vm934_vm4, %v990_v40, %v991_v38  ;;  %v1075_v57 = vrot.slane %v1069_v48, 2  ;;  %v1354_v40 = vstv %s2611_s20  ;;  %v1273_v48 = vmul.f32 %v1270_v20, %v3102_v52  ;;  %s2594_s20 = sld [smem:[#allocation4 + $0x10]] }
 0x113   : > { %v1356_v43 = vmul.f32 %v1354_v40, %v3034_v13  ;;  %v1355_v45 = vmul.f32 %v1354_v40, %v3016_v4 }
 0x114   : > { %617 = vrot.lane.b32.xlu0 %v613_v44, %s2840_s6  ;;  %591 = vrot.lane.b32.xlu1 %v586_v56, %s2839_s4  ;;  %v909_v44 = vmul.f32 %v906_v16, %v3102_v52  ;;  %v1034_v56 = vsel %vm934_vm4, %v1032_v49, %v1033_v47  ;;  %v1076_v1 = vsel %vm934_vm4, %v1074_v58, %v1075_v57  ;;  %v1396_v49 = vstv %s2613_s25  ;;  %s2596_s25 = sld [smem:[#allocation4 + $0x11]] }
 0x115   : > { %v1194_v16 = vmul.f32 %v1193_v10, %v3016_v4  ;;  %v1361_v54 = vrot.slane %v1355_v45, 3  ;;  %v1397_v55 = vmul.f32 %v1396_v49, %v3016_v4  ;;  %v1438_v58 = vstv %s2615_s27  ;;  %s2598_s27 = sld [smem:[#allocation4 + $0x12]] }
 0x116   : > { %v1441_v26 = vmul.f32 %v1438_v58, %v3102_v52 }
 0x117   : > { %v1200_v25 = vrot.slane %v1194_v16, 2  ;;  %v1403_v62 = vrot.slane %v1397_v55, 3  ;;  %v676_v16 = vmul.f32 %v675_v9, %v3054_v23 }
 0x118   : > { %708 = vrot.lane.b32.xlu0 %v705_v53, %s2835_s19  ;;  %619 = vrot.lane.b32.xlu1 %v614_v63, %s2840_s6  ;;  %v916_v53 = vrot.slane %v909_v44, 1  ;;  %v1151_v63 = vstv %s2601_s9  ;;  %v1319_v44 = vrot.slane %v1313_v36, 3  ;;  %s2584_s9 = sld [smem:[#allocation4 + $0xb]] }
 0x119   : > { %v1153_v3 = vmul.f32 %v1151_v63, %v3034_v13  ;;  %v1152_v6 = vmul.f32 %v1151_v63, %v3016_v4  ;;  %v1154_v29 = vmul.f32 %v1151_v63, %v3102_v52  ;;  %v1439_v63 = vmul.f32 %v1438_v58, %v3016_v4 }
 0x11b   : > { %v1158_v15 = vrot.slane %v1152_v6, 2  ;;  %v1445_v10 = vrot.slane %v1439_v63, 3  ;;  %v885_v63 = vstv %s2588_s11  ;;  %s3377_s11 = sld [smem:[#allocation4]] }
 0x11c   : > { %750 = vrot.lane.b32.xlu0 %v747_v60, %s2836_s24  ;;  %710 = vrot.lane.b32.xlu1 %v707_v12, %s2835_s19  ;;  %v917_v60 = vsel %vm647_vm3, %v914_v28, %v916_v53  ;;  %v1159_v12 = vrot.slane %v1153_v3, 2  ;;  %v1119_v28 = vrot.slane %v1112_v19, 2  ;;  %v1398_v53 = vmul.f32 %v1396_v49, %v3034_v13 }
 0x11d   : > { %v1357_v3 = vmul.f32 %v1354_v40, %v3102_v52  ;;  %v717_v19 = vstv %s2580_s7  ;;  %s2606_s7 = sld [smem:[#allocation4 + $0x16]] }
 0x11e   : > { %v1160_v21 = vsel %vm934_vm4, %v1158_v15, %v1159_v12  ;;  %v1399_v15 = vmul.f32 %v1396_v49, %v3102_v52  ;;  %v718_v30 = vmul.f32 %v717_v19, %v3054_v23 }
 0x120   : > { %792 = vrot.lane.b32.xlu0 %v789_v7, %s2837_s26  ;;  %752 = vrot.lane.b32.xlu1 %v749_v22, %s2836_s24  ;;  %v994_v7 = vsel %vm934_vm4, %v991_v38, %v993_v61  ;;  %v1201_v22 = vrot.slane %v1195_v14, 2  ;;  %v1161_v38 = vrot.slane %v1154_v29, 2  ;;  %v1440_v61 = vmul.f32 %v1438_v58, %v3034_v13 }
 0x121   : > { %v1364_v14 = vrot.slane %v1357_v3, 3  ;;  %v724_v40 = vrot.slane %v718_v30, 1 }
 0x122   : > { %v1202_v31 = vsel %vm934_vm4, %v1200_v25, %v1201_v22 }
 0x124   : > { %834 = vrot.lane.b32.xlu0 %v831_v17, %s2838_s28  ;;  %794 = vrot.lane.b32.xlu1 %v791_v32, %s2837_s26  ;;  %v1036_v17 = vsel %vm934_vm4, %v1033_v47, %v1035_v8  ;;  %v1278_v32 = vrot.slane %v1272_v24, 3  ;;  %v1203_v47 = vrot.slane %v1196_v39, 2  ;;  %v1482_v8 = vmul.f32 %v1480_v5, %v3034_v13 }
 0x125   : > { %v677_v13 = vmul.f32 %v675_v9, %v3080_v33  ;;  %v1406_v24 = vrot.slane %v1399_v15, 3  ;;  %v1004_v15 = vstv %s2594_s20  ;;  %s2614_s20 = sld [smem:[#allocation4 + $0x1a]] }
 0x126   : > { %v1279_v41 = vsel %vm1221_vm5, %v1277_v35, %v1278_v32  ;;  %v1448_v35 = vrot.slane %v1441_v26, 3 }
 0x127   : > { %v683_v29 = vrot.slane %v677_v13, 1 }
 0x128   : > { %876 = vrot.lane.b32.xlu0 %v873_v27, %s2839_s4  ;;  %836 = vrot.lane.b32.xlu1 %v833_v42, %s2838_s28  ;;  %v1078_v27 = vsel %vm934_vm4, %v1075_v57, %v1077_v18  ;;  %v1320_v42 = vrot.slane %v1314_v34, 3  ;;  %v1280_v57 = vrot.slane %v1273_v48, 3  ;;  %v1488_v18 = vrot.slane %v1482_v8, 3 }
 0x129   : > { %v843_v48 = vstv %s2586_s10  ;;  %s3375_s10 = sld [smem:[#allocation4 + $0x19]] }
 0x12a   : > { %v1321_v50 = vsel %vm1221_vm5, %v1319_v44, %v1320_v42  ;;  %v844_v58 = vmul.f32 %v843_v48, %v3054_v23 }
 0x12c   : > { %918 = vrot.lane.b32.xlu0 %v915_v37, %s2840_s6  ;;  %878 = vrot.lane.b32.xlu1 %v875_v51, %s2839_s4  ;;  %v1120_v37 = vsel %vm934_vm4, %v1117_v2, %v1119_v28  ;;  %v1362_v51 = vrot.slane %v1356_v43, 3  ;;  %v1322_v2 = vrot.slane %v1315_v0, 3  ;;  %v801_v43 = vstv %s2584_s9  ;;  %s2610_s9 = sld [smem:[#allocation4 + $0x18]] }
 0x12e   : > { %v1363_v59 = vsel %vm1221_vm5, %v1361_v54, %v1362_v51 }
 0x130   : > { %995 = vrot.lane.b32.xlu0 %v992_v46, %s2835_s19  ;;  %920 = vrot.lane.b32.xlu1 %v917_v60, %s2840_s6  ;;  %v1162_v46 = vsel %vm934_vm4, %v1159_v12, %v1161_v38  ;;  %v1404_v60 = vrot.slane %v1398_v53, 3  ;;  %v1323_v12 = vsel %vm1221_vm5, %v1320_v42, %v1322_v2  ;;  %v3249_v53 = vmul.f32 %v801_v43, %v3080_v33 }
 0x132   : > { %v1405_v6 = vsel %vm1221_vm5, %v1403_v62, %v1404_v60  ;;  %v1407_v34 = vsel %vm1221_vm5, %v1404_v60, %v1406_v24  ;;  %v809_v62 = vrot.slane %v3249_v53, 1 }
 0x134   : > { %1037 = vrot.lane.b32.xlu0 %v1034_v56, %s2836_s24  ;;  %997 = vrot.lane.b32.xlu1 %v994_v7, %s2835_s19  ;;  %v1204_v56 = vsel %vm934_vm4, %v1201_v22, %v1203_v47  ;;  %v1446_v7 = vrot.slane %v1440_v61, 3  ;;  %v1365_v22 = vsel %vm1221_vm5, %v1362_v51, %v1364_v14  ;;  %v802_v51 = vmul.f32 %v801_v43, %v3054_v23 }
 0x136   : > { %v1449_v45 = vsel %vm1221_vm5, %v1446_v7, %v1448_v35  ;;  %v808_v61 = vrot.slane %v802_v51, 1 }
 0x138   : > { %1079 = vrot.lane.b32.xlu0 %v1076_v1, %s2837_s26  ;;  %1039 = vrot.lane.b32.xlu1 %v1036_v17, %s2836_s24  ;;  %v1281_v1 = vsel %vm1221_vm5, %v1278_v32, %v1280_v57  ;;  %v1447_v17 = vsel %vm1221_vm5, %v1445_v10, %v1446_v7  ;;  %v3230_v32 = vld [vmem:[#allocation2 + $0x10] sm:$0x3f]  ;;  %v850_v7 = vrot.slane %v844_v58, 1  ;;  %v886_v10 = vmul.f32 %v885_v63, %v3054_v23 }
 0x139   : > { %v678_v44 = vmul.f32 %v675_v9, %v3230_v32  ;;  %v720_v0 = vmul.f32 %v717_v19, %v3230_v32  ;;  %v810_v9 = vsel %vm647_vm3, %v808_v61, %v809_v62  ;;  %v846_v30 = vmul.f32 %v843_v48, %v3230_v32 }
 0x13b   : > { %v685_v55 = vrot.slane %v678_v44, 1  ;;  %v727_v3 = vrot.slane %v720_v0, 1 }
 0x13c   : > { %1121 = vrot.lane.b32.xlu0 %v1118_v11, %s2838_s28  ;;  %1081 = vrot.lane.b32.xlu1 %v1078_v27, %s2837_s26  ;;  %v1481_v11 = vmul.f32 %v1480_v5, %v3016_v4  ;;  %v682_v27 = vrot.slane %v676_v16, 1 }
 0x13d   : > { %v686_v2 = vsel %vm647_vm3, %v683_v29, %v685_v55 }
 0x13e   : > { %v1487_v20 = vrot.slane %v1481_v11, 3  ;;  %v684_v39 = vsel %vm647_vm3, %v682_v27, %v683_v29  ;;  %v3277_v11 = vmul.f32 %v885_v63, %v3080_v33 }
 0x140   : > { %1163 = vrot.lane.b32.xlu0 %v1160_v21, %s2839_s4  ;;  %1123 = vrot.lane.b32.xlu1 %v1120_v37, %s2838_s28  ;;  %v759_v21 = vstv %s2582_s8  ;;  %v1489_v28 = vsel %vm1221_vm5, %v1487_v20, %v1488_v18  ;;  %v1483_v37 = vmul.f32 %v1480_v5, %v3102_v52  ;;  %v892_v20 = vrot.slane %v886_v10, 1  ;;  %s2608_s8 = sld [smem:[#allocation4 + $0x17]] }
 0x141   : > { %v760_v38 = vmul.f32 %v759_v21, %v3054_v23  ;;  %v761_v42 = vmul.f32 %v759_v21, %v3080_v33  ;;  %v1172_v10 = vstv %s2602_s5  ;;  %s3470_s5 = sld [smem:[#allocation4 + $0x1e]] }
 0x143   : > { %v766_v47 = vrot.slane %v760_v38, 1  ;;  %v3302_v38 = vmul.f32 %v1004_v15, %v3080_v33 }
 0x144   : > { %1205 = vrot.lane.b32.xlu0 %v1202_v31, %s2840_s6  ;;  %1165 = vrot.lane.b32.xlu1 %v1162_v46, %s2839_s4  ;;  %v719_v31 = vmul.f32 %v717_v19, %v3080_v33  ;;  %v1490_v46 = vrot.slane %v1483_v37, 3  ;;  %v804_v19 = vmul.f32 %v801_v43, %v3230_v32  ;;  %v853_v43 = vrot.slane %v846_v30, 1 }
 0x148   : > { %1282 = vrot.lane.b32.xlu0 %v1279_v41, %s2835_s19  ;;  %1207 = vrot.lane.b32.xlu1 %v1204_v56, %s2840_s6  ;;  %v725_v41 = vrot.slane %v719_v31, 1  ;;  %v1491_v56 = vsel %vm1221_vm5, %v1488_v18, %v1490_v46  ;;  %v1005_v31 = vmul.f32 %v1004_v15, %v3054_v23 }
 0x14a   : > { %v726_v49 = vsel %vm647_vm3, %v724_v40, %v725_v41  ;;  %v728_v16 = vsel %vm647_vm3, %v725_v41, %v727_v3  ;;  %v1088_v41 = vstv %s2598_s27  ;;  %v1011_v46 = vrot.slane %v1005_v31, 2  ;;  %s3428_s27 = sld [smem:[#allocation4 + $0x1d]] }
 0x14b   : > { %v1089_v58 = vmul.f32 %v1088_v41, %v3054_v23  ;;  %v1007_v3 = vmul.f32 %v1004_v15, %v3230_v32  ;;  %v1249_v31 = vstv %s2606_s7  ;;  %s3497_s7 = sld [smem:[#allocation4 + $0x4f]] }
 0x14c   : > { %1324 = vrot.lane.b32.xlu0 %v1321_v50, %s2836_s24  ;;  %1284 = vrot.lane.b32.xlu1 %v1281_v1, %s2835_s19  ;;  %v767_v50 = vrot.slane %v761_v42, 1 }
 0x14e   : > { %v768_v60 = vsel %vm647_vm3, %v766_v47, %v767_v50 }
 0x150   : > { %1366 = vrot.lane.b32.xlu0 %v1363_v59, %s2837_s26  ;;  %1326 = vrot.lane.b32.xlu1 %v1323_v12, %s2836_s24  ;;  %v3260_v59 = vmul.f32 %v843_v48, %v3080_v33  ;;  %v962_v12 = vstv %s2592_s17  ;;  %v1012_v48 = vrot.slane %v3302_v38, 2  ;;  %s3379_s17 = sld [smem:[#allocation4 + $0x31]] }
 0x151   : > { %v964_v24 = vmul.f32 %v962_v12, %v3080_v33  ;;  %v965_v0 = vmul.f32 %v962_v12, %v3230_v32 }
 0x152   : > { %v851_v8 = vrot.slane %v3260_v59, 1  ;;  %v1013_v59 = vsel %vm934_vm4, %v1011_v46, %v1012_v48  ;;  %v1250_v46 = vmul.f32 %v1249_v31, %v3054_v23 }
 0x153   : > { %v970_v37 = vrot.slane %v964_v24, 2  ;;  %v3355_v24 = vmul.f32 %v1172_v10, %v3080_v33 }
 0x154   : > { %1408 = vrot.lane.b32.xlu0 %v1405_v6, %s2838_s28  ;;  %1368 = vrot.lane.b32.xlu1 %v1365_v22, %s2837_s26  ;;  %v762_v6 = vmul.f32 %v759_v21, %v3230_v32  ;;  %v852_v13 = vsel %vm647_vm3, %v850_v7, %v851_v8  ;;  %v893_v21 = vrot.slane %v3277_v11, 1  ;;  %v963_v22 = vmul.f32 %v962_v12, %v3054_v23 }
 0x155   : > { %v854_v53 = vsel %vm647_vm3, %v851_v8, %v853_v43  ;;  %v972_v7 = vrot.slane %v965_v0, 2  ;;  %v1180_v43 = vrot.slane %v3355_v24, 2 }
 0x156   : > { %v969_v35 = vrot.slane %v963_v22, 2  ;;  %v1173_v22 = vmul.f32 %v1172_v10, %v3054_v23 }
 0x158   : > { %1450 = vrot.lane.b32.xlu0 %v1447_v17, %s2839_s4  ;;  %1410 = vrot.lane.b32.xlu1 %v1407_v34, %s2838_s28  ;;  %v769_v17 = vrot.slane %v762_v6, 1  ;;  %v894_v34 = vsel %vm647_vm3, %v892_v20, %v893_v21  ;;  %v971_v47 = vsel %vm934_vm4, %v969_v35, %v970_v37 }
 0x15a   : > { %v3222_v25 = vpop.permute.xlu0 %491  ;;  %v770_v27 = vsel %vm647_vm3, %v767_v50, %v769_v17 }
 0x15c   : > { %1492 = vrot.lane.b32.xlu0 %v1489_v28, %s2840_s6  ;;  %1452 = vrot.lane.b32.xlu1 %v1449_v45, %s2839_s4  ;;  %v811_v28 = vrot.slane %v804_v19, 1  ;;  %v888_v45 = vmul.f32 %v885_v63, %v3230_v32  ;;  %v1130_v63 = vstv %s2600_s29  ;;  %v973_v19 = vsel %vm934_vm4, %v970_v37, %v972_v7  ;;  %s2621_s29 = sld [smem:[#allocation4 + $0x4e]] }
 0x15d   : > { %v3344_v17 = vmul.f32 %v1130_v63, %v3080_v33 }
 0x15e   : > { %v3233_v36 = vpop.permute.xlu0 %519  ;;  %v3252_v54 = vpop.permute.xlu1 %493  ;;  %v812_v42 = vsel %vm647_vm3, %v809_v62, %v811_v28  ;;  %v895_v55 = vrot.slane %v888_v45, 1  ;;  %v3330_v62 = vmul.f32 %v1088_v41, %v3080_v33 }
 0x15f   : > { %v1138_v30 = vrot.slane %v3344_v17, 2 }
 0x160   : > { %687 = vrot.lane.b32.xlu0 %v684_v39, %s2835_s19  ;;  %1494 = vrot.lane.b32.xlu1 %v1491_v56, %s2840_s6  ;;  %v1046_v39 = vstv %s2596_s25  ;;  %v896_v6 = vsel %vm647_vm3, %v893_v21, %v895_v55  ;;  %v1096_v12 = vrot.slane %v3330_v62, 2  ;;  %s3397_s25 = sld [smem:[#allocation4 + $0x1b]] }
 0x161   : > { %v3316_v50 = vmul.f32 %v1046_v39, %v3080_v33  ;;  %v1049_v21 = vmul.f32 %v1046_v39, %v3230_v32 }
 0x162   : > { %v3243_v52 = vpop.permute.xlu0 %547  ;;  %v3266_v1 = vpop.permute.xlu1 %521 }
 0x163   : > { %v1054_v61 = vrot.slane %v3316_v50, 2  ;;  %v1056_v37 = vrot.slane %v1049_v21, 2  ;;  %v1375_v21 = vstv %s3375_s10  ;;  %s3561_s10 = sld [smem:[#allocation4 + $0x20]] }
 0x164   : > { %729 = vrot.lane.b32.xlu0 %v726_v49, %s2836_s24  ;;  %689 = vrot.lane.b32.xlu1 %v686_v2, %s2835_s19  ;;  %v1047_v49 = vmul.f32 %v1046_v39, %v3054_v23  ;;  %v1091_v39 = vmul.f32 %v1088_v41, %v3230_v32 }
 0x165   : > { %v1057_v50 = vsel %vm934_vm4, %v1054_v61, %v1056_v37 }
 0x166   : > { %v3255_v57 = vpop.permute.xlu0 %575  ;;  %v3280_v14 = vpop.permute.xlu1 %549 }
 0x168   : > { %771 = vrot.lane.b32.xlu0 %v768_v60, %s2837_s26  ;;  %731 = vrot.lane.b32.xlu1 %v728_v16, %s2836_s24  ;;  %v1053_v60 = vrot.slane %v1047_v49, 2  ;;  %v1131_v16 = vmul.f32 %v1130_v63, %v3054_v23  ;;  %v1133_v49 = vmul.f32 %v1130_v63, %v3230_v32 }
 0x16a   : > { %v3269_v5 = vpop.permute.xlu0 %603  ;;  %v3292_v26 = vpop.permute.xlu1 %577  ;;  %v1055_v11 = vsel %vm934_vm4, %v1053_v60, %v1054_v61  ;;  %v1137_v28 = vrot.slane %v1131_v16, 2  ;;  %v1140_v63 = vrot.slane %v1133_v49, 2 }
 0x16c   : > { %813 = vrot.lane.b32.xlu0 %v810_v9, %s2838_s28  ;;  %773 = vrot.lane.b32.xlu1 %v770_v27, %s2837_s26  ;;  %v1095_v9 = vrot.slane %v1089_v58, 2  ;;  %v1139_v45 = vsel %vm934_vm4, %v1137_v28, %v1138_v30  ;;  %v1333_v58 = vstv %s2610_s9  ;;  %v1141_v24 = vsel %vm934_vm4, %v1138_v30, %v1140_v63  ;;  %s3550_s9 = sld [smem:[#allocation4 + $0x50]] }
 0x16d   : > { %v3405_v16 = vmul.f32 %v1333_v58, %v3080_v33  ;;  %v1417_v30 = vstv %s2614_s20  ;;  %s3625_s20 = sld [smem:[#allocation4 + $0x7]] }
 0x16e   : > { %v3283_v18 = vpop.permute.xlu0 %631  ;;  %v3305_v40 = vpop.permute.xlu1 %605  ;;  %v1097_v27 = vsel %vm934_vm4, %v1095_v9, %v1096_v12  ;;  %v1175_v9 = vmul.f32 %v1172_v10, %v3230_v32 }
 0x170   : > { %855 = vrot.lane.b32.xlu0 %v852_v13, %s2839_s4  ;;  %815 = vrot.lane.b32.xlu1 %v812_v42, %s2838_s28  ;;  %v1014_v13 = vrot.slane %v1007_v3, 2  ;;  %v1179_v42 = vrot.slane %v1173_v22, 2  ;;  %v466_v22 = vstv %s3379_s17  ;;  %s3605_s17 = sld [smem:[#allocation4 + $0x21]] }
 0x172   : > { %v3295_v29 = vpop.permute.xlu0 %477  ;;  %v3319_v51 = vpop.permute.xlu1 %633  ;;  %v1015_v35 = vsel %vm934_vm4, %v1012_v48, %v1014_v13  ;;  %v1291_v48 = vstv %s2608_s8  ;;  %v1181_v0 = vsel %vm934_vm4, %v1179_v42, %v1180_v43  ;;  %s3514_s8 = sld [smem:[#allocation4 + $0x1f]] }
 0x173   : > { %v1292_v62 = vmul.f32 %v1291_v48, %v3054_v23  ;;  %v3392_v3 = vmul.f32 %v1291_v48, %v3080_v33 }
 0x174   : > { %897 = vrot.lane.b32.xlu0 %v894_v34, %s2840_s6  ;;  %857 = vrot.lane.b32.xlu1 %v854_v53, %s2839_s4  ;;  %v1098_v53 = vrot.slane %v1091_v39, 2  ;;  %v1341_v39 = vrot.slane %v3405_v16, 3 }
 0x175   : > { %v1298_v13 = vrot.slane %v1292_v62, 3 }
 0x176   : > { %v3308_v44 = vpop.permute.xlu0 %505  ;;  %v3333_v2 = vpop.permute.xlu1 %479 }
 0x178   : > { %974 = vrot.lane.b32.xlu0 %v971_v47, %s2835_s19  ;;  %899 = vrot.lane.b32.xlu1 %v896_v6, %s2840_s6  ;;  %v3372_v47 = vmul.f32 %v1249_v31, %v3080_v33  ;;  %v1099_v6 = vsel %vm934_vm4, %v1096_v12, %v1098_v53  ;;  %v460_v12 = vstv %s3377_s11  ;;  %s3594_s11 = sld [smem:[#allocation4 + $0x51]] }
 0x17a   : > { %v3322_v56 = vpop.permute.xlu0 %533  ;;  %v3347_v15 = vpop.permute.xlu1 %507  ;;  %v1257_v60 = vrot.slane %v3372_v47, 3  ;;  %v467_v47 = vmul.f32 %v466_v22, %v3016_v4  ;;  %v1418_v4 = vmul.f32 %v1417_v30, %v3054_v23 }
 0x17c   : > { %1016 = vrot.lane.b32.xlu0 %v1013_v59, %s2836_s24  ;;  %976 = vrot.lane.b32.xlu1 %v973_v19, %s2835_s19  ;;  %v1256_v59 = vrot.slane %v1250_v46, 3  ;;  %v1299_v19 = vrot.slane %v3392_v3, 3  ;;  %v3425_v46 = vmul.f32 %v1375_v21, %v3080_v33  ;;  %v1294_v3 = vmul.f32 %v1291_v48, %v3230_v32 }
 0x17e   : > { %v3337_v8 = vpop.permute.xlu0 %561  ;;  %v3361_v34 = vpop.permute.xlu1 %535  ;;  %v1258_v17 = vsel %vm1221_vm5, %v1256_v59, %v1257_v60  ;;  %v1300_v42 = vsel %vm1221_vm5, %v1298_v13, %v1299_v19  ;;  %v1301_v48 = vrot.slane %v1294_v3, 3  ;;  %v1336_v13 = vmul.f32 %v1333_v58, %v3230_v32 }
 0x180   : > { %1058 = vrot.lane.b32.xlu0 %v1055_v11, %s2837_s26  ;;  %1018 = vrot.lane.b32.xlu1 %v1015_v35, %s2836_s24  ;;  %v1334_v11 = vmul.f32 %v1333_v58, %v3054_v23  ;;  %v1252_v35 = vmul.f32 %v1249_v31, %v3230_v32  ;;  %v461_v31 = vmul.f32 %v460_v12, %v3054_v23 }
 0x182   : > { %v3350_v20 = vpop.permute.xlu0 %589  ;;  %v3381_v41 = vpop.permute.xlu1 %563  ;;  %v1340_v37 = vrot.slane %v1334_v11, 3 }
 0x184   : > { %1100 = vrot.lane.b32.xlu0 %v1097_v27, %s2838_s28  ;;  %1060 = vrot.lane.b32.xlu1 %v1057_v50, %s2837_s26  ;;  %v1182_v27 = vrot.slane %v1175_v9, 2  ;;  %v3439_v50 = vstv %s3397_s25  ;;  %v1342_v62 = vsel %vm1221_vm5, %v1340_v37, %v1341_v39  ;;  %v3450_v9 = vmul.f32 %v1417_v30, %v3080_v33  ;;  %s3634_s25 = sld [smem:[#allocation4 + $0x52]] }
 0x186   : > { %v3364_v38 = vpop.permute.xlu0 %617  ;;  %v3395_v61 = vpop.permute.xlu1 %591  ;;  %v1183_v53 = vsel %vm934_vm4, %v1180_v43, %v1182_v27  ;;  %v469_v43 = vadd.f32 %v467_v47, %v461_v31  ;;  %v1425_v37 = vrot.slane %v3450_v9, 3  ;;  %v1343_v31 = vrot.slane %v1336_v13, 3 }
 0x187   : > { %v462_v9 = vmul.f32 %v460_v12, %v3080_v33 }
 0x188   : > { %1142 = vrot.lane.b32.xlu0 %v1139_v45, %s2839_s4  ;;  %1102 = vrot.lane.b32.xlu1 %v1099_v6, %s2838_s28  ;;  %v1376_v45 = vmul.f32 %v1375_v21, %v3054_v23  ;;  %v1383_v6 = vrot.slane %v3425_v46, 3  ;;  %v483_v58 = vadd.f32 %v3295_v29, %v469_v43  ;;  %v1302_v46 = vsel %vm1221_vm5, %v1299_v19, %v1301_v48 }
 0x189   : > { %v1344_v43 = vsel %vm1221_vm5, %v1341_v39, %v1343_v31  ;;  %v1578_v39 = vstv %s3470_s5  ;;  %s3678_s5 = sld [smem:[#allocation4 + $0x53]] }
 0x18a   : > { %v3385_v55 = vpop.permute.xlu0 %708  ;;  %v3414_v10 = vpop.permute.xlu1 %619  ;;  %v1382_v63 = vrot.slane %v1376_v45, 3  ;;  %v497_v19 = vadd.f32 %v3222_v25, %v483_v58  ;;  %v3519_v58 = vld [vmem:[#allocation3] sm:$0xff] }
 0x18c   : > { %1184 = vrot.lane.b32.xlu0 %v1181_v0, %s2840_s6  ;;  %1144 = vrot.lane.b32.xlu1 %v1141_v24, %s2839_s4  ;;  %v1259_v0 = vrot.slane %v1252_v35, 3  ;;  %v1460_v24 = vmul.f32 %v3439_v50, %v3054_v23  ;;  %v1384_v27 = vsel %vm1221_vm5, %v1382_v63, %v1383_v6  ;;  %v1424_v35 = vrot.slane %v1418_v4, 3 }
 0x18e   : > { %v3400_v7 = vpop.permute.xlu0 %750  ;;  %v3436_v49 = vpop.permute.xlu1 %710  ;;  %v1260_v16 = vsel %vm1221_vm5, %v1257_v60, %v1259_v0  ;;  %v1536_v60 = vstv %s3428_s27  ;;  %v1466_v0 = vrot.slane %v1460_v24, 3  ;;  %s3649_s27 = sld [smem:[#allocation4 + $0x22]] }
 0x18f   : > { %v1537_v63 = vmul.f32 %v1536_v60, %v3054_v23  ;;  %v3484_v29 = vmul.f32 %v1536_v60, %v3080_v33  ;;  %v1420_v23 = vmul.f32 %v1417_v30, %v3230_v32  ;;  %v511_v30 = vadd.f32 %v3308_v44, %v497_v19  ;;  %v3532_v19 = vld [vmem:[#allocation2] sm:$0xff] }
 0x190   : > { %1261 = vrot.lane.b32.xlu0 %v1258_v17, %s2835_s19  ;;  %1186 = vrot.lane.b32.xlu1 %v1183_v53, %s2840_s6  ;;  %v1378_v53 = vmul.f32 %v1375_v21, %v3230_v32  ;;  %v1557_v21 = vstv %s2621_s29  ;;  %s3655_s29 = sld [smem:[#allocation4 + $0x38]] }
 0x191   : > { %v1543_v13 = vrot.slane %v1537_v63, 4  ;;  %v4534_v24 = vrot.slane %v3484_v29, 4 }
 0x192   : > { %v3417_v28 = vpop.permute.xlu0 %792  ;;  %v3453_v11 = vpop.permute.xlu1 %752 }
 0x193   : > { %v1545_v44 = vsel %vm1508_vm6, %v1543_v13, %v4534_v24  ;;  %v1599_v24 = vstv %s3497_s7  ;;  %s3702_s7 = sld [smem:[#allocation4 + $0x24]] }
 0x194   : > { %1303 = vrot.lane.b32.xlu0 %v1300_v42, %s2836_s24  ;;  %1263 = vrot.lane.b32.xlu1 %v1260_v16, %s2835_s19  ;;  %v3466_v42 = vmul.f32 %v3439_v50, %v3080_v33  ;;  %v1385_v16 = vrot.slane %v1378_v53, 3 }
 0x196   : > { %v3442_v59 = vpop.permute.xlu0 %834  ;;  %v3473_v45 = vpop.permute.xlu1 %794  ;;  %v1467_v3 = vrot.slane %v3466_v42, 3  ;;  %v1386_v53 = vsel %vm1221_vm5, %v1383_v6, %v1385_v16  ;;  %v3535_v6 = vld [vmem:[#allocation2 + $0x8] sm:$0xff]  ;;  %v525_v16 = vadd.f32 %v3233_v36, %v511_v30 }
 0x198   : > { %1345 = vrot.lane.b32.xlu0 %v1342_v62, %s2837_s26  ;;  %1305 = vrot.lane.b32.xlu1 %v1302_v46, %s2836_s24  ;;  %v1426_v62 = vsel %vm1221_vm5, %v1424_v35, %v1425_v37  ;;  %v1468_v25 = vsel %vm1221_vm5, %v1466_v0, %v1467_v3  ;;  %v1558_v46 = vmul.f32 %v3519_v58, %v1557_v21  ;;  %v1427_v0 = vrot.slane %v1420_v23, 3 }
 0x19a   : > { %v3456_v17 = vpop.permute.xlu0 %876  ;;  %v3488_v4 = vpop.permute.xlu1 %836  ;;  %v1428_v13 = vsel %vm1221_vm5, %v1425_v37, %v1427_v0 }
 0x19c   : > { %1387 = vrot.lane.b32.xlu0 %v1384_v27, %s2838_s28  ;;  %1347 = vrot.lane.b32.xlu1 %v1344_v43, %s2837_s26  ;;  %v3504_v27 = vld [vmem:[#allocation3 + $0x8] sm:$0xff]  ;;  %v3538_v43 = vmul.f32 %v3535_v6, %v1578_v39 }
 0x19d   : > { %v3507_v33 = vmul.f32 %v3504_v27, %v1557_v21  ;;  %v468_v12 = vmul.f32 %v3504_v27, %v466_v22  ;;  %v1462_v22 = vmul.f32 %v3439_v50, %v3230_v32  ;;  %v3556_v30 = vmul.f32 %v3504_v27, %v1599_v24 }
 0x19e   : > { %v3476_v47 = vpop.permute.xlu0 %918  ;;  %v3517_v35 = vpop.permute.xlu1 %878  ;;  %v1586_v36 = vrot.slane %v3538_v43, 4 }
 0x19f   : > { %v470_v31 = vadd.f32 %v468_v12, %v462_v9  ;;  %v1565_v63 = vrot.slane %v3507_v33, 4  ;;  %v1579_v9 = vmul.f32 %v3532_v19, %v1578_v39  ;;  %v1469_v33 = vrot.slane %v1462_v22, 3 }
 0x1a0   : > { %1429 = vrot.lane.b32.xlu0 %v1426_v62, %s2839_s4  ;;  %1389 = vrot.lane.b32.xlu1 %v1386_v53, %s2838_s28  ;;  %v1539_v53 = vmul.f32 %v1536_v60, %v3230_v32  ;;  %v539_v60 = vadd.f32 %v3322_v56, %v525_v16  ;;  %v1600_v22 = vmul.f32 %v3519_v58, %v1599_v24 }
 0x1a1   : > { %v484_v50 = vadd.f32 %v3333_v2, %v470_v31  ;;  %v1585_v31 = vrot.slane %v1579_v9, 4 }
 0x1a2   : > { %v3494_v48 = vpop.permute.xlu0 %995  ;;  %v3543_v23 = vpop.permute.xlu1 %920  ;;  %v1546_v9 = vrot.slane %v1539_v53, 4  ;;  %v4543_v53 = vrot.slane %v3484_v29, 4 }
 0x1a3   : > { %v498_v37 = vadd.f32 %v3252_v54, %v484_v50  ;;  %v1587_v56 = vsel %vm1508_vm6, %v1585_v31, %v1586_v36  ;;  %v1607_v50 = vrot.slane %v3556_v30, 4 }
 0x1a4   : > { %1471 = vrot.lane.b32.xlu0 %v1468_v25, %s2840_s6  ;;  %v1564_v25 = vrot.slane %v1558_v46, 4  ;;  %1431 = vrot.lane.b32.xlu1 %v1428_v13, %s2839_s4  ;;  %v1620_v46 = vstv %s3514_s8  ;;  %v553_v13 = vadd.f32 %v3243_v52, %v539_v60  ;;  %s3732_s8 = sld [smem:[#allocation4 + $0x55]] }
 0x1a5   : > { %v1621_v16 = vmul.f32 %v3532_v19, %v1620_v46  ;;  %v3580_v42 = vmul.f32 %v3535_v6, %v1620_v46 }
 0x1a6   : > { %v3523_v62 = vpop.permute.xlu0 %1037  ;;  %v1566_v2 = vsel %vm1508_vm6, %v1564_v25, %v1565_v63  ;;  %v3564_v0 = vpop.permute.xlu1 %997  ;;  %v3572_v25 = vld [vmem:[#allocation3 + $0x10] sm:$0x3f] }
 0x1a7   : > { %v1560_v54 = vmul.f32 %v3572_v25, %v1557_v21  ;;  %v1606_v21 = vrot.slane %v1600_v22, 4  ;;  %v1662_v22 = vstv %s3561_s10  ;;  %s3792_s10 = sld [smem:[#allocation4 + $0x56]] }
 0x1a8   : > { %1548 = vrot.lane.b32.xlu0 %v1545_v44, %s2835_s19  ;;  %v1470_v44 = vsel %vm1221_vm5, %v1467_v3, %v1469_v33  ;;  %v512_v3 = vadd.f32 %v3347_v15, %v498_v37  ;;  %v1627_v15 = vrot.slane %v1621_v16, 4  ;;  %v1628_v37 = vrot.slane %v3580_v42, 4 }
 0x1a9   : > { %1473 = vrot.lane.b32.xlu1 %v1470_v44, %s2840_s6  ;;  %v1567_v31 = vrot.slane %v1560_v54, 4  ;;  %v1581_v44 = vmul.f32 %v1578_v39, %v3230_v32  ;;  %v1608_v52 = vsel %vm1508_vm6, %v1606_v21, %v1607_v50  ;;  %v567_v39 = vadd.f32 %v3337_v8, %v553_v13 }
 0x1aa   : > { %v3546_v12 = vpop.permute.xlu0 %1079  ;;  %v3585_v33 = vpop.permute.xlu1 %1039  ;;  %v526_v29 = vadd.f32 %v3266_v1, %v512_v3  ;;  %v1602_v21 = vmul.f32 %v3572_v25, %v1599_v24  ;;  %v1629_v1 = vsel %vm1508_vm6, %v1627_v15, %v1628_v37  ;;  %v1663_v8 = vmul.f32 %v3532_v19, %v1662_v22 }
 0x1ab   : > { %v1588_v16 = vrot.slane %v1581_v44, 4  ;;  %v3620_v13 = vmul.f32 %v3535_v6, %v1662_v22  ;;  %v1623_v15 = vmul.f32 %v1620_v46, %v3230_v32  ;;  %v3647_v46 = vstv %s3605_s17  ;;  %s3827_s17 = sld [smem:[#allocation4 + $0xe]] }
 0x1ac   : > { %1569 = vrot.lane.b32.xlu0 %v1566_v2, %s2835_s19  ;;  %v1547_v2 = vsel %vm1508_vm6, %v4543_v53, %v1546_v9  ;;  %v540_v53 = vadd.f32 %v3361_v34, %v526_v29  ;;  %v1609_v44 = vrot.slane %v1602_v21, 4  ;;  %v1669_v34 = vrot.slane %v1663_v8, 4 }
 0x1ad   : > { %1550 = vrot.lane.b32.xlu1 %v1547_v2, %s2835_s19  ;;  %v4535_v29 = vrot.slane %v3620_v13, 4  ;;  %v1630_v8 = vrot.slane %v1623_v15, 4 }
 0x1ae   : > { %v3570_v43 = vpop.permute.xlu0 %1121  ;;  %v3608_v9 = vpop.permute.xlu1 %1081 }
 0x1af   : > { %4542 = vst [vmem:[#allocation10_spill] sm:$0xff] %v3570_v43  ;;  %v1641_v43 = vstv %s3550_s9  ;;  %s3763_s9 = sld [smem:[#allocation4 + $0x25]] }
 0x1b0   : > { %1590 = vrot.lane.b32.xlu0 %v1587_v56, %s2836_s24  ;;  %v3600_v60 = vmul.f32 %v3504_v27, %v1641_v43  ;;  %v1642_v54 = vmul.f32 %v3519_v58, %v1641_v43  ;;  %v1568_v56 = vsel %vm1508_vm6, %v1565_v63, %v1567_v31  ;;  %v581_v63 = vadd.f32 %v3255_v57, %v567_v39 }
 0x1b1   : > { %1571 = vrot.lane.b32.xlu1 %v1568_v56, %s2835_s19  ;;  %v1589_v31 = vsel %vm1508_vm6, %v1586_v36, %v1588_v16  ;;  %v1683_v56 = vstv %s3594_s11  ;;  %v554_v36 = vadd.f32 %v3280_v14, %v540_v53  ;;  %v1644_v14 = vmul.f32 %v3572_v25, %v1641_v43  ;;  %s3810_s11 = sld [smem:[#allocation4 + $0x26]] }
 0x1b2   : > { %v3590_v30 = vpop.permute.xlu0 %1163  ;;  %v4536_v3 = vrot.slane %v3600_v60, 4  ;;  %v3627_v24 = vpop.permute.xlu1 %1123  ;;  %v1648_v2 = vrot.slane %v1642_v54, 4  ;;  %v3642_v39 = vmul.f32 %v3504_v27, %v1683_v56  ;;  %v595_v54 = vadd.f32 %v3350_v20, %v581_v63 }
 0x1b3   : > { %v1684_v21 = vmul.f32 %v3519_v58, %v1683_v56  ;;  %v1671_v20 = vsel %vm1508_vm6, %v1669_v34, %v4535_v29  ;;  %v1705_v63 = vmul.f32 %v3532_v19, %v3647_v46  ;;  %v1631_v34 = vsel %vm1508_vm6, %v1628_v37, %v1630_v8 }
 0x1b4   : > { %1611 = vrot.lane.b32.xlu0 %v1608_v52, %s2836_s24  ;;  %v1650_v57 = vsel %vm1508_vm6, %v1648_v2, %v4536_v3  ;;  %v4537_v53 = vrot.slane %v3642_v39, 4  ;;  %v609_v43 = vadd.f32 %v3269_v5, %v595_v54  ;;  %v1665_v3 = vmul.f32 %v1662_v22, %v3230_v32 }
 0x1b5   : > { %1592 = vrot.lane.b32.xlu1 %v1589_v31, %s2836_s24  ;;  %v568_v31 = vadd.f32 %v3381_v41, %v554_v36  ;;  %v1725_v41 = vstv %s3634_s25  ;;  %v1711_v36 = vrot.slane %v1705_v63, 4  ;;  %s3843_s25 = sld [smem:[#allocation4 + $0x57]] }
 0x1b6   : > { %v3612_v42 = vpop.permute.xlu0 %1205  ;;  %v3652_v16 = vpop.permute.xlu1 %1165 }
 0x1b7   : > { %v582_v37 = vadd.f32 %v3292_v26, %v568_v31  ;;  %v4547_v26 = vrot.slane %v3600_v60, 4 }
 0x1b8   : > { %1632 = vrot.lane.b32.xlu0 %v1629_v1, %s2837_s26  ;;  %v1610_v1 = vsel %vm1508_vm6, %v1607_v50, %v1609_v44  ;;  %v3670_v50 = vmul.f32 %v3535_v6, %v3647_v46  ;;  %v640_v44 = vstv %s3625_s20  ;;  %s3841_s20 = sld [smem:[#allocation4 + $0x3f]] }
 0x1b9   : > { %1613 = vrot.lane.b32.xlu1 %v1610_v1, %s2836_s24  ;;  %v1651_v1 = vrot.slane %v1644_v14, 4  ;;  %v641_v8 = vmul.f32 %v3532_v19, %v640_v44  ;;  %v3696_v22 = vmul.f32 %v3535_v6, %v640_v44  ;;  %v3700_v14 = vstv %s3649_s27  ;;  %s3870_s27 = sld [smem:[#allocation4 + $0x27]] }
 0x1ba   : > { %v3630_v52 = vpop.permute.xlu0 %1282  ;;  %v3676_v15 = vpop.permute.xlu1 %1207  ;;  %v3724_v60 = vmul.f32 %v3535_v6, %v3700_v14 }
 0x1bb   : > { %v1652_v31 = vsel %vm1508_vm6, %v4547_v26, %v1651_v1  ;;  %v648_v1 = vrot.slane %v641_v8, 1 }
 0x1bc   : > { %1653 = vrot.lane.b32.xlu0 %v1650_v57, %s2837_s26  ;;  %v1690_v57 = vrot.slane %v1684_v21, 4  ;;  %v3691_v21 = vmul.f32 %v3504_v27, %v1725_v41 }
 0x1bd   : > { %1634 = vrot.lane.b32.xlu1 %v1631_v34, %s2837_s26  ;;  %v658_v34 = vstv %s3655_s29  ;;  %s3903_s29 = sld [smem:[#allocation4 + $0x58]] }
 0x1be   : > { %v3658_v2 = vpop.permute.xlu0 %1324  ;;  %v1692_v5 = vsel %vm1508_vm6, %v1690_v57, %v4537_v53  ;;  %v3705_v63 = vpop.permute.xlu1 %1284  ;;  %v1726_v57 = vmul.f32 %v3519_v58, %v1725_v41  ;;  %v1672_v53 = vrot.slane %v1665_v3, 4  ;;  %v596_v3 = vadd.f32 %v3395_v61, %v582_v37 }
 0x1bf   : > { %4544 = vst [vmem:[#allocation11_spill] sm:$0xff] %v3658_v2  ;;  %4546 = vst [vmem:[#allocation13_spill] sm:$0xff] %v3705_v63  ;;  %v1747_v63 = vmul.f32 %v3532_v19, %v3700_v14  ;;  %v3729_v26 = vmul.f32 %v3504_v27, %v658_v34  ;;  %v4551_v61 = vrot.slane %v3620_v13, 4 }
 0x1c0   : > { %1674 = vrot.lane.b32.xlu0 %v1671_v20, %s2838_s28  ;;  %v623_v20 = vadd.f32 %v3364_v38, %v609_v43  ;;  %v1767_v43 = vstv %s3678_s5  ;;  %v610_v13 = vadd.f32 %v3305_v40, %v596_v3  ;;  %s3936_s5 = sld [smem:[#allocation4 + $0x28]] }
 0x1c1   : > { %1655 = vrot.lane.b32.xlu1 %v1652_v31, %s2837_s26  ;;  %v1732_v31 = vrot.slane %v1726_v57, 4  ;;  %v1673_v37 = vsel %vm1508_vm6, %v4551_v61, %v1672_v53  ;;  %v1753_v57 = vrot.slane %v1747_v63, 4  ;;  %v3752_v2 = vmul.f32 %v3504_v27, %v1767_v43 }
 0x1c2   : > { %v3681_v29 = vpop.permute.xlu0 %1366  ;;  %v4553_v53 = vrot.slane %v3696_v22, 1  ;;  %v3761_v61 = vstv %s3702_s7  ;;  %v1768_v40 = vmul.f32 %v3519_v58, %v1767_v43  ;;  %s3964_s7 = sld [smem:[#allocation4 + $0x59]] }
 0x1c3   : > { %4545 = vst [vmem:[#allocation12_spill] sm:$0xff] %v3681_v29  ;;  %v4549_v29 = vrot.slane %v3670_v50, 4 }
 0x1c4   : > { %1695 = vrot.lane.b32.xlu0 %v1692_v5, %s2838_s28  ;;  %v1686_v5 = vmul.f32 %v3572_v25, %v1683_v56 }
 0x1c5   : > { %v1713_v38 = vsel %vm1508_vm6, %v1711_v36, %v4549_v29  ;;  %v637_v29 = vadd.f32 %v3283_v18, %v623_v20  ;;  %v3735_v36 = vpop.permute.xlu1 %1326  ;;  %1676 = vrot.lane.b32.xlu1 %v1673_v37, %s2838_s28  ;;  %v4552_v18 = vrot.slane %v3691_v21, 4 }
 0x1c6   : > { %v3712_v54 = vpop.permute.xlu0 %1408  ;;  %4550 = vst [vmem:[#allocation15_spill] sm:$0xff] %v3735_v36  ;;  %v1693_v8 = vrot.slane %v1686_v5, 4  ;;  %v4538_v36 = vrot.slane %v3724_v60, 4  ;;  %v650_v5 = vsel %vm647_vm3, %v648_v1, %v4553_v53 }
 0x1c7   : > { %4548 = vst [vmem:[#allocation14_spill] sm:$0xff] %v3712_v54  ;;  %v659_v54 = vmul.f32 %v3519_v58, %v658_v34  ;;  %v1734_v20 = vsel %vm1508_vm6, %v1732_v31, %v4552_v18  ;;  %v655_v63 = vadd.f32 %v650_v5, %v637_v29  ;;  %v643_v31 = vmul.f32 %v640_v44, %v3230_v32 }
 0x1c8   : > { %1716 = vrot.lane.b32.xlu0 %v1713_v38, %s2839_s4  ;;  %v1707_v38 = vmul.f32 %v3647_v46, %v3230_v32  ;;  %v4555_v18 = vrot.slane %v3642_v39, 4  ;;  %v1755_v44 = vsel %vm1508_vm6, %v1753_v57, %v4538_v36  ;;  %v3784_v39 = vmul.f32 %v3535_v6, %v3761_v61 }
 0x1c9   : > { %v3766_v37 = vpop.permute.xlu1 %1368  ;;  %v665_v3 = vrot.slane %v659_v54, 1  ;;  %v1824_v54 = vmul.f32 %v3532_v19, %v3761_v61  ;;  %v1844_v5 = vstv %s3732_s8  ;;  %v1774_v29 = vrot.slane %v1768_v40, 4  ;;  %s3990_s8 = sld [smem:[#allocation4 + $0x29]] }
 0x1ca   : > { %v3742_v56 = vpop.permute.xlu0 %1450  ;;  %4554 = vst [vmem:[#allocation16_spill] sm:$0xff] %v3766_v37  ;;  %v1694_v1 = vsel %vm1508_vm6, %v4555_v18, %v1693_v8  ;;  %v1714_v53 = vrot.slane %v1707_v38, 4  ;;  %v4557_v8 = vrot.slane %v3729_v26, 1  ;;  %v651_v18 = vrot.slane %v643_v31, 1 }
 0x1cb   : > { %1697 = vrot.lane.b32.xlu1 %v1694_v1, %s2838_s28  ;;  %v661_v1 = vmul.f32 %v3572_v25, %v658_v34  ;;  %v4559_v34 = vrot.slane %v3752_v2, 4  ;;  %v1830_v40 = vrot.slane %v1824_v54, 5 }
 0x1cc   : > { %1737 = vrot.lane.b32.xlu0 %v1734_v20, %s2839_s4  ;;  %v1728_v20 = vmul.f32 %v3572_v25, %v1725_v41  ;;  %v667_v38 = vsel %vm647_vm3, %v665_v3, %v4557_v8  ;;  %v624_v41 = vadd.f32 %v3414_v10, %v610_v13  ;;  %v1749_v10 = vmul.f32 %v3700_v14, %v3230_v32 }
 0x1cd   : > { %v672_v57 = vadd.f32 %v667_v38, %v655_v63  ;;  %v3795_v36 = vpop.permute.xlu1 %1410  ;;  %v3803_v13 = vmul.f32 %v3504_v27, %v1844_v5  ;;  %v1776_v31 = vsel %vm1508_vm6, %v1774_v29, %v4559_v34  ;;  %v1845_v14 = vmul.f32 %v3519_v58, %v1844_v5 }
 0x1ce   : > { %v3772_v46 = vpop.permute.xlu0 %1492  ;;  %v1735_v3 = vrot.slane %v1728_v20, 4  ;;  %v668_v20 = vrot.slane %v661_v1, 1  ;;  %v1770_v38 = vmul.f32 %v3572_v25, %v1767_v43  ;;  %v4560_v29 = vrot.slane %v3696_v22, 1 }
 0x1cf   : > { %4556 = vst [vmem:[#allocation17_spill] sm:$0xff] %v3772_v46  ;;  %v4558_v46 = vrot.slane %v3670_v50, 4  ;;  %v1831_v50 = vrot.slane %v3784_v39, 5  ;;  %v1852_v1 = vrot.slane %v3803_v13, 5  ;;  %v3934_v13 = vstv %s3870_s27  ;;  %s4143_s27 = sld [smem:[#allocation4 + $0x5d]] }
 0x1d0   : > { %1758 = vrot.lane.b32.xlu0 %v1755_v44, %s2840_s6  ;;  %v652_v54 = vsel %vm647_vm3, %v4560_v29, %v651_v18 }
 0x1d1   : > { %v1715_v37 = vsel %vm1508_vm6, %v4558_v46, %v1714_v53  ;;  %v638_v46 = vadd.f32 %v3319_v51, %v624_v41  ;;  %v1865_v53 = vstv %s3763_s9  ;;  %v3816_v44 = vpop.permute.xlu1 %1452  ;;  %v4561_v51 = vrot.slane %v3691_v21, 4  ;;  %s4001_s9 = sld [smem:[#allocation4 + $0x15]] }
 0x1d2   : > { %v688_v8 = vpop.permute.xlu0 %687  ;;  %1718 = vrot.lane.b32.xlu1 %v1715_v37, %s2839_s4  ;;  %v1832_v43 = vsel %vm1795_vm7, %v1830_v40, %v1831_v50  ;;  %v1866_v22 = vmul.f32 %v3532_v19, %v1865_v53  ;;  %v3835_v18 = vmul.f32 %v3535_v6, %v1865_v53 }
 0x1d3   : > { %v693_v63 = vadd.f32 %v688_v8, %v672_v57  ;;  %v1736_v41 = vsel %vm1508_vm6, %v4561_v51, %v1735_v3  ;;  %v1756_v57 = vrot.slane %v1749_v10, 4  ;;  %v656_v21 = vadd.f32 %v652_v54, %v638_v46 }
 0x1d4   : > { %1779 = vrot.lane.b32.xlu0 %v1776_v31, %s2840_s6  ;;  %v1851_v3 = vrot.slane %v1845_v14, 5  ;;  %v3839_v10 = vstv %s3792_s10  ;;  %v1826_v46 = vmul.f32 %v3761_v61, %v3230_v32  ;;  %v4563_v14 = vrot.slane %v3724_v60, 4  ;;  %s4020_s10 = sld [smem:[#allocation4 + $0x46]] }
 0x1d5   : > { %v714_v37 = vadd.f32 %v3385_v55, %v693_v63  ;;  %v4562_v63 = vrot.slane %v3729_v26, 1  ;;  %v3848_v31 = vpop.permute.xlu1 %1494  ;;  %v1847_v26 = vmul.f32 %v3572_v25, %v1844_v5  ;;  %v1872_v32 = vrot.slane %v1866_v22, 5 }
 0x1d6   : > { %v730_v8 = vpop.permute.xlu0 %729  ;;  %1739 = vrot.lane.b32.xlu1 %v1736_v41, %s2839_s4  ;;  %v1757_v29 = vsel %vm1508_vm6, %v4563_v14, %v1756_v57  ;;  %v1853_v51 = vsel %vm1795_vm7, %v1851_v3, %v1852_v1  ;;  %v1873_v60 = vrot.slane %v3835_v18, 5  ;;  %v3867_v61 = vstv %s3810_s11  ;;  %v3894_v14 = vld [vmem:[#allocation2 + $0x10] sm:$0x3f]  ;;  %s4023_s11 = sld [smem:[#allocation4 + $0x5a]] }
 0x1d7   : > { %v735_v55 = vadd.f32 %v730_v8, %v714_v37  ;;  %v669_v34 = vsel %vm647_vm3, %v4562_v63, %v668_v20  ;;  %v1777_v37 = vrot.slane %v1770_v38, 4  ;;  %v3862_v20 = vmul.f32 %v3504_v27, %v3839_v10 }
 0x1d8   : > { %1835 = vrot.lane.b32.xlu0 %v1832_v43, %s2835_s19  ;;  %v673_v38 = vadd.f32 %v669_v34, %v656_v21  ;;  %v4564_v5 = vrot.slane %v3752_v2, 4  ;;  %v1887_v43 = vmul.f32 %v3519_v58, %v3839_v10  ;;  %v3879_v21 = vstv %s3827_s17  ;;  %s4042_s17 = sld [smem:[#allocation4 + $0x2b]] }
 0x1d9   : > { %v756_v40 = vadd.f32 %v3400_v7, %v735_v55  ;;  %v690_v41 = vpop.permute.xlu1 %689  ;;  %v1833_v55 = vrot.slane %v1826_v46, 5  ;;  %v1908_v63 = vmul.f32 %v3532_v19, %v3867_v61  ;;  %v3885_v2 = vmul.f32 %v3535_v6, %v3867_v61 }
 0x1da   : > { %v772_v54 = vpop.permute.xlu0 %771  ;;  %1760 = vrot.lane.b32.xlu1 %v1757_v29, %s2840_s6  ;;  %v1778_v57 = vsel %vm1508_vm6, %v4564_v5, %v1777_v37  ;;  %v694_v22 = vadd.f32 %v690_v41, %v673_v38  ;;  %v1854_v34 = vrot.slane %v1847_v26, 5  ;;  %v1894_v37 = vrot.slane %v3862_v20, 5 }
 0x1db   : > { %v777_v7 = vadd.f32 %v772_v54, %v756_v40  ;;  %v1874_v40 = vsel %vm1795_vm7, %v1872_v32, %v1873_v60  ;;  %v1868_v29 = vmul.f32 %v3894_v14, %v1865_v53  ;;  %v3898_v54 = vstv %s3841_s20  ;;  %s4078_s20 = sld [smem:[#allocation4 + $0x5c]] }
 0x1dc   : > { %1856 = vrot.lane.b32.xlu0 %v1853_v51, %s2835_s19  ;;  %v715_v46 = vadd.f32 %v3436_v49, %v694_v22  ;;  %v3901_v51 = vstv %s3843_s25  ;;  %v1893_v49 = vrot.slane %v1887_v43, 5  ;;  %v928_v38 = vmul.f32 %v3532_v19, %v3879_v21  ;;  %s4092_s25 = sld [smem:[#allocation4 + $0x2c]] }
 0x1dd   : > { %v798_v8 = vadd.f32 %v3417_v28, %v777_v7  ;;  %v732_v26 = vpop.permute.xlu1 %731  ;;  %v1834_v7 = vsel %vm1795_vm7, %v1831_v50, %v1833_v55  ;;  %v3913_v5 = vmul.f32 %v3535_v6, %v3879_v21  ;;  %v3925_v55 = vmul.f32 %v3504_v27, %v3901_v51 }
 0x1de   : > { %v814_v3 = vpop.permute.xlu0 %813  ;;  %1781 = vrot.lane.b32.xlu1 %v1778_v57, %s2840_s6  ;;  %v736_v41 = vadd.f32 %v732_v26, %v715_v46  ;;  %v1914_v57 = vrot.slane %v1908_v63, 5  ;;  %v1895_v50 = vsel %vm1795_vm7, %v1893_v49, %v1894_v37  ;;  %v1875_v22 = vrot.slane %v1868_v29, 5 }
 0x1df   : > { %v819_v28 = vadd.f32 %v814_v3, %v798_v8  ;;  %v1915_v8 = vrot.slane %v3885_v2, 5  ;;  %v3931_v3 = vmul.f32 %v3504_v27, %v3898_v54  ;;  %v935_v46 = vrot.slane %v928_v38, 2 }
 0x1e0   : > { %1877 = vrot.lane.b32.xlu0 %v1874_v40, %s2836_s24  ;;  %v757_v43 = vadd.f32 %v3453_v11, %v736_v41  ;;  %v1889_v11 = vmul.f32 %v3572_v25, %v3839_v10  ;;  %v936_v29 = vrot.slane %v3913_v5, 2  ;;  %v1950_v10 = vmul.f32 %v3532_v19, %v3934_v13 }
 0x1e1   : > { %v840_v32 = vadd.f32 %v3442_v59, %v819_v28  ;;  %v1855_v59 = vsel %vm1795_vm7, %v1852_v1, %v1854_v34  ;;  %v774_v1 = vpop.permute.xlu1 %773  ;;  %v946_v28 = vmul.f32 %v3519_v58, %v3898_v54  ;;  %v1929_v34 = vmul.f32 %v3519_v58, %v3901_v51 }
 0x1e2   : > { %v856_v53 = vpop.permute.xlu0 %855  ;;  %1837 = vrot.lane.b32.xlu1 %v1834_v7, %s2835_s19  ;;  %v778_v40 = vadd.f32 %v774_v1, %v757_v43  ;;  %v1916_v7 = vsel %vm1795_vm7, %v1914_v57, %v1915_v8  ;;  %v3955_v49 = vmul.f32 %v3535_v6, %v3934_v13  ;;  %v1876_v41 = vsel %vm1795_vm7, %v1873_v60, %v1875_v22 }
 0x1e3   : > { %v861_v39 = vadd.f32 %v856_v53, %v840_v32  ;;  %v1936_v32 = vrot.slane %v3925_v55, 5  ;;  %v953_v53 = vrot.slane %v3931_v3, 2  ;;  %v1970_v57 = vstv %s3903_s29  ;;  %s4156_s29 = sld [smem:[#allocation4 + $0x2d]] }
 0x1e4   : > { %1898 = vrot.lane.b32.xlu0 %v1895_v50, %s2836_s24  ;;  %v799_v38 = vadd.f32 %v3473_v45, %v778_v40  ;;  %v1896_v43 = vrot.slane %v1889_v11, 5  ;;  %v1935_v1 = vrot.slane %v1929_v34, 5  ;;  %v937_v45 = vsel %vm934_vm4, %v935_v46, %v936_v29 }
 0x1e5   : > { %v882_v63 = vadd.f32 %v3456_v17, %v861_v39  ;;  %v952_v39 = vrot.slane %v946_v28, 2  ;;  %v1910_v60 = vmul.f32 %v3894_v14, %v3867_v61  ;;  %v3973_v22 = vmul.f32 %v3504_v27, %v1970_v57 }
 0x1e6   : > { %v898_v26 = vpop.permute.xlu0 %897  ;;  %1858 = vrot.lane.b32.xlu1 %v1855_v59, %s2835_s19  ;;  %v816_v59 = vpop.permute.xlu1 %815  ;;  %v1956_v11 = vrot.slane %v1950_v10, 5  ;;  %v1957_v34 = vrot.slane %v3955_v49, 5  ;;  %v930_v61 = vmul.f32 %v3894_v14, %v3879_v21  ;;  %v948_v10 = vmul.f32 %v3572_v25, %v3898_v54 }
 0x1e7   : > { %v903_v17 = vadd.f32 %v898_v26, %v882_v63  ;;  %v820_v63 = vadd.f32 %v816_v59, %v799_v38  ;;  %v954_v46 = vsel %vm934_vm4, %v952_v39, %v953_v53  ;;  %v3988_v26 = vstv %s3936_s5  ;;  %s4189_s5 = sld [smem:[#allocation4 + $0x5e]] }
 0x1e8   : > { %1919 = vrot.lane.b32.xlu0 %v1916_v7, %s2837_s26  ;;  %v1971_v38 = vmul.f32 %v3519_v58, %v1970_v57  ;;  %v1897_v21 = vsel %vm1795_vm7, %v1894_v37, %v1896_v43  ;;  %v1917_v59 = vrot.slane %v1910_v60, 5  ;;  %v4011_v20 = vmul.f32 %v3535_v6, %v3988_v26 }
 0x1e9   : > { %v924_v50 = vadd.f32 %v3476_v47, %v903_v17  ;;  %v1937_v47 = vsel %vm1795_vm7, %v1935_v1, %v1936_v32  ;;  %v841_v40 = vadd.f32 %v3488_v4, %v820_v63  ;;  %v1931_v4 = vmul.f32 %v3572_v25, %v3901_v51 }
 0x1ea   : > { %v975_v18 = vpop.permute.xlu0 %974  ;;  %1879 = vrot.lane.b32.xlu1 %v1876_v41, %s2836_s24  ;;  %v858_v7 = vpop.permute.xlu1 %857  ;;  %v1958_v51 = vsel %vm1795_vm7, %v1956_v11, %v1957_v34  ;;  %v1992_v1 = vmul.f32 %v3532_v19, %v3988_v26  ;;  %v938_v43 = vrot.slane %v930_v61, 2  ;;  %v1952_v63 = vmul.f32 %v3894_v14, %v3934_v13 }
 0x1eb   : > { %v942_v28 = vadd.f32 %v937_v45, %v924_v50  ;;  %v862_v41 = vadd.f32 %v858_v7, %v841_v40  ;;  %v1978_v50 = vrot.slane %v3973_v22, 5  ;;  %v4018_v45 = vstv %s3964_s7  ;;  %s4205_s7 = sld [smem:[#allocation4 + $0x2e]] }
 0x1ec   : > { %1940 = vrot.lane.b32.xlu0 %v1937_v47, %s2837_s26  ;;  %v1977_v47 = vrot.slane %v1971_v38, 5  ;;  %v1918_v11 = vsel %vm1795_vm7, %v1915_v8, %v1917_v59  ;;  %v1973_v13 = vmul.f32 %v3572_v25, %v1970_v57  ;;  %v1998_v7 = vrot.slane %v1992_v1, 5 }
 0x1ed   : > { %v959_v17 = vadd.f32 %v954_v46, %v942_v28  ;;  %v883_v37 = vadd.f32 %v3517_v35, %v862_v41  ;;  %v1938_v28 = vrot.slane %v1931_v4, 5  ;;  %v4031_v46 = vmul.f32 %v3504_v27, %v4018_v45 }
 0x1ee   : > { %v1017_v39 = vpop.permute.xlu0 %1016  ;;  %1900 = vrot.lane.b32.xlu1 %v1897_v21, %s2836_s24  ;;  %v900_v60 = vpop.permute.xlu1 %899  ;;  %v1979_v61 = vsel %vm1795_vm7, %v1977_v47, %v1978_v50  ;;  %v939_v2 = vsel %vm934_vm4, %v936_v29, %v938_v43  ;;  %v1959_v57 = vrot.slane %v1952_v63, 5  ;;  %v1980_v59 = vrot.slane %v1973_v13, 5 }
 0x1ef   : > { %v980_v54 = vadd.f32 %v975_v18, %v959_v17  ;;  %v955_v18 = vrot.slane %v948_v10, 2  ;;  %v904_v35 = vadd.f32 %v900_v60, %v883_v37  ;;  %v1999_v17 = vrot.slane %v4011_v20, 5 }
 0x1f0   : > { %1961 = vrot.lane.b32.xlu0 %v1958_v51, %s2838_s28  ;;  %v2033_v10 = vstv %s3990_s8  ;;  %v1939_v5 = vsel %vm1795_vm7, %v1936_v32, %v1938_v28  ;;  %v4055_v3 = vstv %s4001_s9  ;;  %v1960_v51 = vsel %vm1795_vm7, %v1957_v34, %v1959_v57  ;;  %s4234_s8 = sld [smem:[#allocation4 + $0x1c]]  ;;  %s4248_s9 = sld [smem:[#allocation4 + $0x5f]] }
 0x1f1   : > { %v1001_v22 = vadd.f32 %v3494_v48, %v980_v54  ;;  %v925_v8 = vadd.f32 %v3543_v23, %v904_v35  ;;  %v956_v4 = vsel %vm934_vm4, %v953_v53, %v955_v18  ;;  %v2013_v23 = vmul.f32 %v3519_v58, %v4018_v45 }
 0x1f2   : > { %v1059_v40 = vpop.permute.xlu0 %1058  ;;  %1921 = vrot.lane.b32.xlu1 %v1918_v11, %s2837_s26  ;;  %v977_v38 = vpop.permute.xlu1 %976  ;;  %v2034_v55 = vmul.f32 %v3532_v19, %v2033_v10  ;;  %v4063_v32 = vmul.f32 %v3535_v6, %v2033_v10  ;;  %v4070_v1 = vstv %s4020_s10  ;;  %v1994_v63 = vmul.f32 %v3894_v14, %v3988_v26  ;;  %s4263_s10 = sld [smem:[#allocation4 + $0x2f]] }
 0x1f3   : > { %v1022_v48 = vadd.f32 %v1017_v39, %v1001_v22  ;;  %v943_v29 = vadd.f32 %v939_v2, %v925_v8  ;;  %v2020_v39 = vrot.slane %v4031_v46, 5  ;;  %v2019_v18 = vrot.slane %v2013_v23, 5 }
 0x1f4   : > { %1982 = vrot.lane.b32.xlu0 %v1979_v61, %s2838_s28  ;;  %v4076_v60 = vstv %s4023_s11  ;;  %v1981_v49 = vsel %vm1795_vm7, %v1978_v50, %v1980_v59  ;;  %v1215_v28 = vmul.f32 %v3532_v19, %v4055_v3  ;;  %v2040_v35 = vrot.slane %v2034_v55, 5  ;;  %s4286_s11 = sld [smem:[#allocation4 + $0x4d]] }
 0x1f5   : > { %v1043_v41 = vadd.f32 %v3523_v62, %v1022_v48  ;;  %v2000_v62 = vsel %vm1795_vm7, %v1998_v7, %v1999_v17  ;;  %v960_v54 = vadd.f32 %v956_v4, %v943_v29  ;;  %v4085_v47 = vmul.f32 %v3504_v27, %v4076_v60  ;;  %v4565_v7 = vld [vmem:[#allocation10_spill] sm:$0xff] }
 0x1f6   : > { %v1101_v21 = vpop.permute.xlu0 %1100  ;;  %1942 = vrot.lane.b32.xlu1 %v1939_v5, %s2837_s26  ;;  %v1019_v37 = vpop.permute.xlu1 %1018  ;;  %v2021_v26 = vsel %vm1795_vm7, %v2019_v18, %v2020_v39  ;;  %v2041_v11 = vrot.slane %v4063_v32, 5  ;;  %v2055_v13 = vmul.f32 %v3519_v58, %v4076_v60  ;;  %v4103_v48 = vstv %s4042_s17  ;;  %s4316_s17 = sld [smem:[#allocation4 + $0x30]] }
 0x1f7   : > { %v1064_v53 = vadd.f32 %v1059_v40, %v1043_v41  ;;  %v981_v22 = vadd.f32 %v977_v38, %v960_v54  ;;  %v4098_v40 = vmul.f32 %v3535_v6, %v4055_v3  ;;  %v2001_v8 = vrot.slane %v1994_v63, 5 }
 0x1f8   : > { %2003 = vrot.lane.b32.xlu0 %v2000_v62, %s2839_s4  ;;  %v1233_v57 = vmul.f32 %v3519_v58, %v4070_v1  ;;  %v1222_v38 = vrot.slane %v1215_v28, 3  ;;  %v4112_v41 = vmul.f32 %v3504_v27, %v4070_v1  ;;  %v2062_v23 = vrot.slane %v4085_v47, 5 }
 0x1f9   : > { %v1085_v43 = vadd.f32 %v3546_v12, %v1064_v53  ;;  %v1002_v50 = vadd.f32 %v3564_v0, %v981_v22  ;;  %v2015_v0 = vmul.f32 %v3572_v25, %v4018_v45  ;;  %v2111_v45 = vmul.f32 %v3532_v19, %v4103_v48 }
 0x1fa   : > { %v1143_v34 = vpop.permute.xlu0 %1142  ;;  %1963 = vrot.lane.b32.xlu1 %v1960_v51, %s2838_s28  ;;  %v1061_v61 = vpop.permute.xlu1 %1060  ;;  %v4123_v59 = vmul.f32 %v3535_v6, %v4103_v48  ;;  %v1223_v62 = vrot.slane %v4098_v40, 3  ;;  %v2036_v55 = vmul.f32 %v3894_v14, %v2033_v10  ;;  %v2061_v54 = vrot.slane %v2055_v13, 5 }
 0x1fb   : > { %v1106_v12 = vadd.f32 %v1101_v21, %v1085_v43  ;;  %v1023_v4 = vadd.f32 %v1019_v37, %v1002_v50  ;;  %v2042_v21 = vsel %vm1795_vm7, %v2040_v35, %v2041_v11  ;;  %v2002_v43 = vsel %vm1795_vm7, %v1999_v17, %v2001_v8 }
 0x1fc   : > { %2024 = vrot.lane.b32.xlu0 %v2021_v26, %s2839_s4  ;;  %v2022_v63 = vrot.slane %v2015_v0, 5  ;;  %v4134_v18 = vstv %s4078_s20  ;;  %v2117_v20 = vrot.slane %v2111_v45, 6  ;;  %v2118_v17 = vrot.slane %v4123_v59, 6  ;;  %s2667_s20 = smul.u32 48, %s2936_s30 }
 0x1fd   : > { %v1127_v2 = vadd.f32 %v4565_v7, %v1106_v12  ;;  %v1044_v53 = vadd.f32 %v3585_v33, %v1023_v4  ;;  %v1239_v33 = vrot.slane %v1233_v57, 3  ;;  %v4141_v10 = vmul.f32 %v3504_v27, %v4134_v18 }
 0x1fe   : > { %v1185_v5 = vpop.permute.xlu0 %1184  ;;  %1984 = vrot.lane.b32.xlu1 %v1981_v49, %s2838_s28  ;;  %v1103_v51 = vpop.permute.xlu1 %1102  ;;  %v4148_v28 = vstv %s4092_s25  ;;  %v1224_v26 = vsel %vm1221_vm5, %v1222_v38, %v1223_v62  ;;  %v1240_v35 = vrot.slane %v4112_v41, 3  ;;  %v2043_v50 = vrot.slane %v2036_v55, 5  ;;  %s190_s25 = sand.u32 1, %s2822_s13  }
 0x1ff   : > { %v1148_v29 = vadd.f32 %v1143_v34, %v1127_v2  ;;  %v1065_v22 = vadd.f32 %v1061_v61, %v1044_v53  ;;  %v2063_v34 = vsel %vm1795_vm7, %v2061_v54, %v2062_v23  ;;  %v2023_v7 = vsel %vm1795_vm7, %v2020_v39, %v2022_v63 }
 0x200   : > { %2045 = vrot.lane.b32.xlu0 %v2042_v21, %s2840_s6  ;;  %v2132_v2 = vmul.f32 %v3519_v58, %v4134_v18  ;;  %v2153_v0 = vmul.f32 %v3532_v19, %v4148_v28  ;;  %v4170_v4 = vmul.f32 %v3535_v6, %v4148_v28  ;;  %v1217_v46 = vmul.f32 %v3894_v14, %v4055_v3 }
 0x201   : > { %v1169_v37 = vadd.f32 %v3590_v30, %v1148_v29  ;;  %v1086_v12 = vadd.f32 %v3608_v9, %v1065_v22  ;;  %v2057_v9 = vmul.f32 %v3572_v25, %v4076_v60  ;;  %v2119_v39 = vsel %vm2082_vm8, %v2117_v20, %v2118_v17 }
 0x202   : > { %v1262_v49 = vpop.permute.xlu0 %1261  ;;  %2005 = vrot.lane.b32.xlu1 %v2002_v43, %s2839_s4  ;;  %v1145_v13 = vpop.permute.xlu1 %1144  ;;  %v2139_v60 = vrot.slane %v4141_v10, 6  ;;  %v1241_v41 = vsel %vm1221_vm5, %v1239_v33, %v1240_v35  ;;  %v2044_v29 = vsel %vm1795_vm7, %v2041_v11, %v2043_v50  ;;  %v2113_v53 = vmul.f32 %v3894_v14, %v4103_v48 }
 0x203   : > { %v1190_v30 = vadd.f32 %v1185_v5, %v1169_v37  ;;  %v1107_v8 = vadd.f32 %v1103_v51, %v1086_v12  ;;  %v1235_v5 = vmul.f32 %v3572_v25, %v4070_v1  ;;  %v2064_v45 = vrot.slane %v2057_v9, 5 }
 0x204   : > { %2066 = vrot.lane.b32.xlu0 %v2063_v34, %s2840_s6  ;;  %v2138_v55 = vrot.slane %v2132_v2, 6  ;;  %v2159_v51 = vrot.slane %v2153_v0, 6  ;;  %v2160_v1 = vrot.slane %v4170_v4, 6  ;;  %v2173_v32 = vstv %s4143_s27 }
 0x205   : > { %v1211_v61 = vadd.f32 %v3612_v42, %v1190_v30  ;;  %v1128_v38 = vadd.f32 %v3627_v24, %v1107_v8  ;;  %v4198_v43 = vmul.f32 %v3504_v27, %v2173_v32  ;;  %v1225_v63 = vrot.slane %v1217_v46, 3 }
 0x206   : > { %v1304_v57 = vpop.permute.xlu0 %1303  ;;  %2026 = vrot.lane.b32.xlu1 %v2023_v7, %s2839_s4  ;;  %v1187_v21 = vpop.permute.xlu1 %1186  ;;  %v2140_v11 = vsel %vm2082_vm8, %v2138_v55, %v2139_v60  ;;  %v1242_v22 = vrot.slane %v1235_v5, 3  ;;  %v4203_v33 = vstv %s4156_s29  ;;  %v2065_v30 = vsel %vm1795_vm7, %v2062_v23, %v2064_v45  ;;  %v4566_v7 = vld [vmem:[#allocation11_spill] sm:$0xff]  ;;  %v4567_v5 = vld [vmem:[#allocation12_spill] sm:$0xff] }
 0x207   : > { %v1229_v42 = vadd.f32 %v1224_v26, %v1211_v61  ;;  %v1149_v24 = vadd.f32 %v1145_v13, %v1128_v38  ;;  %v2174_v27 = vmul.f32 %v3519_v58, %v2173_v32  ;;  %v2120_v12 = vrot.slane %v2113_v53, 6 }
 0x208   : > { %2122 = vrot.lane.b32.xlu0 %v2119_v39, %s2835_s19  ;;  %v2134_v26 = vmul.f32 %v3572_v25, %v4134_v18  ;;  %v2161_v50 = vsel %vm2082_vm8, %v2159_v51, %v2160_v1  ;;  %v2195_v47 = vmul.f32 %v3532_v19, %v4203_v33  ;;  %v4223_v58 = vmul.f32 %v3535_v6, %v4203_v33  ;;  %v4256_v39 = vld [vmem:[#allocation3] sm:$0xff] }
 0x209   : > { %v1246_v3 = vadd.f32 %v1241_v41, %v1229_v42  ;;  %v1170_v48 = vadd.f32 %v3652_v16, %v1149_v24  ;;  %v1226_v23 = vsel %vm1221_vm5, %v1223_v62, %v1225_v63  ;;  %v1243_v18 = vsel %vm1221_vm5, %v1240_v35, %v1242_v22  ;;  %v4569_v22 = vld [vmem:[#allocation14_spill] sm:$0xff] }
 0x20a   : > { %v1346_v54 = vpop.permute.xlu0 %1345  ;;  %2047 = vrot.lane.b32.xlu1 %v2044_v29, %s2840_s6  ;;  %v1264_v34 = vpop.permute.xlu1 %1263  ;;  %v2155_v19 = vmul.f32 %v3894_v14, %v4148_v28  ;;  %v2180_v8 = vrot.slane %v2174_v27, 6  ;;  %v4237_v6 = vstv %s4189_s5  ;;  %v2121_v62 = vsel %vm2082_vm8, %v2118_v17, %v2120_v12  ;;  %s202_s5 = scalar_lea.vmem %s4531_s1, %s2667_s20 }
 0x20b   : > { %v1267_v37 = vadd.f32 %v1262_v49, %v1246_v3  ;;  %v1191_v20 = vadd.f32 %v1187_v21, %v1170_v48  ;;  %v2201_v42 = vrot.slane %v2195_v47, 6  ;;  %v2202_v17 = vrot.slane %v4223_v58, 6 }
 0x20c   : > { %2143 = vrot.lane.b32.xlu0 %v2140_v11, %s2835_s19  ;;  %v2216_v38 = vmul.f32 %v4256_v39, %v4237_v6  ;;  %v4261_v41 = vstv %s4205_s7  ;;  %v2162_v21 = vrot.slane %v2155_v19, 6  ;;  %v2176_v24 = vmul.f32 %v3572_v25, %v2173_v32  ;;  %v4275_v11 = vld [vmem:[#allocation2] sm:$0xff]  ;;  %v4568_v32 = vld [vmem:[#allocation13_spill] sm:$0xff]  ;;  %s2666_s7 = smul.u32 48, %s190_s25 }
 0x20d   : > { %v1288_v49 = vadd.f32 %v3630_v52, %v1267_v37  ;;  %v2181_v52 = vrot.slane %v4198_v43, 6  ;;  %v1212_v61 = vadd.f32 %v3676_v15, %v1191_v20  ;;  %v2141_v15 = vrot.slane %v2134_v26, 6 }
 0x20e   : > { %v1388_v16 = vpop.permute.xlu0 %1387  ;;  %2068 = vrot.lane.b32.xlu1 %v2065_v30, %s2840_s6  ;;  %v1306_v2 = vpop.permute.xlu1 %1305  ;;  %v2203_v37 = vsel %vm2082_vm8, %v2201_v42, %v2202_v17  ;;  %v2237_v10 = vmul.f32 %v4275_v11, %v4261_v41  ;;  %v2222_v63 = vrot.slane %v2216_v38, 6  ;;  %v2163_v30 = vsel %vm2082_vm8, %v2160_v1, %v2162_v21  ;;  %v4571_v42 = vld [vmem:[#allocation16_spill] sm:$0xff]  ;;  %s192_s30 = scalar_lea.vmem [#allocation7], %s2666_s7 }
 0x20f   : > { %v1309_v13 = vadd.f32 %v1304_v57, %v1288_v49  ;;  %v1230_v40 = vadd.f32 %v1226_v23, %v1212_v61  ;;  %v4242_v57 = vld [vmem:[#allocation3 + $0x8] sm:$0xff]  ;;  %v2182_v59 = vsel %vm2082_vm8, %v2180_v8, %v2181_v52  ;;  %v2142_v53 = vsel %vm2082_vm8, %v2139_v60, %v2141_v15  ;;  %v4279_v60 = vld [vmem:[#allocation2 + $0x8] sm:$0xff] }
 0x210   : > { %2164 = vrot.lane.b32.xlu0 %v2161_v50, %s2836_s24  ;;  %v4246_v0 = vmul.f32 %v4242_v57, %v4237_v6  ;;  %v4283_v25 = vmul.f32 %v4279_v60, %v4261_v41  ;;  %v4294_v27 = vstv %s4234_s8  ;;  %v2197_v20 = vmul.f32 %v3894_v14, %v4203_v33  ;;  %v4570_v33 = vld [vmem:[#allocation15_spill] sm:$0xff]  ;;  %s2668_s8 = smul.u32 768, %s2885_s16  ;;  %s4489_s16 = scalar_lea.sflag [#allocation5], %s190_s25 }
 0x211   : > { %v1330_v9 = vadd.f32 %v4566_v7, %v1309_v13  ;;  %v1247_v46 = vadd.f32 %v1243_v18, %v1230_v40  ;;  %v2257_v13 = vstv %s4248_s9  ;;  %v2243_v1 = vrot.slane %v2237_v10, 6  ;;  %s2406_s9 = sshll.u32 %s192_s30, 4  ;;  %s4482_s9 = int_to_ptr.vmem [resolvable:$true] %s2406_s9 }
 0x212   : > { %v1430_v35 = vpop.permute.xlu0 %1429  ;;  %2124 = vrot.lane.b32.xlu1 %v2121_v62, %s2835_s19  ;;  %v1348_v3 = vpop.permute.xlu1 %1347  ;;  %v2244_v47 = vrot.slane %v4283_v25, 6  ;;  %v4309_v23 = vmul.f32 %v4242_v57, %v2257_v13  ;;  %v4314_v61 = vstv %s4263_s10  ;;  %v2204_v19 = vrot.slane %v2197_v20, 6 }
 0x213   : > { %v1351_v28 = vadd.f32 %v1346_v54, %v1330_v9  ;;  %v1268_v45 = vadd.f32 %v1264_v34, %v1247_v46  ;;  %v2223_v54 = vrot.slane %v4246_v0, 6  ;;  %v2258_v8 = vmul.f32 %v4256_v39, %v2257_v13 }
 0x214   : > { %2185 = vrot.lane.b32.xlu0 %v2182_v59, %s2836_s24  ;;  %v2265_v59 = vrot.slane %v4309_v23, 6  ;;  %v2279_v43 = vmul.f32 %v4275_v11, %v4314_v61  ;;  %v4348_v38 = vstv %s4286_s11  ;;  %v2205_v21 = vsel %vm2082_vm8, %v2202_v17, %v2204_v19 }
 0x215   : > { %v1372_v29 = vadd.f32 %v4567_v5, %v1351_v28  ;;  %v1289_v48 = vadd.f32 %v4568_v32, %v1268_v45  ;;  %v2224_v50 = vsel %vm2082_vm8, %v2222_v63, %v2223_v54  ;;  %v2245_v28 = vsel %vm2082_vm8, %v2243_v1, %v2244_v47 }
 0x216   : > { %v1472_v55 = vpop.permute.xlu0 %1471  ;;  %2145 = vrot.lane.b32.xlu1 %v2142_v53, %s2835_s19  ;;  %v1390_v34 = vpop.permute.xlu1 %1389  ;;  %s4304_s19 = sld [smem:[#allocation4 + $0x60]]  ;;  %v2264_v45 = vrot.slane %v2258_v8, 6  ;;  %v1504_v8 = vmul.f32 %v3894_v14, %v4294_v27 }
 0x217   : > { %v1393_v51 = vadd.f32 %v1388_v16, %v1372_v29  ;;  %v1310_v12 = vadd.f32 %v1306_v2, %v1289_v48  ;;  %v2183_v16 = vrot.slane %v2176_v24, 6  ;;  %v1502_v2 = vmul.f32 %v4275_v11, %v4294_v27 }
 0x218   : > { %2206 = vrot.lane.b32.xlu0 %v2203_v37, %s2837_s26  ;;  %v2239_v37 = vmul.f32 %v3894_v14, %v4261_v41  ;;  %v2266_v58 = vsel %vm2082_vm8, %v2264_v45, %v2265_v59  ;;  %v4373_v41 = vmul.f32 %v4242_v57, %v4348_v38 }
 0x219   : > { %v1414_v49 = vadd.f32 %v4569_v22, %v1393_v51  ;;  %v1331_v18 = vadd.f32 %v4570_v33, %v1310_v12  ;;  %v2184_v62 = vsel %vm2082_vm8, %v2181_v52, %v2183_v16  ;;  %v4340_v52 = vmul.f32 %v4279_v60, %v4314_v61 }
 0x21a   : > { %v4298_v26 = vpop.permute.xlu0 %1548  ;;  %2166 = vrot.lane.b32.xlu1 %v2163_v30, %s2836_s24  ;;  %v1432_v9 = vpop.permute.xlu1 %1431  ;;  %v1509_v5 = vrot.slane %v1502_v2, 4  ;;  %v2320_v22 = vstv %s4316_s17  ;;  %v1527_v2 = vrot.slane %v4373_v41, 4  ;;  %s2764_s17 = scalar_lea.vmem %s4482_s9, 768 }
 0x21b   : > { %v1435_v4 = vadd.f32 %v1430_v35, %v1414_v49  ;;  %v1352_v40 = vadd.f32 %v1348_v3, %v1331_v18  ;;  %v4327_v35 = vld [vmem:[#allocation3 + $0x10] sm:$0x3f]  ;;  %v2286_v17 = vrot.slane %v4340_v52, 6  ;;  %v1520_v49 = vmul.f32 %v4256_v39, %v4348_v38  ;;  %p2765_p9 = scmp.ne.s32.totalorder %s4482_s9, %s2764_s17 }
 0x21c   : > { %2227 = vrot.lane.b32.xlu0 %v2224_v50, %s2837_s26  ;;  %v2299_v10 = vstv %s4304_s19  ;;  %v2246_v50 = vrot.slane %v2239_v37, 6  ;;  %v2260_v1 = vmul.f32 %v4327_v35, %v2257_v13  ;;  %v1512_v37 = vrot.slane %v1504_v8, 4  ;;  %s4480_s19 = scalar_lea.hbm %s4533_s3, %s2668_s8 }
 0x21d   : > { %v1456_v7 = vadd.f32 %v3742_v56, %v1435_v4  ;;  %v2218_v56 = vmul.f32 %v4327_v35, %v4237_v6  ;;  %v1373_v46 = vadd.f32 %v4571_v42, %v1352_v40  ;;  %v4345_v6 = vmul.f32 %v4279_v60, %v4294_v27  ;;  %p2766_p10 = pnand %p2765_p9, %p2902_p5 }
 0x21e   : > { %v4325_v15 = vpop.permute.xlu0 %1569  ;;  %2187 = vrot.lane.b32.xlu1 %v2184_v62, %s2836_s24  ;;  %v1474_v3 = vpop.permute.xlu1 %1473  ;;  %s4359_s24 = sld [smem:[#allocation4 + $0x61]]  ;;  %v4367_v32 = vmul.f32 %v4242_v57, %v2299_v10  ;;  %v2300_v12 = vmul.f32 %v4256_v39, %v2299_v10  ;;  %v1526_v13 = vrot.slane %v1520_v49, 4 }
 0x21f   : > { %v1477_v29 = vadd.f32 %v1472_v55, %v1456_v7  ;;  %v1394_v53 = vadd.f32 %v1390_v34, %v1373_v46  ;;  %v2225_v24 = vrot.slane %v2218_v56, 6  ;;  %v2285_v55 = vrot.slane %v2279_v43, 6  ;;  %v4572_v34 = vld [vmem:[#allocation17_spill] sm:$0xff]  ;;  %p2767_p12 = pneg %p2766_p10 }
 0x220   : > { %2248 = vrot.lane.b32.xlu0 %v2245_v28, %s2838_s28  ;;  %v1510_v63 = vrot.slane %v4345_v6, 4  ;;  %v2307_v18 = vrot.slane %v4367_v32, 6  ;;  %v2321_v7 = vmul.f32 %v4275_v11, %v2320_v22  ;;  %v2306_v62 = vrot.slane %v2300_v12, 6 }
 0x221   : > { %v1415_v48 = vadd.f32 %v3795_v36, %v1394_v53  ;;  %v1498_v30 = vadd.f32 %v4572_v34, %v1477_v29  ;;  %v2226_v36 = vsel %vm2082_vm8, %v2223_v54, %v2225_v24  ;;  %v2287_v33 = vsel %vm2082_vm8, %v2285_v55, %v2286_v17 }
 0x222   : > { %v4354_v51 = vpop.permute.xlu0 %1590  ;;  %2208 = vrot.lane.b32.xlu1 %v2205_v21, %s2837_s26  ;;  %v4380_v20 = vpop.permute.xlu1 %1550  ;;  %v1511_v54 = vsel %vm1508_vm6, %v1509_v5, %v1510_v63  ;;  %v2247_v56 = vsel %vm2082_vm8, %v2244_v47, %v2246_v50  ;;  %v2267_v28 = vrot.slane %v2260_v1, 6  ;;  %v2281_v43 = vmul.f32 %v3894_v14, %v4314_v61 }
 0x223   : > { %v1436_v16 = vadd.f32 %v1432_v9, %v1415_v48  ;;  %v4394_v9 = vmul.f32 %v4279_v60, %v2320_v22  ;;  %v1516_v19 = vadd.f32 %v1511_v54, %v1498_v30  ;;  %v2308_v42 = vsel %vm2082_vm8, %v2306_v62, %v2307_v18 }
 0x224   : > { %2269 = vrot.lane.b32.xlu0 %v2266_v58, %s2838_s28  ;;  %v2341_v52 = vstv %s4359_s24  ;;  %v2327_v46 = vrot.slane %v2321_v7, 6  ;;  %v1528_v5 = vsel %vm1508_vm6, %v1526_v13, %v1527_v2  ;;  %v2268_v61 = vsel %vm2082_vm8, %v2265_v59, %v2267_v28  ;;  %s2841_s24 = smov [#allocation7]  }
 0x225   : > { %v1457_v0 = vadd.f32 %v3816_v44, %v1436_v16  ;;  %v2328_v27 = vrot.slane %v4394_v9, 6  ;;  %v2343_v6 = vmul.f32 %v4242_v57, %v2341_v52  ;;  %v1533_v47 = vadd.f32 %v1528_v5, %v1516_v19 }
 0x226   : > { %v4386_v4 = vpop.permute.xlu0 %1611  ;;  %2229 = vrot.lane.b32.xlu1 %v2226_v36, %s2837_s26  ;;  %v4402_v40 = vpop.permute.xlu1 %1571  ;;  %v2342_v21 = vmul.f32 %v4256_v39, %v2341_v52  ;;  %v2288_v45 = vrot.slane %v2281_v43, 6  ;;  %v2302_v24 = vmul.f32 %v4327_v35, %v2299_v10  ;;  %v1522_v58 = vmul.f32 %v4327_v35, %v4348_v38  ;;  %s2632_s26 = sld [smem:[#allocation4 + $0x23]] }
 0x227   : > { %v1478_v25 = vadd.f32 %v1474_v3, %v1457_v0  ;;  %v2329_v3 = vsel %vm2082_vm8, %v2327_v46, %v2328_v27  ;;  %v2349_v55 = vrot.slane %v2343_v6, 6  ;;  %v1554_v23 = vadd.f32 %v4298_v26, %v1533_v47 }
 0x228   : > { %2290 = vrot.lane.b32.xlu0 %v2287_v33, %s2839_s4  ;;  %v2348_v48 = vrot.slane %v2342_v21, 6  ;;  %v2289_v41 = vsel %vm2082_vm8, %v2286_v17, %v2288_v45  ;;  %v2309_v10 = vrot.slane %v2302_v24, 6  ;;  %v2323_v34 = vmul.f32 %v3894_v14, %v2320_v22 }
 0x229   : > { %v1499_v32 = vadd.f32 %v3848_v31, %v1478_v25  ;;  %v1513_v38 = vsel %vm1508_vm6, %v1510_v63, %v1512_v37  ;;  %v1529_v30 = vrot.slane %v1522_v58, 4  ;;  %v1575_v26 = vadd.f32 %v4325_v15, %v1554_v23 }
 0x22a   : > { %v1633_v44 = vpop.permute.xlu0 %1632  ;;  %2250 = vrot.lane.b32.xlu1 %v2247_v56, %s2838_s28  ;;  %v1593_v29 = vpop.permute.xlu1 %1592  ;;  %v2350_v12 = vsel %vm2082_vm8, %v2348_v48, %v2349_v55  ;;  %v2310_v36 = vsel %vm2082_vm8, %v2307_v18, %v2309_v10  ;;  %v2330_v17 = vrot.slane %v2323_v34, 6  ;;  %v2344_v1 = vmul.f32 %v4327_v35, %v2341_v52 }
 0x22b   : > { %v1517_v31 = vadd.f32 %v1513_v38, %v1499_v32  ;;  %v1530_v22 = vsel %vm1508_vm6, %v1527_v2, %v1529_v30  ;;  %v1596_v33 = vadd.f32 %v4354_v51, %v1575_v26 }
 0x22c   : > { %2311 = vrot.lane.b32.xlu0 %v2308_v42, %s2839_s4  ;;  %v2331_v9 = vsel %vm2082_vm8, %v2328_v27, %v2330_v17  ;;  %v2351_v0 = vrot.slane %v2344_v1, 6  ;;  %v1788_v5 = vstv %s2632_s26  ;;  %s2768_s26 = sshll.u32 %s2841_s24, 4  ;;  %s2769_s26 = int_to_ptr.vmem [resolvable:$false] %s2768_s26 }
 0x22d   : > { %v1534_v63 = vadd.f32 %v1530_v22, %v1517_v31  ;;  %v1617_v18 = vadd.f32 %v4386_v4, %v1596_v33  ;;  %v1791_v26 = vmul.f32 %v3894_v14, %v1788_v5  ;;  %p2771_p13 = scmp.lt.s32.totalorder %s4482_s9, %s2769_s26 }
 0x22e   : > { %v1654_v53 = vpop.permute.xlu0 %1653  ;;  %2271 = vrot.lane.b32.xlu1 %v2268_v61, %s2838_s28  ;;  %v1614_v59 = vpop.permute.xlu1 %1613  ;;  %v2352_v19 = vsel %vm2082_vm8, %v2349_v55, %v2351_v0  ;;  %s2633_s28 = sld [smem:[#allocation4 + $0x54]] }
 0x22f   : > { %v1555_v15 = vadd.f32 %v4380_v20, %v1534_v63  ;;  %v1638_v51 = vadd.f32 %v1633_v44, %v1617_v18  ;;  %v1790_v44 = vmul.f32 %v4279_v60, %v1788_v5  ;;  %v1799_v63 = vrot.slane %v1791_v26, 5 }
 0x230   : > { %2332 = vrot.lane.b32.xlu0 %v2329_v3, %s2840_s6 }
 0x231   : > { %v1576_v8 = vadd.f32 %v4402_v40, %v1555_v15  ;;  %v1659_v43 = vadd.f32 %v1654_v53, %v1638_v51  ;;  %v1789_v40 = vmul.f32 %v4275_v11, %v1788_v5  ;;  %v1797_v3 = vrot.slane %v1790_v44, 5 }
 0x232   : > { %v1675_v49 = vpop.permute.xlu0 %1674  ;;  %2292 = vrot.lane.b32.xlu1 %v2289_v41, %s2839_s4  ;;  %v1635_v16 = vpop.permute.xlu1 %1634 }
 0x233   : > { %v1597_v28 = vadd.f32 %v1593_v29, %v1576_v8  ;;  %v1680_v20 = vadd.f32 %v1675_v49, %v1659_v43  ;;  %v1796_v58 = vrot.slane %v1789_v40, 5  ;;  %v1800_v15 = vsel %vm1795_vm7, %v1797_v3, %v1799_v63 }
 0x234   : > { %2353 = vrot.lane.b32.xlu0 %v2350_v12, %s2840_s6  ;;  %v1806_v37 = vstv %s2633_s28  ;;  %s2770_s28 = scalar_lea.vmem %s2769_s26, 1536 }
 0x235   : > { %v1618_v46 = vadd.f32 %v1614_v59, %v1597_v28  ;;  %v1808_v55 = vmul.f32 %v4242_v57, %v1806_v37  ;;  %v1807_v48 = vmul.f32 %v4256_v39, %v1806_v37  ;;  %v1798_v49 = vsel %vm1795_vm7, %v1796_v58, %v1797_v3  ;;  %p2772_p0 = scmp.lt.s32.totalorder %s2770_s28, %s2764_s17 }
 0x236   : > { %v1696_v50 = vpop.permute.xlu0 %1695  ;;  %2313 = vrot.lane.b32.xlu1 %v2310_v36, %s2839_s4  ;;  %v1656_v7 = vpop.permute.xlu1 %1655  ;;  %v1809_v33 = vmul.f32 %v4327_v35, %v1806_v37  ;;  %s2646_s4 = sld [smem:[#allocation4 + $0x2a]] }
 0x237   : > { %v1701_v6 = vadd.f32 %v1696_v50, %v1680_v20  ;;  %v1639_v25 = vadd.f32 %v1635_v16, %v1618_v46  ;;  %v1814_v34 = vrot.slane %v1808_v55, 5  ;;  %v1813_v31 = vrot.slane %v1807_v48, 5  ;;  %p2773_p1 = por %p2772_p0, %p2771_p13 }
 0x238   : > { %v1816_v18 = vrot.slane %v1809_v33, 5 }
 0x239   : > { %v1660_v29 = vadd.f32 %v1656_v7, %v1639_v25  ;;  %v1815_v17 = vsel %vm1795_vm7, %v1813_v31, %v1814_v34  ;;  %p2774_p2 = pnand %p2773_p1, %p2767_p12 }
 0x23a   : > { %v1717_v54 = vpop.permute.xlu0 %1716  ;;  %2334 = vrot.lane.b32.xlu1 %v2331_v9, %s2840_s6  ;;  %v1677_v13 = vpop.permute.xlu1 %1676  ;;  %v1817_v8 = vsel %vm1795_vm7, %v1814_v34, %v1816_v18 }
 0x23b   : > { %v1722_v47 = vadd.f32 %v1717_v54, %v1701_v6  ;;  %v1681_v59 = vadd.f32 %v1677_v13, %v1660_v29 }
 0x23c   : > { %v2075_v5 = vstv %s2646_s4 }
 0x23d   : > { %v2076_v44 = vmul.f32 %v4275_v11, %v2075_v5 }
 0x23e   : > { %v1738_v2 = vpop.permute.xlu0 %1737  ;;  %2355 = vrot.lane.b32.xlu1 %v2352_v19, %s2840_s6  ;;  %v1698_v62 = vpop.permute.xlu1 %1697  ;;  %s2647_s6 = sld [smem:[#allocation4 + $0x5b]] }
 0x23f   : > { %v1743_v45 = vadd.f32 %v1738_v2, %v1722_v47  ;;  %v1702_v10 = vadd.f32 %v1698_v62, %v1681_v59 }
 0x242   : > { %v1759_v56 = vpop.permute.xlu0 %1758 }
 0x243   : > { %v1764_v53 = vadd.f32 %v1759_v56, %v1743_v45 }
 0x244   : > { %v1719_v52 = vpop.permute.xlu1 %1718 }
 0x245   : > { %v1723_v12 = vadd.f32 %v1719_v52, %v1702_v10 }
 0x246   : > { %v1780_v42 = vpop.permute.xlu0 %1779 }
 0x247   : > { %v1785_v23 = vadd.f32 %v1780_v42, %v1764_v53  ;;  %v2093_v53 = vstv %s2647_s6 }
 0x248   : > { %v1740_v27 = vpop.permute.xlu1 %1739  ;;  %v2095_v58 = vmul.f32 %v4242_v57, %v2093_v53  ;;  %v2094_v59 = vmul.f32 %v4256_v39, %v2093_v53 }
 0x249   : > { %v1803_v30 = vadd.f32 %v1798_v49, %v1785_v23  ;;  %v1744_v36 = vadd.f32 %v1740_v27, %v1723_v12 }
 0x24a   : > { %v1836_v4 = vpop.permute.xlu0 %1835  ;;  %v2101_v11 = vrot.slane %v2095_v58, 6 }
 0x24b   : > { %v1820_v1 = vadd.f32 %v1815_v17, %v1803_v30  ;;  %v2100_v30 = vrot.slane %v2094_v59, 6 }
 0x24c   : > { %v1761_v21 = vpop.permute.xlu1 %1760 }
 0x24d   : > { %v1765_v22 = vadd.f32 %v1761_v21, %v1744_v36  ;;  %v1841_v54 = vadd.f32 %v1836_v4, %v1820_v1  ;;  %v2102_v57 = vsel %vm2082_vm8, %v2100_v30, %v2101_v11  ;;  %v2748_v36 = vld [vmem:[#allocation2 + $0x10] sm:$0x3f] }
 0x24e   : > { %v1857_v61 = vpop.permute.xlu0 %1856  ;;  %v2078_v17 = vmul.f32 %v2748_v36, %v2075_v5 }
 0x24f   : > { %v1862_v2 = vadd.f32 %v1857_v61, %v1841_v54  ;;  %v2077_v61 = vmul.f32 %v4279_v60, %v2075_v5 }
 0x250   : > { %v1782_v24 = vpop.permute.xlu1 %1781 }
 0x251   : > { %v1786_v9 = vadd.f32 %v1782_v24, %v1765_v22  ;;  %v2084_v23 = vrot.slane %v2077_v61, 6  ;;  %v2096_v22 = vmul.f32 %v4327_v35, %v2093_v53 }
 0x252   : > { %v1878_v32 = vpop.permute.xlu0 %1877 }
 0x253   : > { %v1804_v19 = vadd.f32 %v1800_v15, %v1786_v9  ;;  %v1883_v51 = vadd.f32 %v1878_v32, %v1862_v2  ;;  %v2083_v32 = vrot.slane %v2076_v44, 6  ;;  %v2103_v54 = vrot.slane %v2096_v22, 6  ;;  %v2375_v22 = vld [vmem:[%s202_s5 + $0x10] sm:$0xff] }
 0x254   : > { %v1838_v41 = vpop.permute.xlu1 %1837 }
 0x255   : > { %v1821_v56 = vadd.f32 %v1817_v8, %v1804_v19 }
 0x256   : > { %v1899_v38 = vpop.permute.xlu0 %1898 }
 0x257   : > { %v1904_v43 = vadd.f32 %v1899_v38, %v1883_v51  ;;  %v1842_v46 = vadd.f32 %v1838_v41, %v1821_v56  ;;  %v2085_v38 = vsel %vm2082_vm8, %v2083_v32, %v2084_v23 }
 0x258   : > { %v1859_v16 = vpop.permute.xlu1 %1858 }
 0x259   : > { %v1863_v25 = vadd.f32 %v1859_v16, %v1842_v46 }
 0x25a   : > { %v1920_v50 = vpop.permute.xlu0 %1919 }
 0x25b   : > { %v1925_v52 = vadd.f32 %v1920_v50, %v1904_v43 }
 0x25c   : > { %v1880_v7 = vpop.permute.xlu1 %1879 }
 0x25d   : > { %v1884_v40 = vadd.f32 %v1880_v7, %v1863_v25  ;;  %v2086_v7 = vrot.slane %v2078_v17, 6 }
 0x25e   : > { %v1941_v0 = vpop.permute.xlu0 %1940 }
 0x25f   : > { %v1946_v27 = vadd.f32 %v1941_v0, %v1925_v52 }
 0x260   : > { %v1901_v13 = vpop.permute.xlu1 %1900 }
 0x261   : > { %v1905_v24 = vadd.f32 %v1901_v13, %v1884_v40  ;;  %v2087_v13 = vsel %vm2082_vm8, %v2084_v23, %v2086_v7 }
 0x262   : > { %v1962_v14 = vpop.permute.xlu0 %1961 }
 0x263   : > { %v1967_v4 = vadd.f32 %v1962_v14, %v1946_v27  ;;  %v2104_v14 = vsel %vm2082_vm8, %v2101_v11, %v2103_v54 }
 0x264   : > { %v1922_v62 = vpop.permute.xlu1 %1921 }
 0x265   : > { %v1926_v55 = vadd.f32 %v1922_v62, %v1905_v24 }
 0x266   : > { %v1983_v28 = vpop.permute.xlu0 %1982 }
 0x267   : > { %v1988_v21 = vadd.f32 %v1983_v28, %v1967_v4 }
 0x268   : > { %v1943_v42 = vpop.permute.xlu1 %1942 }
 0x269   : > { %v1947_v10 = vadd.f32 %v1943_v42, %v1926_v55 }
 0x26a   : > { %v2004_v20 = vpop.permute.xlu0 %2003 }
 0x26b   : > { %v2009_v29 = vadd.f32 %v2004_v20, %v1988_v21 }
 0x26c   : > { %v1964_v6 = vpop.permute.xlu1 %1963 }
 0x26d   : > { %v1968_v60 = vadd.f32 %v1964_v6, %v1947_v10 }
 0x26e   : > { %v2025_v47 = vpop.permute.xlu0 %2024 }
 0x26f   : > { %v2030_v3 = vadd.f32 %v2025_v47, %v2009_v29 }
 0x270   : > { %v1985_v45 = vpop.permute.xlu1 %1984 }
 0x271   : > { %v1989_v26 = vadd.f32 %v1985_v45, %v1968_v60 }
 0x272   : > { %v2046_v37 = vpop.permute.xlu0 %2045 }
 0x273   : > { %v2051_v41 = vadd.f32 %v2046_v37, %v2030_v3 }
 0x274   : > { %v2006_v48 = vpop.permute.xlu1 %2005 }
 0x275   : > { %v2010_v39 = vadd.f32 %v2006_v48, %v1989_v26 }
 0x276   : > { %v2067_v49 = vpop.permute.xlu0 %2066 }
 0x277   : > { %v2072_v34 = vadd.f32 %v2067_v49, %v2051_v41 }
 0x278   : > { %v2027_v12 = vpop.permute.xlu1 %2026 }
 0x279   : > { %v2090_v31 = vadd.f32 %v2085_v38, %v2072_v34  ;;  %v2031_v63 = vadd.f32 %v2027_v12, %v2010_v39 }
 0x27a   : > { %v2123_v16 = vpop.permute.xlu0 %2122 }
 0x27b   : > { %v2107_v50 = vadd.f32 %v2102_v57, %v2090_v31 }
 0x27c   : > { %v2048_v1 = vpop.permute.xlu1 %2047 }
 0x27d   : > { %v2052_v9 = vadd.f32 %v2048_v1, %v2031_v63  ;;  %v2128_v43 = vadd.f32 %v2123_v16, %v2107_v50  ;;  %v2373_v1 = vld [vmem:[%s202_s5] sm:$0xff] }
 0x27e   : > { %v2144_v33 = vpop.permute.xlu0 %2143  ;;  %v2377_v63 = vld [vmem:[%s202_s5 + $0x20] sm:$0xff] }
 0x27f   : > { %v2149_v46 = vadd.f32 %v2144_v33, %v2128_v43 }
 0x280   : > { %v2069_v0 = vpop.permute.xlu1 %2068 }
 0x281   : > { %v2073_v15 = vadd.f32 %v2069_v0, %v2052_v9 }
 0x282   : > { %v2165_v18 = vpop.permute.xlu0 %2164 }
 0x283   : > { %v2091_v19 = vadd.f32 %v2087_v13, %v2073_v15  ;;  %v2170_v20 = vadd.f32 %v2165_v18, %v2149_v46  ;;  %v2374_v15 = vld [vmem:[%s202_s5 + $0x8] sm:$0xff]  ;;  %v2376_v18 = vld [vmem:[%s202_s5 + $0x18] sm:$0xff] }
 0x284   : > { %v2125_v2 = vpop.permute.xlu1 %2124  ;;  %v2378_v13 = vld [vmem:[%s202_s5 + $0x28] sm:$0xff] }
 0x285   : > { %v2108_v8 = vadd.f32 %v2104_v14, %v2091_v19 }
 0x286   : > { %v2186_v51 = vpop.permute.xlu0 %2185 }
 0x287   : > { %v2191_v6 = vadd.f32 %v2186_v51, %v2170_v20  ;;  %v2129_v47 = vadd.f32 %v2125_v2, %v2108_v8 }
 0x288   : > { %v2146_v62 = vpop.permute.xlu1 %2145 }
 0x289   : > { %v2150_v45 = vadd.f32 %v2146_v62, %v2129_v47 }
 0x28a   : > { %v2207_v56 = vpop.permute.xlu0 %2206 }
 0x28b   : > { %v2212_v5 = vadd.f32 %v2207_v56, %v2191_v6 }
 0x28c   : > { %v2167_v28 = vpop.permute.xlu1 %2166 }
 0x28d   : > { %v2171_v24 = vadd.f32 %v2167_v28, %v2150_v45 }
 0x28e   : > { %v2228_v35 = vpop.permute.xlu0 %2227 }
 0x28f   : > { %v2233_v40 = vadd.f32 %v2228_v35, %v2212_v5 }
 0x290   : > { %v2188_v52 = vpop.permute.xlu1 %2187 }
 0x291   : > { %v2192_v3 = vadd.f32 %v2188_v52, %v2171_v24 }
 0x292   : > { %v2249_v42 = vpop.permute.xlu0 %2248 }
 0x293   : > { %v2254_v44 = vadd.f32 %v2249_v42, %v2233_v40 }
 0x294   : > { %v2209_v27 = vpop.permute.xlu1 %2208 }
 0x295   : > { %v2213_v23 = vadd.f32 %v2209_v27, %v2192_v3 }
 0x296   : > { %v2270_v4 = vpop.permute.xlu0 %2269 }
 0x297   : > { %v2275_v53 = vadd.f32 %v2270_v4, %v2254_v44 }
 0x298   : > { %v2230_v25 = vpop.permute.xlu1 %2229 }
 0x299   : > { %v2234_v41 = vadd.f32 %v2230_v25, %v2213_v23 }
 0x29a   : > { %v2291_v21 = vpop.permute.xlu0 %2290 }
 0x29b   : > { %v2296_v58 = vadd.f32 %v2291_v21, %v2275_v53 }
 0x29c   : > { %v2251_v61 = vpop.permute.xlu1 %2250 }
 0x29d   : > { %v2255_v11 = vadd.f32 %v2251_v61, %v2234_v41 }
 0x29e   : > { %v2312_v29 = vpop.permute.xlu0 %2311 }
 0x29f   : > { %v2317_v32 = vadd.f32 %v2312_v29, %v2296_v58 }
 0x2a0   : > { %v2272_v37 = vpop.permute.xlu1 %2271 }
 0x2a1   : > { %v2276_v38 = vadd.f32 %v2272_v37, %v2255_v11 }
 0x2a2   : > { %v2333_v55 = vpop.permute.xlu0 %2332 }
 0x2a3   : > { %v2338_v48 = vadd.f32 %v2333_v55, %v2317_v32 }
 0x2a4   : > { %v2293_v59 = vpop.permute.xlu1 %2292 }
 0x2a5   : > { %v2297_v30 = vadd.f32 %v2293_v59, %v2276_v38 }
 0x2a6   : > { %v2354_v10 = vpop.permute.xlu0 %2353 }
 0x2a7   : > { %v2359_v49 = vadd.f32 %v2354_v10, %v2338_v48 }
 0x2a8   : > { %v2314_v34 = vpop.permute.xlu1 %2313 }
 0x2a9   : > { %v2660_v60 = vmul.f32 -1.442695, %v2359_v49  ;;  %v2318_v31 = vadd.f32 %v2314_v34, %v2297_v30 }
 0x2ab   : > { %2729 = vpow2.f32 %v2660_v60 }
 0x2ac   : > { %v2335_v12 = vpop.permute.xlu1 %2334 }
 0x2ad   : > { %v2339_v26 = vadd.f32 %v2335_v12, %v2318_v31 }
 0x2b0   : > { %v2356_v57 = vpop.permute.xlu1 %2355 }
 0x2b1   : > { %v2360_v16 = vadd.f32 %v2356_v57, %v2339_v26 }
 0x2b3   : > { %v2661_v36 = vmul.f32 -1.442695, %v2360_v16 }
 0x2b5   : > { %v2730_v17 = vpop.eup %2729  ;;  %2731 = vpow2.f32 %v2661_v36 }
 0x2b6   : > { %v2367_v50 = vadd.f32 1.0, %v2730_v17 }
 0x2b8   : > { %2733 = vrcp.f32 %v2367_v50 }
 0x2bf   : > { %v2732_v39 = vpop.eup %2731 }
 0x2c0   : > { %v2368_v33 = vadd.f32 1.0, %v2732_v39 }
 0x2c2   : > { %v2734_v7 = vpop.eup %2733  ;;  %2735 = vrcp.f32 %v2368_v33 }
 0x2c3   : > { %v2379_v9 = vmul.f32 %v2734_v7, %v2373_v1  ;;  %v2381_v0 = vmul.f32 %v2734_v7, %v2375_v22  ;;  %v2383_v54 = vmul.f32 %v2734_v7, %v2377_v63 }
 0x2c5   : > { %2386 = vst.msk [vmem:[%s192_s30] sm:$0xff] %vm2385_vm9, %v2379_v9  ;;  %2388 = vst.msk [vmem:[%s192_s30 + $0x10] sm:$0xff] %vm2385_vm9, %v2381_v0 }
 0x2c6   : > { %2390 = vst.msk [vmem:[%s192_s30 + $0x20] sm:$0xff] %vm2385_vm9, %v2383_v54 }
 0x2cc   : > { %v2736_v19 = vpop.eup %2735 }
 0x2cd   : > { %v2380_v14 = vmul.f32 %v2736_v19, %v2374_v15  ;;  %v2382_v2 = vmul.f32 %v2736_v19, %v2376_v18  ;;  %v2384_v8 = vmul.f32 %v2736_v19, %v2378_v13 }
 0x2cf   : > { %2387 = vst.msk [vmem:[%s192_s30 + $0x8] sm:$0xff] %vm2385_vm9, %v2380_v14  ;;  %2389 = vst.msk [vmem:[%s192_s30 + $0x18] sm:$0xff] %vm2385_vm9, %v2382_v2 }
 0x2d0   : > { %2391 = vst.msk [vmem:[%s192_s30 + $0x28] sm:$0xff] %vm2385_vm9, %v2384_v8 }
 0x2d1   : > { %2777 = shalt.err (!%p2774_p2)
}
 0x2d2   : > { %s2778_s4 = scalar_lea.hbm %s4480_s19, 768  ;;  %s2782_s25 = scalar_lea.hbm %s4533_s3, 1536 }
 0x2d3   : > { %p2779_p3 = scmp.ne.s32.totalorder %s4480_s19, %s2778_s4  ;;  %p2783_p8 = scmp.lt.u32.totalorder %s4480_s19, %s4533_s3 }
 0x2d4   : > { %p2784_p11 = scmp.lt.u32.totalorder %s2782_s25, %s2778_s4  ;;  %p2786_p10 = scmp.lt.u32.totalorder %s2778_s4, %s4480_s19 }
 0x2d5   : > { %p2780_p4 = pnand %p2779_p3, %p2902_p5 }
 0x2d6   : > { %p2785_p9 = por %p2784_p11, %p2783_p8 }
 0x2d7   : > { %p2781_p7 = pneg %p2780_p4 }
 0x2d8   : > { %p2787_p12 = por %p2786_p10, %p2785_p9 }
 0x2da   : > { %p2788_p13 = pnand %p2787_p12, %p2781_p7 }
 0x2dc   : > { %2791 = shalt.err (!%p2788_p13)
}
 0x2dd   : > { %s2842_s5 = smov 128   ;;  %s2843_s7 = smov 8  }
 0x2de   : > { %2673 = dma.vmem_to_hbm [thread:$0]  (%p2902_p5), %s4482_s9, 768, %s4480_s19, %s4489_s16, %s2842_s5, %s2842_s5, %s2843_s7  }
 0x2df PF: > { %p2685_p0 = scmp.ge.s32.totalorder %s2830_s15, 2  ;;  %s2421_s30 = sand.u32 1, %s2818_s12  }
 0x2e0   : > { %s2422_s8 = scalar_lea.sflag [#allocation5], %s2421_s30 }
 0x2e1   : > { %p2680_p1 = pnand %p2685_p0, %p2906_p6 }
 0x2e3   : > { %2813 = dma.done.wait (!%p2680_p1), %s2422_s8, 768  }
 0x2e4   : > { %2815 = vsyncadd (!%p2680_p1), %s2422_s8, 4294966528  ;;  %p14_p2 = scmp.ge.s32.totalorder %s2889_s18, 4   ;;  %s4573_s12 = smov %s2822_s13 }
 0x2e5   : > { %s4574_s13 = smov %s2826_s14  ;;  %s4575_s14 = smov %s2900_s21 }
 0x2e6   : > { %s4576_s15 = smov %s2889_s18  ;;  %16 = sbr.rel (!%p14_p2) target bundleno = 4 (0x4), region = 106 }
 0x2ed   :  { %2427 = vsyncpa [#allocation5], 1 }
 0x2ee   :  { %2429 = vsyncpa [#allocation5 + $0x1], 1 }
 0x2ef   :  { %2430 = vsyncpa [#allocation6], 1 }
 0x2f0   :  { %2432 = vsyncpa [#allocation6 + $0x1], 1 }

</bundles_post_ra>
